<compile_context>
chip_gen: v5e
topology: v5e:2x2
jax: 0.10.0
libtpu: 0.0.40
codegen_flags: <defaults>
</compile_context>

<pallas_src>
import functools

import jax
import jax.numpy as jnp
from jax.experimental import pallas as pl
from jax.experimental.pallas import tpu as pltpu


_BF16 = jnp.bfloat16
_LN_EPS = 1e-5                     # torch.nn.LayerNorm default
_VMEM_LIMIT = 32 * 1024 * 1024     # raise (and re-derive tiles) for big emb_dim

_WEIGHT_KEYS = ("ln1_g", "ln1_b", "qkv_w", "qkv_b", "proj_w", "proj_b",
                "ln2_g", "ln2_b", "fc1_w", "fc1_b", "fc2_w", "fc2_b")


def _round_up(x, m):
    return ((x + m - 1) // m) * m


# --------------------------- in-kernel helpers ------------------------------

def _mmw(x, w):
    """f32 activation @ bf16 weight, f32 accumulation (MXU)."""
    return jnp.dot(x.astype(_BF16), w, preferred_element_type=jnp.float32)


def _ln(x, g, b, cdim, eps):
    """LayerNorm over the first `cdim` lanes of a zero-padded (rows, Cp) slab."""
    lane = jax.lax.broadcasted_iota(jnp.int32, x.shape, x.ndim - 1)
    valid = lane < cdim
    inv_c = 1.0 / float(cdim)
    mu = jnp.sum(x, axis=-1, keepdims=True) * inv_c        # padded lanes are 0
    xc = jnp.where(valid, x - mu, 0.0)
    var = jnp.sum(xc * xc, axis=-1, keepdims=True) * inv_c
    return xc * jax.lax.rsqrt(var + eps) * g + b            # g, b are 0 on pads


def _gelu(x):
    # TODO(synk): timm's nn.GELU is erf-exact; tanh approximation used here.
    return 0.5 * x * (1.0 + jnp.tanh(0.7978845608028654 * (x + 0.044715 * x * x * x)))


def _block_compute(x, w, *, B, T, nh, hd, hdp, cdim, eps):
    """One timm-style Block on a VMEM-resident (B*T, Cp) activation slab."""
    (ln1_g, ln1_b, qkv_w, qkv_b, proj_w, proj_b,
     ln2_g, ln2_b, fc1_w, fc1_b, fc2_w, fc2_b) = w
    scale = float(hd) ** -0.5

    # --- MHSA: LN1 -> QKV (batch folded into M) -> per (batch, head) attn ---
    h = _ln(x, ln1_g, ln1_b, cdim, eps)
    qkv = _mmw(h, qkv_w) + qkv_b          # (B*T, 3*nh*hdp), heads 128-lane aligned

    attn_rows = []
    for bi in range(B):                   # tiny static loops (B, nh are small);
        r0 = bi * T                       # head slices are 128-lane aligned so
        per_head = []                     # there is no lane-crossing relayout.
        for j in range(nh):
            q = qkv[r0:r0 + T, j * hdp:(j + 1) * hdp] * scale
            k = qkv[r0:r0 + T, (nh + j) * hdp:(nh + j + 1) * hdp]
            v = qkv[r0:r0 + T, (2 * nh + j) * hdp:(2 * nh + j + 1) * hdp]
            s = jax.lax.dot_general(q, k, (((1,), (1,)), ((), ())),
                                    preferred_element_type=jnp.float32)   # (T, T)
            m = jnp.max(s, axis=-1, keepdims=True)
            p = jnp.exp(s - m)
            den = jnp.sum(p, axis=-1, keepdims=True)
            o = jnp.dot(p, v, preferred_element_type=jnp.float32)         # (T, hdp)
            per_head.append(o / den)                                      # exact recip
        attn_rows.append(jnp.concatenate(per_head, axis=-1))              # (T, nh*hdp)
    a = jnp.concatenate(attn_rows, axis=0)                                # (B*T, nh*hdp)
    x = x + _mmw(a, proj_w) + proj_b

    # --- MLP ---
    h = _ln(x, ln2_g, ln2_b, cdim, eps)
    h = _gelu(_mmw(h, fc1_w) + fc1_b)
    x = x + _mmw(h, fc2_w) + fc2_b
    return x


# --------------------------- fused stack kernels ----------------------------

def _encoder_stack_kernel(x_ref,
                          ln1_g, ln1_b, qkv_w, qkv_b, proj_w, proj_b,
                          ln2_g, ln2_b, fc1_w, fc1_b, fc2_w, fc2_b,
                          lnf_g, lnf_b, o_ref, acc_ref,
                          *, B, T, nh, hd, hdp, cdim, eps):
    layer = pl.program_id(0)

    @pl.when(layer == 0)
    def _():
        acc_ref[...] = x_ref[...]

    w = (ln1_g[...], ln1_b[...], qkv_w[...], qkv_b[...], proj_w[...], proj_b[...],
         ln2_g[...], ln2_b[...], fc1_w[...], fc1_b[...], fc2_w[...], fc2_b[...])
    y = _block_compute(acc_ref[...], w, B=B, T=T, nh=nh, hd=hd, hdp=hdp,
                       cdim=cdim, eps=eps)
    acc_ref[...] = y

    @pl.when(layer == pl.num_programs(0) - 1)
    def _():
        o_ref[...] = _ln(y, lnf_g[...], lnf_b[...], cdim, eps)   # final LN fused


def _decoder_stack_kernel(x_ref, pos_ref,
                          ln1_g, ln1_b, qkv_w, qkv_b, proj_w, proj_b,
                          ln2_g, ln2_b, fc1_w, fc1_b, fc2_w, fc2_b,
                          head_w, head_b, o_ref, acc_ref,
                          *, B, T, nh, hd, hdp, cdim, eps):
    layer = pl.program_id(0)

    @pl.when(layer == 0)
    def _():
        pos = pos_ref[...]
        acc_ref[...] = x_ref[...] + jnp.concatenate([pos] * B, axis=0)  # pos-emb fused

    w = (ln1_g[...], ln1_b[...], qkv_w[...], qkv_b[...], proj_w[...], proj_b[...],
         ln2_g[...], ln2_b[...], fc1_w[...], fc1_b[...], fc2_w[...], fc2_b[...])
    y = _block_compute(acc_ref[...], w, B=B, T=T, nh=nh, hd=hd, hdp=hdp,
                       cdim=cdim, eps=eps)
    acc_ref[...] = y

    @pl.when(layer == pl.num_programs(0) - 1)
    def _():
        o_ref[...] = _mmw(y, head_w[...]) + head_b[...]          # decoder head fused


# ------------------------------- BlockSpecs ---------------------------------

def _const_spec(shape):
    nd = len(shape)
    return pl.BlockSpec(tuple(shape), lambda *_, _nd=nd: (0,) * _nd)


def _layer_spec(per_layer_shape):
    nd = len(per_layer_shape)
    return pl.BlockSpec((None,) + tuple(per_layer_shape),
                        lambda l, _nd=nd: (l,) + (0,) * _nd)


def _stacked_weight_specs(blk):
    return [_layer_spec(blk[k].shape[1:]) for k in _WEIGHT_KEYS]


# ------------------------------ kernel wrappers ------------------------------

def patch_embed_forward(x, w, b, pos, *, B):
    """Fused patchify matmul + bias + positional embedding add."""
    M, Pp = x.shape
    Cp = w.shape[1]
    T = pos.shape[0]
    return pl.pallas_call(
        functools.partial(_patch_embed_kernel, B=B),
        out_shape=jax.ShapeDtypeStruct((M, Cp), jnp.float32),
        grid=(1,),
        in_specs=[_const_spec((M, Pp)), _const_spec((Pp, Cp)),
                  _const_spec((1, Cp)), _const_spec((T, Cp))],
        out_specs=_const_spec((M, Cp)),
        compiler_params=pltpu.CompilerParams(vmem_limit_bytes=_VMEM_LIMIT),
    )(x, w, b, pos)


def _patch_embed_kernel(x_ref, w_ref, b_ref, pos_ref, o_ref, *, B):
    y = _mmw(x_ref[...], w_ref[...]) + b_ref[...]
    pos = pos_ref[...]
    o_ref[...] = y + jnp.concatenate([pos] * B, axis=0)


def encoder_stack_forward(x, blk, lnf_g, lnf_b, *, B, T, nh, cdim, eps=_LN_EPS):
    M, Cp = x.shape
    L = blk["qkv_w"].shape[0]
    hdp = blk["qkv_w"].shape[2] // (3 * nh)
    kernel = functools.partial(_encoder_stack_kernel, B=B, T=T, nh=nh,
                               hd=cdim // nh, hdp=hdp, cdim=cdim, eps=eps)
    in_specs = ([_const_spec((M, Cp))] + _stacked_weight_specs(blk)
                + [_const_spec((1, Cp)), _const_spec((1, Cp))])
    return pl.pallas_call(
        kernel,
        out_shape=jax.ShapeDtypeStruct((M, Cp), jnp.float32),
        grid=(L,),
        in_specs=in_specs,
        out_specs=_const_spec((M, Cp)),
        scratch_shapes=[pltpu.VMEM((M, Cp), jnp.float32)],
        compiler_params=pltpu.CompilerParams(
            dimension_semantics=("arbitrary",),
            vmem_limit_bytes=_VMEM_LIMIT),
    )(x, *[blk[k] for k in _WEIGHT_KEYS], lnf_g, lnf_b)


def decoder_stack_forward(x, pos, blk, head_w, head_b, *, B, T, nh, cdim,
                          eps=_LN_EPS):
    M, Cp = x.shape
    Np = head_w.shape[1]
    L = blk["qkv_w"].shape[0]
    hdp = blk["qkv_w"].shape[2] // (3 * nh)
    kernel = functools.partial(_decoder_stack_kernel, B=B, T=T, nh=nh,
                               hd=cdim // nh, hdp=hdp, cdim=cdim, eps=eps)
    in_specs = ([_const_spec((M, Cp)), _const_spec((pos.shape[0], Cp))]
                + _stacked_weight_specs(blk)
                + [_const_spec((Cp, Np)), _const_spec((1, Np))])
    return pl.pallas_call(
        kernel,
        out_shape=jax.ShapeDtypeStruct((M, Np), jnp.float32),
        grid=(L,),
        in_specs=in_specs,
        out_specs=_const_spec((M, Np)),
        scratch_shapes=[pltpu.VMEM((M, Cp), jnp.float32)],
        compiler_params=pltpu.CompilerParams(
            dimension_semantics=("arbitrary",),
            vmem_limit_bytes=_VMEM_LIMIT),
    )(x, pos, *[blk[k] for k in _WEIGHT_KEYS], head_w, head_b)


# ------------------------------ MAE helpers ---------------------------------

def patch_shuffle_indexes(key, T, B):
    """On-device per-batch random permutation (jittable, deterministic)."""
    keys = jax.random.split(key, B)
    fwd = jax.vmap(lambda k: jax.random.permutation(k, T))(keys)   # (B, T)
    bwd = jnp.argsort(fwd, axis=-1)
    return fwd.astype(jnp.int32), bwd.astype(jnp.int32)


def _pad2(a, shape):
    out = jnp.zeros(shape, jnp.float32)
    return out.at[:a.shape[0], :a.shape[1]].set(a)


def init_block_params(key, C, nh, Cp, hdp, Hp):
    """Per-layer weights in padded, head-aligned layout (pads are zero)."""
    hd = C // nh
    Dh = nh * hdp
    k1, k2, k3, k4 = jax.random.split(key, 4)
    std = 0.02
    qkv = jax.random.normal(k1, (C, 3 * C), jnp.float32) * std
    proj = jax.random.normal(k2, (C, C), jnp.float32) * std
    fc1 = jax.random.normal(k3, (C, 4 * C), jnp.float32) * std
    fc2 = jax.random.normal(k4, (4 * C, C), jnp.float32) * std

    qkv_p = jnp.zeros((Cp, 3 * Dh), jnp.float32)
    for s in range(3):                       # q / k / v sections
        for h in range(nh):                  # each head gets its own 128-lane slot
            dst = (s * nh + h) * hdp
            qkv_p = qkv_p.at[:C, dst:dst + hd].set(
                qkv[:, s * C + h * hd:s * C + (h + 1) * hd])
    proj_p = jnp.zeros((Dh, Cp), jnp.float32)
    for h in range(nh):
        proj_p = proj_p.at[h * hdp:h * hdp + hd, :C].set(proj[h * hd:(h + 1) * hd, :])

    gamma = jnp.zeros((Cp,), jnp.float32).at[:C].set(1.0)
    zc = jnp.zeros((Cp,), jnp.float32)
    return dict(
        ln1_g=gamma, ln1_b=zc,
        qkv_w=qkv_p, qkv_b=jnp.zeros((3 * Dh,), jnp.float32),
        proj_w=proj_p, proj_b=zc,
        ln2_g=gamma, ln2_b=zc,
        fc1_w=_pad2(fc1, (Cp, Hp)), fc1_b=jnp.zeros((Hp,), jnp.float32),
        fc2_w=_pad2(fc2, (Hp, Cp)), fc2_b=zc,
    )


def _stack_blocks(blocks):
    """Stack per-layer dicts into (L, ...) arrays; matmul weights become bf16."""
    mats = {"qkv_w", "proj_w", "fc1_w", "fc2_w"}
    out = {}
    for k in _WEIGHT_KEYS:
        s = jnp.stack([blk[k] for blk in blocks])
        out[k] = s.astype(_BF16) if k in mats else s[:, None, :]   # biases -> (L,1,D)
    return out


def init_mae_params(key, cfg):
    H, W = cfg["image_size"]
    ph, pw = cfg["patch_size"]
    C = cfg["emb_dim"]
    T = (H // ph) * (W // pw)
    P = ph * pw
    Cp = _round_up(C, 128)
    Pp = _round_up(P, 128)
    Np = _round_up(P, 128)
    Hp = _round_up(4 * C, 128)
    hdp_e = _round_up(C // cfg["encoder_head"], 128)
    hdp_d = _round_up(C // cfg["decoder_head"], 128)

    keys = list(jax.random.split(key, 6 + cfg["encoder_layer"] + cfg["decoder_layer"]))
    nk = lambda: keys.pop(0)
    std = 0.02

    def padded(kk, rows, cols, r, c):
        return _pad2(jax.random.normal(kk, (r, c), jnp.float32) * std, (rows, cols))

    p = {}
    p["cls_token"] = padded(nk(), 1, Cp, 1, C)[None]                  # (1, 1, Cp)
    p["enc_pos"] = padded(nk(), T, Cp, T, C)                          # (T, Cp)
    p["patch_w"] = padded(nk(), Pp, Cp, P, C).astype(_BF16)           # Conv2d == matmul
    p["patch_b"] = jnp.zeros((1, Cp), jnp.float32)
    p["enc_blocks"] = _stack_blocks(
        [init_block_params(nk(), C, cfg["encoder_head"], Cp, hdp_e, Hp)
         for _ in range(cfg["encoder_layer"])])
    p["enc_lnf_g"] = jnp.zeros((1, Cp), jnp.float32).at[0, :C].set(1.0)
    p["enc_lnf_b"] = jnp.zeros((1, Cp), jnp.float32)
    p["mask_token"] = padded(nk(), 1, Cp, 1, C)[None]                 # (1, 1, Cp)
    p["dec_pos"] = padded(nk(), T + 1, Cp, T + 1, C)                  # (T+1, Cp)
    p["dec_blocks"] = _stack_blocks(
        [init_block_params(nk(), C, cfg["decoder_head"], Cp, hdp_d, Hp)
         for _ in range(cfg["decoder_layer"])])
    p["head_w"] = padded(nk(), Cp, Np, C, P).astype(_BF16)
    p["head_b"] = jnp.zeros((1, Np), jnp.float32)
    return p


# ------------------------------ MAE forward ---------------------------------

def encoder_forward(img, params, key, cfg):
    B = img.shape[0]
    H, W = cfg["image_size"]
    ph, pw = cfg["patch_size"]
    C = cfg["emb_dim"]
    nhp, nwp = H // ph, W // pw
    T = nhp * nwp
    P = ph * pw
    Cp = params["enc_pos"].shape[1]
    Pp = params["patch_w"].shape[0]

    # Patch extraction (Conv2d stride==kernel==patch) -> (B, T, P), h-major T.
    x = img[:, 0].reshape(B, nhp, ph, nwp, pw).transpose(0, 1, 3, 2, 4).reshape(B, T, P)
    x = jnp.pad(x, ((0, 0), (0, 0), (0, Pp - P)))                     # lane-pad pixels
    patches = patch_embed_forward(
        x.reshape(B * T, Pp), params["patch_w"], params["patch_b"],
        params["enc_pos"], B=B).reshape(B, T, Cp)

    # PatchShuffle — data-dependent gather stays in XLA, (B, T, C) layout kept.
    remain_T = int(T * (1 - cfg["mask_ratio"]))
    fwd_idx, bwd_idx = patch_shuffle_indexes(key, T, B)               # (B, T) each
    vis = jnp.take_along_axis(patches, fwd_idx[:, :remain_T, None], axis=1)
    cls = jnp.broadcast_to(params["cls_token"], (B, 1, Cp))
    tokens = jnp.concatenate([cls, vis], axis=1)                      # (B, Te, Cp)
    Te = tokens.shape[1]

    feats = encoder_stack_forward(
        tokens.reshape(B * Te, Cp), params["enc_blocks"],
        params["enc_lnf_g"], params["enc_lnf_b"],
        B=B, T=Te, nh=cfg["encoder_head"], cdim=C)
    return feats.reshape(B, Te, Cp), bwd_idx


def decoder_forward(feats, bwd_idx, params, cfg):
    B, Tvis, Cp = feats.shape
    H, W = cfg["image_size"]
    ph, pw = cfg["patch_size"]
    nhp, nwp = H // ph, W // pw
    T = nhp * nwp
    P = ph * pw
    Td = T + 1

    bwd_full = jnp.concatenate([jnp.zeros((B, 1), jnp.int32), bwd_idx + 1], axis=1)
    mask_tok = jnp.broadcast_to(params["mask_token"], (B, Td - Tvis, Cp))
    full = jnp.concatenate([feats, mask_tok], axis=1)                 # (B, Td, Cp)
    tokens = jnp.take_along_axis(full, bwd_full[:, :, None], axis=1)  # unshuffle

    out = decoder_stack_forward(
        tokens.reshape(B * Td, Cp), params["dec_pos"], params["dec_blocks"],
        params["head_w"], params["head_b"],
        B=B, T=Td, nh=cfg["decoder_head"], cdim=cfg["emb_dim"])
    Np = out.shape[1]
    patches = out.reshape(B, Td, Np)[:, 1:, :P]                       # drop CLS, unpad

    mask = jnp.zeros((B, T, P), jnp.float32).at[:, Tvis - 1:, :].set(1.0)
    mask = jnp.take_along_axis(mask, bwd_idx[:, :, None], axis=1)

    def patch2img(z):  # (B, T, P) -> (B, 1, H, W), '(h w) ... (p1 p2)' ordering
        return (z.reshape(B, nhp, nwp, ph, pw)
                 .transpose(0, 1, 3, 2, 4)
                 .reshape(B, 1, H, W))

    return patch2img(patches), patch2img(mask)


def mae_vit_forward(img, params, key, cfg):
    feats, bwd_idx = encoder_forward(img, params, key, cfg)
    return decoder_forward(feats, bwd_idx, params, cfg)


# ---------------------------------- main -------------------------------------

if __name__ == "__main__":
    cfg = dict(image_size=(16, 8), patch_size=(8, 1), emb_dim=32,
               encoder_layer=2, encoder_head=2,
               decoder_layer=2, decoder_head=2,
               mask_ratio=0.75)

    key = jax.random.PRNGKey(0)
    kp, kx, ks = jax.random.split(key, 3)
    params = init_mae_params(kp, cfg)

    B = 2
    img = jax.random.normal(
        kx, (B, 1, cfg["image_size"][0], cfg["image_size"][1]), jnp.float32)

    fwd_fn = jax.jit(functools.partial(mae_vit_forward, cfg=cfg))
    pred_img, mask = fwd_fn(img, params, ks)
    jax.block_until_ready((pred_img, mask))

    assert pred_img.shape == (B, 1, cfg["image_size"][0], cfg["image_size"][1])
    assert mask.shape == (B, 1, cfg["image_size"][0], cfg["image_size"][1])
    assert bool(jnp.all(jnp.isfinite(pred_img))) and bool(jnp.all(jnp.isfinite(mask)))
    assert abs(float(mask.mean()) - cfg["mask_ratio"]) < 1e-6
    print("KERNEL_OK")
</pallas_src>

<mosaic_0001>
module attributes {stable_mosaic.version = 11 : i64} {
  func.func @_patch_embed_kernel(%arg0: i32, %arg1: memref<32x128xf32, #tpu.memory_space<vmem>>, %arg2: memref<128x128xbf16, #tpu.memory_space<vmem>>, %arg3: memref<1x128xf32, #tpu.memory_space<vmem>>, %arg4: memref<16x128xf32, #tpu.memory_space<vmem>>, %arg5: memref<32x128xf32, #tpu.memory_space<vmem>>) attributes {dimension_semantics = [#tpu.dimension_semantics<arbitrary>], iteration_bounds = array<i64: 1>, scalar_prefetch = 0 : i64, scratch_operands = 0 : i64, tpu.core_type = #tpu.core_type<tc>, window_params = [{pipeline_mode = #tpu.pipeline_mode<synchronous>, transform_indices = @transform_0, window_bounds = array<i64: 32, 128>}, {pipeline_mode = #tpu.pipeline_mode<synchronous>, transform_indices = @transform_1, window_bounds = array<i64: 128, 128>}, {pipeline_mode = #tpu.pipeline_mode<synchronous>, transform_indices = @transform_2, window_bounds = array<i64: 1, 128>}, {pipeline_mode = #tpu.pipeline_mode<synchronous>, transform_indices = @transform_3, window_bounds = array<i64: 16, 128>}, {pipeline_mode = #tpu.pipeline_mode<synchronous>, transform_indices = @transform_4, window_bounds = array<i64: 32, 128>}]} {
    %c0 = arith.constant 0 : index
    %c0_0 = arith.constant 0 : index
    %0 = vector.load %arg1[%c0, %c0_0] : memref<32x128xf32, #tpu.memory_space<vmem>>, vector<32x128xf32>
    %c0_1 = arith.constant 0 : index
    %c0_2 = arith.constant 0 : index
    %1 = vector.load %arg2[%c0_1, %c0_2] : memref<128x128xbf16, #tpu.memory_space<vmem>>, vector<128x128xbf16>
    %2 = arith.truncf %0 : vector<32x128xf32> to vector<32x128xbf16>
    %cst = arith.constant dense<0.000000e+00> : vector<32x128xf32>
    %3 = tpu.matmul %2, %1, %cst {dimension_numbers = #tpu.dot_dimension_numbers<[1], [0], [0], [1], [0, 0, 1, 1], [], []>} : vector<32x128xbf16>, vector<128x128xbf16>, vector<32x128xf32> -> vector<32x128xf32>
    %c0_3 = arith.constant 0 : index
    %c0_4 = arith.constant 0 : index
    %4 = vector.load %arg3[%c0_3, %c0_4] : memref<1x128xf32, #tpu.memory_space<vmem>>, vector<1x128xf32>
    %5 = vector.broadcast %4 : vector<1x128xf32> to vector<32x128xf32>
    %6 = arith.addf %3, %5 : vector<32x128xf32>
    %c0_5 = arith.constant 0 : index
    %c0_6 = arith.constant 0 : index
    %7 = vector.load %arg4[%c0_5, %c0_6] : memref<16x128xf32, #tpu.memory_space<vmem>>, vector<16x128xf32>
    %8 = tpu.concatenate %7, %7 in 0 : vector<16x128xf32>, vector<16x128xf32> -> vector<32x128xf32>
    %9 = arith.addf %6, %8 : vector<32x128xf32>
    %c0_7 = arith.constant 0 : index
    %c0_8 = arith.constant 0 : index
    %10 = vector.load %arg5[%c0_7, %c0_8] : memref<32x128xf32, #tpu.memory_space<vmem>>, vector<32x128xf32>
    tpu.vector_store %arg5[%c0_7, %c0_8], %9 {strides = array<i32>} : memref<32x128xf32, #tpu.memory_space<vmem>>, vector<32x128xf32>,
    return
  }
  func.func @transform_0(%arg0: i32) -> (i32, i32) {
    %c0_i32 = arith.constant 0 : i32
    %c0_i32_0 = arith.constant 0 : i32
    %c0_i32_1 = arith.constant 0 : i32
    return %c0_i32, %c0_i32_0 : i32, i32
  }
  func.func @transform_1(%arg0: i32) -> (i32, i32) {
    %c0_i32 = arith.constant 0 : i32
    %c0_i32_0 = arith.constant 0 : i32
    %c0_i32_1 = arith.constant 0 : i32
    return %c0_i32, %c0_i32_0 : i32, i32
  }
  func.func @transform_2(%arg0: i32) -> (i32, i32) {
    %c0_i32 = arith.constant 0 : i32
    %c0_i32_0 = arith.constant 0 : i32
    %c0_i32_1 = arith.constant 0 : i32
    return %c0_i32, %c0_i32_0 : i32, i32
  }
  func.func @transform_3(%arg0: i32) -> (i32, i32) {
    %c0_i32 = arith.constant 0 : i32
    %c0_i32_0 = arith.constant 0 : i32
    %c0_i32_1 = arith.constant 0 : i32
    return %c0_i32, %c0_i32_0 : i32, i32
  }
  func.func @transform_4(%arg0: i32) -> (i32, i32) {
    %c0_i32 = arith.constant 0 : i32
    %c0_i32_0 = arith.constant 0 : i32
    %c0_i32_1 = arith.constant 0 : i32
    return %c0_i32, %c0_i32_0 : i32, i32
  }
}

module attributes {stable_mosaic.version = 11 : i64} {
  func.func @_encoder_stack_kernel(%arg0: i32, %arg1: memref<10x128xf32, #tpu.memory_space<vmem>>, %arg2: memref<1x1x128xf32, #tpu.memory_space<vmem>>, %arg3: memref<1x1x128xf32, #tpu.memory_space<vmem>>, %arg4: memref<1x128x768xbf16, #tpu.memory_space<vmem>>, %arg5: memref<1x1x768xf32, #tpu.memory_space<vmem>>, %arg6: memref<1x256x128xbf16, #tpu.memory_space<vmem>>, %arg7: memref<1x1x128xf32, #tpu.memory_space<vmem>>, %arg8: memref<1x1x128xf32, #tpu.memory_space<vmem>>, %arg9: memref<1x1x128xf32, #tpu.memory_space<vmem>>, %arg10: memref<1x128x128xbf16, #tpu.memory_space<vmem>>, %arg11: memref<1x1x128xf32, #tpu.memory_space<vmem>>, %arg12: memref<1x128x128xbf16, #tpu.memory_space<vmem>>, %arg13: memref<1x1x128xf32, #tpu.memory_space<vmem>>, %arg14: memref<1x128xf32, #tpu.memory_space<vmem>>, %arg15: memref<1x128xf32, #tpu.memory_space<vmem>>, %arg16: memref<10x128xf32, #tpu.memory_space<vmem>>, %arg17: memref<10x128xf32, #tpu.memory_space<vmem>>) attributes {dimension_semantics = [#tpu.dimension_semantics<arbitrary>], iteration_bounds = array<i64: 2>, scalar_prefetch = 0 : i64, scratch_operands = 1 : i64, tpu.core_type = #tpu.core_type<tc>, window_params = [{pipeline_mode = #tpu.pipeline_mode<synchronous>, transform_indices = @transform_0, window_bounds = array<i64: 10, 128>}, {transform_indices = @transform_1, window_bounds = array<i64: 1, 1, 128>}, {transform_indices = @transform_2, window_bounds = array<i64: 1, 1, 128>}, {transform_indices = @transform_3, window_bounds = array<i64: 1, 128, 768>}, {transform_indices = @transform_4, window_bounds = array<i64: 1, 1, 768>}, {transform_indices = @transform_5, window_bounds = array<i64: 1, 256, 128>}, {transform_indices = @transform_6, window_bounds = array<i64: 1, 1, 128>}, {transform_indices = @transform_7, window_bounds = array<i64: 1, 1, 128>}, {transform_indices = @transform_8, window_bounds = array<i64: 1, 1, 128>}, {transform_indices = @transform_9, window_bounds = array<i64: 1, 128, 128>}, {transform_indices = @transform_10, window_bounds = array<i64: 1, 1, 128>}, {transform_indices = @transform_11, window_bounds = array<i64: 1, 128, 128>}, {transform_indices = @transform_12, window_bounds = array<i64: 1, 1, 128>}, {pipeline_mode = #tpu.pipeline_mode<synchronous>, transform_indices = @transform_13, window_bounds = array<i64: 1, 128>}, {pipeline_mode = #tpu.pipeline_mode<synchronous>, transform_indices = @transform_14, window_bounds = array<i64: 1, 128>}, {pipeline_mode = #tpu.pipeline_mode<synchronous>, transform_indices = @transform_15, window_bounds = array<i64: 10, 128>}]} {
    %c0_i32 = arith.constant 0 : i32
    %0 = arith.cmpi eq, %arg0, %c0_i32 : i32
    %1 = arith.extui %0 : i1 to i32
    %c0_i32_0 = arith.constant 0 : i32
    %2 = arith.cmpi ne, %1, %c0_i32_0 : i32
    scf.if %2 {
      %c0_81 = arith.constant 0 : index
      %c0_82 = arith.constant 0 : index
      %180 = vector.load %arg1[%c0_81, %c0_82] : memref<10x128xf32, #tpu.memory_space<vmem>>, vector<10x128xf32>
      %c0_83 = arith.constant 0 : index
      %c0_84 = arith.constant 0 : index
      %181 = vector.load %arg17[%c0_83, %c0_84] : memref<10x128xf32, #tpu.memory_space<vmem>>, vector<10x128xf32>
      tpu.vector_store %arg17[%c0_83, %c0_84], %180 {strides = array<i32>} : memref<10x128xf32, #tpu.memory_space<vmem>>, vector<10x128xf32>,
    } else {
    }
    %c0 = arith.constant 0 : index
    %c0_1 = arith.constant 0 : index
    %c0_2 = arith.constant 0 : index
    %3 = vector.load %arg2[%c0, %c0_1, %c0_2] : memref<1x1x128xf32, #tpu.memory_space<vmem>>, vector<1x1x128xf32>
    %4 = vector.shape_cast %3 : vector<1x1x128xf32> to vector<1x128xf32>
    %c0_3 = arith.constant 0 : index
    %c0_4 = arith.constant 0 : index
    %c0_5 = arith.constant 0 : index
    %5 = vector.load %arg3[%c0_3, %c0_4, %c0_5] : memref<1x1x128xf32, #tpu.memory_space<vmem>>, vector<1x1x128xf32>
    %6 = vector.shape_cast %5 : vector<1x1x128xf32> to vector<1x128xf32>
    %c0_6 = arith.constant 0 : index
    %c0_7 = arith.constant 0 : index
    %c0_8 = arith.constant 0 : index
    %7 = vector.load %arg4[%c0_6, %c0_7, %c0_8] : memref<1x128x768xbf16, #tpu.memory_space<vmem>>, vector<1x128x768xbf16>
    %8 = vector.shape_cast %7 : vector<1x128x768xbf16> to vector<128x768xbf16>
    %c0_9 = arith.constant 0 : index
    %c0_10 = arith.constant 0 : index
    %c0_11 = arith.constant 0 : index
    %9 = vector.load %arg5[%c0_9, %c0_10, %c0_11] : memref<1x1x768xf32, #tpu.memory_space<vmem>>, vector<1x1x768xf32>
    %10 = vector.shape_cast %9 : vector<1x1x768xf32> to vector<1x768xf32>
    %c0_12 = arith.constant 0 : index
    %c0_13 = arith.constant 0 : index
    %c0_14 = arith.constant 0 : index
    %11 = vector.load %arg6[%c0_12, %c0_13, %c0_14] : memref<1x256x128xbf16, #tpu.memory_space<vmem>>, vector<1x256x128xbf16>
    %12 = vector.shape_cast %11 : vector<1x256x128xbf16> to vector<256x128xbf16>
    %c0_15 = arith.constant 0 : index
    %c0_16 = arith.constant 0 : index
    %c0_17 = arith.constant 0 : index
    %13 = vector.load %arg7[%c0_15, %c0_16, %c0_17] : memref<1x1x128xf32, #tpu.memory_space<vmem>>, vector<1x1x128xf32>
    %14 = vector.shape_cast %13 : vector<1x1x128xf32> to vector<1x128xf32>
    %c0_18 = arith.constant 0 : index
    %c0_19 = arith.constant 0 : index
    %c0_20 = arith.constant 0 : index
    %15 = vector.load %arg8[%c0_18, %c0_19, %c0_20] : memref<1x1x128xf32, #tpu.memory_space<vmem>>, vector<1x1x128xf32>
    %16 = vector.shape_cast %15 : vector<1x1x128xf32> to vector<1x128xf32>
    %c0_21 = arith.constant 0 : index
    %c0_22 = arith.constant 0 : index
    %c0_23 = arith.constant 0 : index
    %17 = vector.load %arg9[%c0_21, %c0_22, %c0_23] : memref<1x1x128xf32, #tpu.memory_space<vmem>>, vector<1x1x128xf32>
    %18 = vector.shape_cast %17 : vector<1x1x128xf32> to vector<1x128xf32>
    %c0_24 = arith.constant 0 : index
    %c0_25 = arith.constant 0 : index
    %c0_26 = arith.constant 0 : index
    %19 = vector.load %arg10[%c0_24, %c0_25, %c0_26] : memref<1x128x128xbf16, #tpu.memory_space<vmem>>, vector<1x128x128xbf16>
    %20 = vector.shape_cast %19 : vector<1x128x128xbf16> to vector<128x128xbf16>
    %c0_27 = arith.constant 0 : index
    %c0_28 = arith.constant 0 : index
    %c0_29 = arith.constant 0 : index
    %21 = vector.load %arg11[%c0_27, %c0_28, %c0_29] : memref<1x1x128xf32, #tpu.memory_space<vmem>>, vector<1x1x128xf32>
    %22 = vector.shape_cast %21 : vector<1x1x128xf32> to vector<1x128xf32>
    %c0_30 = arith.constant 0 : index
    %c0_31 = arith.constant 0 : index
    %c0_32 = arith.constant 0 : index
    %23 = vector.load %arg12[%c0_30, %c0_31, %c0_32] : memref<1x128x128xbf16, #tpu.memory_space<vmem>>, vector<1x128x128xbf16>
    %24 = vector.shape_cast %23 : vector<1x128x128xbf16> to vector<128x128xbf16>
    %c0_33 = arith.constant 0 : index
    %c0_34 = arith.constant 0 : index
    %c0_35 = arith.constant 0 : index
    %25 = vector.load %arg13[%c0_33, %c0_34, %c0_35] : memref<1x1x128xf32, #tpu.memory_space<vmem>>, vector<1x1x128xf32>
    %26 = vector.shape_cast %25 : vector<1x1x128xf32> to vector<1x128xf32>
    %c0_36 = arith.constant 0 : index
    %c0_37 = arith.constant 0 : index
    %27 = vector.load %arg17[%c0_36, %c0_37] : memref<10x128xf32, #tpu.memory_space<vmem>>, vector<10x128xf32>
    %28 = tpu.iota {dimensions = array<i32: 1>} : vector<10x128xi32>
    %c32_i32 = arith.constant 32 : i32
    %29 = vector.broadcast %c32_i32 : i32 to vector<10x128xi32>
    %30 = arith.cmpi slt, %28, %29 : vector<10x128xi32>
    %cst = arith.constant dense<0.000000e+00> : vector<10xf32>
    %31 = vector.multi_reduction <add>, %27, %cst [1] : vector<10x128xf32> to vector<10xf32>
    %32 = vector.shape_cast %31 : vector<10xf32> to vector<10x1xf32>
    %cst_38 = arith.constant 3.125000e-02 : f32
    %33 = vector.broadcast %cst_38 : f32 to vector<10x1xf32>
    %34 = arith.mulf %32, %33 : vector<10x1xf32>
    %35 = vector.broadcast %34 : vector<10x1xf32> to vector<10x128xf32>
    %36 = arith.subf %27, %35 : vector<10x128xf32>
    %cst_39 = arith.constant 0.000000e+00 : f32
    %37 = vector.broadcast %cst_39 : f32 to vector<10x128xf32>
    %38 = arith.select %30, %36, %37 : vector<10x128xi1>, vector<10x128xf32>
    %39 = arith.mulf %38, %38 : vector<10x128xf32>
    %cst_40 = arith.constant dense<0.000000e+00> : vector<10xf32>
    %40 = vector.multi_reduction <add>, %39, %cst_40 [1] : vector<10x128xf32> to vector<10xf32>
    %41 = vector.shape_cast %40 : vector<10xf32> to vector<10x1xf32>
    %cst_41 = arith.constant 3.125000e-02 : f32
    %42 = vector.broadcast %cst_41 : f32 to vector<10x1xf32>
    %43 = arith.mulf %41, %42 : vector<10x1xf32>
    %cst_42 = arith.constant 9.99999974E-6 : f32
    %44 = vector.broadcast %cst_42 : f32 to vector<10x1xf32>
    %45 = arith.addf %43, %44 : vector<10x1xf32>
    %46 = math.rsqrt %45 : vector<10x1xf32>
    %47 = vector.broadcast %46 : vector<10x1xf32> to vector<10x128xf32>
    %48 = arith.mulf %38, %47 : vector<10x128xf32>
    %49 = vector.broadcast %4 : vector<1x128xf32> to vector<10x128xf32>
    %50 = arith.mulf %48, %49 : vector<10x128xf32>
    %51 = vector.broadcast %6 : vector<1x128xf32> to vector<10x128xf32>
    %52 = arith.addf %50, %51 : vector<10x128xf32>
    %53 = arith.truncf %52 : vector<10x128xf32> to vector<10x128xbf16>
    %cst_43 = arith.constant dense<0.000000e+00> : vector<10x768xf32>
    %54 = tpu.matmul %53, %8, %cst_43 {dimension_numbers = #tpu.dot_dimension_numbers<[1], [0], [0], [1], [0, 0, 1, 1], [], []>} : vector<10x128xbf16>, vector<128x768xbf16>, vector<10x768xf32> -> vector<10x768xf32>
    %55 = vector.broadcast %10 : vector<1x768xf32> to vector<10x768xf32>
    %56 = arith.addf %54, %55 : vector<10x768xf32>
    %57 = vector.extract_strided_slice %56 {offsets = [0, 0], sizes = [5, 128], strides = [1, 1]} : vector<10x768xf32> to vector<5x128xf32>
    %cst_44 = arith.constant 2.500000e-01 : f32
    %58 = vector.broadcast %cst_44 : f32 to vector<5x128xf32>
    %59 = arith.mulf %57, %58 : vector<5x128xf32>
    %60 = vector.extract_strided_slice %56 {offsets = [0, 256], sizes = [5, 128], strides = [1, 1]} : vector<10x768xf32> to vector<5x128xf32>
    %61 = vector.extract_strided_slice %56 {offsets = [0, 512], sizes = [5, 128], strides = [1, 1]} : vector<10x768xf32> to vector<5x128xf32>
    %cst_45 = arith.constant dense<0.000000e+00> : vector<5x5xf32>
    %62 = tpu.matmul %59, %60, %cst_45 {dimension_numbers = #tpu.dot_dimension_numbers<[1], [1], [0], [0], [0, 0, 1, 0], [], []>} : vector<5x128xf32>, vector<5x128xf32>, vector<5x5xf32> -> vector<5x5xf32>
    %cst_46 = arith.constant dense<0xFF800000> : vector<5xf32>
    %63 = vector.multi_reduction <maximumf>, %62, %cst_46 [1] : vector<5x5xf32> to vector<5xf32>
    %64 = vector.shape_cast %63 : vector<5xf32> to vector<5x1xf32>
    %65 = vector.broadcast %64 : vector<5x1xf32> to vector<5x5xf32>
    %66 = arith.subf %62, %65 : vector<5x5xf32>
    %67 = math.exp %66 : vector<5x5xf32>
    %cst_47 = arith.constant dense<0.000000e+00> : vector<5xf32>
    %68 = vector.multi_reduction <add>, %67, %cst_47 [1] : vector<5x5xf32> to vector<5xf32>
    %69 = vector.shape_cast %68 : vector<5xf32> to vector<5x1xf32>
    %cst_48 = arith.constant dense<0.000000e+00> : vector<5x128xf32>
    %70 = tpu.matmul %67, %61, %cst_48 {dimension_numbers = #tpu.dot_dimension_numbers<[1], [0], [0], [1], [0, 0, 1, 1], [], []>} : vector<5x5xf32>, vector<5x128xf32>, vector<5x128xf32> -> vector<5x128xf32>
    %71 = vector.broadcast %69 : vector<5x1xf32> to vector<5x128xf32>
    %72 = arith.divf %70, %71 : vector<5x128xf32>
    %73 = vector.extract_strided_slice %56 {offsets = [0, 128], sizes = [5, 128], strides = [1, 1]} : vector<10x768xf32> to vector<5x128xf32>
    %cst_49 = arith.constant 2.500000e-01 : f32
    %74 = vector.broadcast %cst_49 : f32 to vector<5x128xf32>
    %75 = arith.mulf %73, %74 : vector<5x128xf32>
    %76 = vector.extract_strided_slice %56 {offsets = [0, 384], sizes = [5, 128], strides = [1, 1]} : vector<10x768xf32> to vector<5x128xf32>
    %77 = vector.extract_strided_slice %56 {offsets = [0, 640], sizes = [5, 128], strides = [1, 1]} : vector<10x768xf32> to vector<5x128xf32>
    %cst_50 = arith.constant dense<0.000000e+00> : vector<5x5xf32>
    %78 = tpu.matmul %75, %76, %cst_50 {dimension_numbers = #tpu.dot_dimension_numbers<[1], [1], [0], [0], [0, 0, 1, 0], [], []>} : vector<5x128xf32>, vector<5x128xf32>, vector<5x5xf32> -> vector<5x5xf32>
    %cst_51 = arith.constant dense<0xFF800000> : vector<5xf32>
    %79 = vector.multi_reduction <maximumf>, %78, %cst_51 [1] : vector<5x5xf32> to vector<5xf32>
    %80 = vector.shape_cast %79 : vector<5xf32> to vector<5x1xf32>
    %81 = vector.broadcast %80 : vector<5x1xf32> to vector<5x5xf32>
    %82 = arith.subf %78, %81 : vector<5x5xf32>
    %83 = math.exp %82 : vector<5x5xf32>
    %cst_52 = arith.constant dense<0.000000e+00> : vector<5xf32>
    %84 = vector.multi_reduction <add>, %83, %cst_52 [1] : vector<5x5xf32> to vector<5xf32>
    %85 = vector.shape_cast %84 : vector<5xf32> to vector<5x1xf32>
    %cst_53 = arith.constant dense<0.000000e+00> : vector<5x128xf32>
    %86 = tpu.matmul %83, %77, %cst_53 {dimension_numbers = #tpu.dot_dimension_numbers<[1], [0], [0], [1], [0, 0, 1, 1], [], []>} : vector<5x5xf32>, vector<5x128xf32>, vector<5x128xf32> -> vector<5x128xf32>
    %87 = vector.broadcast %85 : vector<5x1xf32> to vector<5x128xf32>
    %88 = arith.divf %86, %87 : vector<5x128xf32>
    %89 = tpu.concatenate %72, %88 in 1 : vector<5x128xf32>, vector<5x128xf32> -> vector<5x256xf32>
    %90 = vector.extract_strided_slice %56 {offsets = [5, 0], sizes = [5, 128], strides = [1, 1]} : vector<10x768xf32> to vector<5x128xf32>
    %cst_54 = arith.constant 2.500000e-01 : f32
    %91 = vector.broadcast %cst_54 : f32 to vector<5x128xf32>
    %92 = arith.mulf %90, %91 : vector<5x128xf32>
    %93 = vector.extract_strided_slice %56 {offsets = [5, 256], sizes = [5, 128], strides = [1, 1]} : vector<10x768xf32> to vector<5x128xf32>
    %94 = vector.extract_strided_slice %56 {offsets = [5, 512], sizes = [5, 128], strides = [1, 1]} : vector<10x768xf32> to vector<5x128xf32>
    %cst_55 = arith.constant dense<0.000000e+00> : vector<5x5xf32>
    %95 = tpu.matmul %92, %93, %cst_55 {dimension_numbers = #tpu.dot_dimension_numbers<[1], [1], [0], [0], [0, 0, 1, 0], [], []>} : vector<5x128xf32>, vector<5x128xf32>, vector<5x5xf32> -> vector<5x5xf32>
    %cst_56 = arith.constant dense<0xFF800000> : vector<5xf32>
    %96 = vector.multi_reduction <maximumf>, %95, %cst_56 [1] : vector<5x5xf32> to vector<5xf32>
    %97 = vector.shape_cast %96 : vector<5xf32> to vector<5x1xf32>
    %98 = vector.broadcast %97 : vector<5x1xf32> to vector<5x5xf32>
    %99 = arith.subf %95, %98 : vector<5x5xf32>
    %100 = math.exp %99 : vector<5x5xf32>
    %cst_57 = arith.constant dense<0.000000e+00> : vector<5xf32>
    %101 = vector.multi_reduction <add>, %100, %cst_57 [1] : vector<5x5xf32> to vector<5xf32>
    %102 = vector.shape_cast %101 : vector<5xf32> to vector<5x1xf32>
    %cst_58 = arith.constant dense<0.000000e+00> : vector<5x128xf32>
    %103 = tpu.matmul %100, %94, %cst_58 {dimension_numbers = #tpu.dot_dimension_numbers<[1], [0], [0], [1], [0, 0, 1, 1], [], []>} : vector<5x5xf32>, vector<5x128xf32>, vector<5x128xf32> -> vector<5x128xf32>
    %104 = vector.broadcast %102 : vector<5x1xf32> to vector<5x128xf32>
    %105 = arith.divf %103, %104 : vector<5x128xf32>
    %106 = vector.extract_strided_slice %56 {offsets = [5, 128], sizes = [5, 128], strides = [1, 1]} : vector<10x768xf32> to vector<5x128xf32>
    %cst_59 = arith.constant 2.500000e-01 : f32
    %107 = vector.broadcast %cst_59 : f32 to vector<5x128xf32>
    %108 = arith.mulf %106, %107 : vector<5x128xf32>
    %109 = vector.extract_strided_slice %56 {offsets = [5, 384], sizes = [5, 128], strides = [1, 1]} : vector<10x768xf32> to vector<5x128xf32>
    %110 = vector.extract_strided_slice %56 {offsets = [5, 640], sizes = [5, 128], strides = [1, 1]} : vector<10x768xf32> to vector<5x128xf32>
    %cst_60 = arith.constant dense<0.000000e+00> : vector<5x5xf32>
    %111 = tpu.matmul %108, %109, %cst_60 {dimension_numbers = #tpu.dot_dimension_numbers<[1], [1], [0], [0], [0, 0, 1, 0], [], []>} : vector<5x128xf32>, vector<5x128xf32>, vector<5x5xf32> -> vector<5x5xf32>
    %cst_61 = arith.constant dense<0xFF800000> : vector<5xf32>
    %112 = vector.multi_reduction <maximumf>, %111, %cst_61 [1] : vector<5x5xf32> to vector<5xf32>
    %113 = vector.shape_cast %112 : vector<5xf32> to vector<5x1xf32>
    %114 = vector.broadcast %113 : vector<5x1xf32> to vector<5x5xf32>
    %115 = arith.subf %111, %114 : vector<5x5xf32>
    %116 = math.exp %115 : vector<5x5xf32>
    %cst_62 = arith.constant dense<0.000000e+00> : vector<5xf32>
    %117 = vector.multi_reduction <add>, %116, %cst_62 [1] : vector<5x5xf32> to vector<5xf32>
    %118 = vector.shape_cast %117 : vector<5xf32> to vector<5x1xf32>
    %cst_63 = arith.constant dense<0.000000e+00> : vector<5x128xf32>
    %119 = tpu.matmul %116, %110, %cst_63 {dimension_numbers = #tpu.dot_dimension_numbers<[1], [0], [0], [1], [0, 0, 1, 1], [], []>} : vector<5x5xf32>, vector<5x128xf32>, vector<5x128xf32> -> vector<5x128xf32>
    %120 = vector.broadcast %118 : vector<5x1xf32> to vector<5x128xf32>
    %121 = arith.divf %119, %120 : vector<5x128xf32>
    %122 = tpu.concatenate %105, %121 in 1 : vector<5x128xf32>, vector<5x128xf32> -> vector<5x256xf32>
    %123 = tpu.concatenate %89, %122 in 0 : vector<5x256xf32>, vector<5x256xf32> -> vector<10x256xf32>
    %124 = arith.truncf %123 : vector<10x256xf32> to vector<10x256xbf16>
    %cst_64 = arith.constant dense<0.000000e+00> : vector<10x128xf32>
    %125 = tpu.matmul %124, %12, %cst_64 {dimension_numbers = #tpu.dot_dimension_numbers<[1], [0], [0], [1], [0, 0, 1, 1], [], []>} : vector<10x256xbf16>, vector<256x128xbf16>, vector<10x128xf32> -> vector<10x128xf32>
    %126 = arith.addf %27, %125 : vector<10x128xf32>
    %127 = vector.broadcast %14 : vector<1x128xf32> to vector<10x128xf32>
    %128 = arith.addf %126, %127 : vector<10x128xf32>
    %129 = tpu.iota {dimensions = array<i32: 1>} : vector<10x128xi32>
    %c32_i32_65 = arith.constant 32 : i32
    %130 = vector.broadcast %c32_i32_65 : i32 to vector<10x128xi32>
    %131 = arith.cmpi slt, %129, %130 : vector<10x128xi32>
    %cst_66 = arith.constant dense<0.000000e+00> : vector<10xf32>
    %132 = vector.multi_reduction <add>, %128, %cst_66 [1] : vector<10x128xf32> to vector<10xf32>
    %133 = vector.shape_cast %132 : vector<10xf32> to vector<10x1xf32>
    %cst_67 = arith.constant 3.125000e-02 : f32
    %134 = vector.broadcast %cst_67 : f32 to vector<10x1xf32>
    %135 = arith.mulf %133, %134 : vector<10x1xf32>
    %136 = vector.broadcast %135 : vector<10x1xf32> to vector<10x128xf32>
    %137 = arith.subf %128, %136 : vector<10x128xf32>
    %cst_68 = arith.constant 0.000000e+00 : f32
    %138 = vector.broadcast %cst_68 : f32 to vector<10x128xf32>
    %139 = arith.select %131, %137, %138 : vector<10x128xi1>, vector<10x128xf32>
    %140 = arith.mulf %139, %139 : vector<10x128xf32>
    %cst_69 = arith.constant dense<0.000000e+00> : vector<10xf32>
    %141 = vector.multi_reduction <add>, %140, %cst_69 [1] : vector<10x128xf32> to vector<10xf32>
    %142 = vector.shape_cast %141 : vector<10xf32> to vector<10x1xf32>
    %cst_70 = arith.constant 3.125000e-02 : f32
    %143 = vector.broadcast %cst_70 : f32 to vector<10x1xf32>
    %144 = arith.mulf %142, %143 : vector<10x1xf32>
    %cst_71 = arith.constant 9.99999974E-6 : f32
    %145 = vector.broadcast %cst_71 : f32 to vector<10x1xf32>
    %146 = arith.addf %144, %145 : vector<10x1xf32>
    %147 = math.rsqrt %146 : vector<10x1xf32>
    %148 = vector.broadcast %147 : vector<10x1xf32> to vector<10x128xf32>
    %149 = arith.mulf %139, %148 : vector<10x128xf32>
    %150 = vector.broadcast %16 : vector<1x128xf32> to vector<10x128xf32>
    %151 = arith.mulf %149, %150 : vector<10x128xf32>
    %152 = vector.broadcast %18 : vector<1x128xf32> to vector<10x128xf32>
    %153 = arith.addf %151, %152 : vector<10x128xf32>
    %154 = arith.truncf %153 : vector<10x128xf32> to vector<10x128xbf16>
    %cst_72 = arith.constant dense<0.000000e+00> : vector<10x128xf32>
    %155 = tpu.matmul %154, %20, %cst_72 {dimension_numbers = #tpu.dot_dimension_numbers<[1], [0], [0], [1], [0, 0, 1, 1], [], []>} : vector<10x128xbf16>, vector<128x128xbf16>, vector<10x128xf32> -> vector<10x128xf32>
    %156 = vector.broadcast %22 : vector<1x128xf32> to vector<10x128xf32>
    %157 = arith.addf %155, %156 : vector<10x128xf32>
    %cst_73 = arith.constant 5.000000e-01 : f32
    %158 = vector.broadcast %cst_73 : f32 to vector<10x128xf32>
    %159 = arith.mulf %158, %157 : vector<10x128xf32>
    %cst_74 = arith.constant 4.471500e-02 : f32
    %160 = vector.broadcast %cst_74 : f32 to vector<10x128xf32>
    %161 = arith.mulf %160, %157 : vector<10x128xf32>
    %162 = arith.mulf %161, %157 : vector<10x128xf32>
    %163 = arith.mulf %162, %157 : vector<10x128xf32>
    %164 = arith.addf %157, %163 : vector<10x128xf32>
    %cst_75 = arith.constant 0.797884583 : f32
    %165 = vector.broadcast %cst_75 : f32 to vector<10x128xf32>
    %166 = arith.mulf %165, %164 : vector<10x128xf32>
    %167 = math.tanh %166 : vector<10x128xf32>
    %cst_76 = arith.constant 1.000000e+00 : f32
    %168 = vector.broadcast %cst_76 : f32 to vector<10x128xf32>
    %169 = arith.addf %168, %167 : vector<10x128xf32>
    %170 = arith.mulf %159, %169 : vector<10x128xf32>
    %171 = arith.truncf %170 : vector<10x128xf32> to vector<10x128xbf16>
    %cst_77 = arith.constant dense<0.000000e+00> : vector<10x128xf32>
    %172 = tpu.matmul %171, %24, %cst_77 {dimension_numbers = #tpu.dot_dimension_numbers<[1], [0], [0], [1], [0, 0, 1, 1], [], []>} : vector<10x128xbf16>, vector<128x128xbf16>, vector<10x128xf32> -> vector<10x128xf32>
    %173 = arith.addf %128, %172 : vector<10x128xf32>
    %174 = vector.broadcast %26 : vector<1x128xf32> to vector<10x128xf32>
    %175 = arith.addf %173, %174 : vector<10x128xf32>
    %c0_78 = arith.constant 0 : index
    %c0_79 = arith.constant 0 : index
    %176 = vector.load %arg17[%c0_78, %c0_79] : memref<10x128xf32, #tpu.memory_space<vmem>>, vector<10x128xf32>
    tpu.vector_store %arg17[%c0_78, %c0_79], %175 {strides = array<i32>} : memref<10x128xf32, #tpu.memory_space<vmem>>, vector<10x128xf32>,
    %c1_i32 = arith.constant 1 : i32
    %177 = arith.cmpi eq, %arg0, %c1_i32 : i32
    %178 = arith.extui %177 : i1 to i32
    %c0_i32_80 = arith.constant 0 : i32
    %179 = arith.cmpi ne, %178, %c0_i32_80 : i32
    scf.if %179 {
      %c0_81 = arith.constant 0 : index
      %c0_82 = arith.constant 0 : index
      %180 = vector.load %arg14[%c0_81, %c0_82] : memref<1x128xf32, #tpu.memory_space<vmem>>, vector<1x128xf32>
      %c0_83 = arith.constant 0 : index
      %c0_84 = arith.constant 0 : index
      %181 = vector.load %arg15[%c0_83, %c0_84] : memref<1x128xf32, #tpu.memory_space<vmem>>, vector<1x128xf32>
      %182 = tpu.iota {dimensions = array<i32: 1>} : vector<10x128xi32>
      %c32_i32_85 = arith.constant 32 : i32
      %183 = vector.broadcast %c32_i32_85 : i32 to vector<10x128xi32>
      %184 = arith.cmpi slt, %182, %183 : vector<10x128xi32>
      %cst_86 = arith.constant dense<0.000000e+00> : vector<10xf32>
      %185 = vector.multi_reduction <add>, %175, %cst_86 [1] : vector<10x128xf32> to vector<10xf32>
      %186 = vector.shape_cast %185 : vector<10xf32> to vector<10x1xf32>
      %cst_87 = arith.constant 3.125000e-02 : f32
      %187 = vector.broadcast %cst_87 : f32 to vector<10x1xf32>
      %188 = arith.mulf %186, %187 : vector<10x1xf32>
      %189 = vector.broadcast %188 : vector<10x1xf32> to vector<10x128xf32>
      %190 = arith.subf %175, %189 : vector<10x128xf32>
      %cst_88 = arith.constant 0.000000e+00 : f32
      %191 = vector.broadcast %cst_88 : f32 to vector<10x128xf32>
      %192 = arith.select %184, %190, %191 : vector<10x128xi1>, vector<10x128xf32>
      %193 = arith.mulf %192, %192 : vector<10x128xf32>
      %cst_89 = arith.constant dense<0.000000e+00> : vector<10xf32>
      %194 = vector.multi_reduction <add>, %193, %cst_89 [1] : vector<10x128xf32> to vector<10xf32>
      %195 = vector.shape_cast %194 : vector<10xf32> to vector<10x1xf32>
      %cst_90 = arith.constant 3.125000e-02 : f32
      %196 = vector.broadcast %cst_90 : f32 to vector<10x1xf32>
      %197 = arith.mulf %195, %196 : vector<10x1xf32>
      %cst_91 = arith.constant 9.99999974E-6 : f32
      %198 = vector.broadcast %cst_91 : f32 to vector<10x1xf32>
      %199 = arith.addf %197, %198 : vector<10x1xf32>
      %200 = math.rsqrt %199 : vector<10x1xf32>
      %201 = vector.broadcast %200 : vector<10x1xf32> to vector<10x128xf32>
      %202 = arith.mulf %192, %201 : vector<10x128xf32>
      %203 = vector.broadcast %180 : vector<1x128xf32> to vector<10x128xf32>
      %204 = arith.mulf %202, %203 : vector<10x128xf32>
      %205 = vector.broadcast %181 : vector<1x128xf32> to vector<10x128xf32>
      %206 = arith.addf %204, %205 : vector<10x128xf32>
      %c0_92 = arith.constant 0 : index
      %c0_93 = arith.constant 0 : index
      %207 = vector.load %arg16[%c0_92, %c0_93] : memref<10x128xf32, #tpu.memory_space<vmem>>, vector<10x128xf32>
      tpu.vector_store %arg16[%c0_92, %c0_93], %206 {strides = array<i32>} : memref<10x128xf32, #tpu.memory_space<vmem>>, vector<10x128xf32>,
    } else {
    }
    return
  }
  func.func @transform_0(%arg0: i32) -> (i32, i32) {
    %c0_i32 = arith.constant 0 : i32
    %c0_i32_0 = arith.constant 0 : i32
    %c0_i32_1 = arith.constant 0 : i32
    return %c0_i32, %c0_i32_0 : i32, i32
  }
  func.func @transform_1(%arg0: i32) -> (i32, i32, i32) {
    %c0_i32 = arith.constant 0 : i32
    %c0_i32_0 = arith.constant 0 : i32
    %c0_i32_1 = arith.constant 0 : i32
    return %arg0, %c0_i32, %c0_i32_0 : i32, i32, i32
  }
  func.func @transform_2(%arg0: i32) -> (i32, i32, i32) {
    %c0_i32 = arith.constant 0 : i32
    %c0_i32_0 = arith.constant 0 : i32
    %c0_i32_1 = arith.constant 0 : i32
    return %arg0, %c0_i32, %c0_i32_0 : i32, i32, i32
  }
  func.func @transform_3(%arg0: i32) -> (i32, i32, i32) {
    %c0_i32 = arith.constant 0 : i32
    %c0_i32_0 = arith.constant 0 : i32
    %c0_i32_1 = arith.constant 0 : i32
    return %arg0, %c0_i32, %c0_i32_0 : i32, i32, i32
  }
  func.func @transform_4(%arg0: i32) -> (i32, i32, i32) {
    %c0_i32 = arith.constant 0 : i32
    %c0_i32_0 = arith.constant 0 : i32
    %c0_i32_1 = arith.constant 0 : i32
    return %arg0, %c0_i32, %c0_i32_0 : i32, i32, i32
  }
  func.func @transform_5(%arg0: i32) -> (i32, i32, i32) {
    %c0_i32 = arith.constant 0 : i32
    %c0_i32_0 = arith.constant 0 : i32
    %c0_i32_1 = arith.constant 0 : i32
    return %arg0, %c0_i32, %c0_i32_0 : i32, i32, i32
  }
  func.func @transform_6(%arg0: i32) -> (i32, i32, i32) {
    %c0_i32 = arith.constant 0 : i32
    %c0_i32_0 = arith.constant 0 : i32
    %c0_i32_1 = arith.constant 0 : i32
    return %arg0, %c0_i32, %c0_i32_0 : i32, i32, i32
  }
  func.func @transform_7(%arg0: i32) -> (i32, i32, i32) {
    %c0_i32 = arith.constant 0 : i32
    %c0_i32_0 = arith.constant 0 : i32
    %c0_i32_1 = arith.constant 0 : i32
    return %arg0, %c0_i32, %c0_i32_0 : i32, i32, i32
  }
  func.func @transform_8(%arg0: i32) -> (i32, i32, i32) {
    %c0_i32 = arith.constant 0 : i32
    %c0_i32_0 = arith.constant 0 : i32
    %c0_i32_1 = arith.constant 0 : i32
    return %arg0, %c0_i32, %c0_i32_0 : i32, i32, i32
  }
  func.func @transform_9(%arg0: i32) -> (i32, i32, i32) {
    %c0_i32 = arith.constant 0 : i32
    %c0_i32_0 = arith.constant 0 : i32
    %c0_i32_1 = arith.constant 0 : i32
    return %arg0, %c0_i32, %c0_i32_0 : i32, i32, i32
  }
  func.func @transform_10(%arg0: i32) -> (i32, i32, i32) {
    %c0_i32 = arith.constant 0 : i32
    %c0_i32_0 = arith.constant 0 : i32
    %c0_i32_1 = arith.constant 0 : i32
    return %arg0, %c0_i32, %c0_i32_0 : i32, i32, i32
  }
  func.func @transform_11(%arg0: i32) -> (i32, i32, i32) {
    %c0_i32 = arith.constant 0 : i32
    %c0_i32_0 = arith.constant 0 : i32
    %c0_i32_1 = arith.constant 0 : i32
    return %arg0, %c0_i32, %c0_i32_0 : i32, i32, i32
  }
  func.func @transform_12(%arg0: i32) -> (i32, i32, i32) {
    %c0_i32 = arith.constant 0 : i32
    %c0_i32_0 = arith.constant 0 : i32
    %c0_i32_1 = arith.constant 0 : i32
    return %arg0, %c0_i32, %c0_i32_0 : i32, i32, i32
  }
  func.func @transform_13(%arg0: i32) -> (i32, i32) {
    %c0_i32 = arith.constant 0 : i32
    %c0_i32_0 = arith.constant 0 : i32
    %c0_i32_1 = arith.constant 0 : i32
    return %c0_i32, %c0_i32_0 : i32, i32
  }
  func.func @transform_14(%arg0: i32) -> (i32, i32) {
    %c0_i32 = arith.constant 0 : i32
    %c0_i32_0 = arith.constant 0 : i32
    %c0_i32_1 = arith.constant 0 : i32
    return %c0_i32, %c0_i32_0 : i32, i32
  }
  func.func @transform_15(%arg0: i32) -> (i32, i32) {
    %c0_i32 = arith.constant 0 : i32
    %c0_i32_0 = arith.constant 0 : i32
    %c0_i32_1 = arith.constant 0 : i32
    return %c0_i32, %c0_i32_0 : i32, i32
  }
}

module attributes {stable_mosaic.version = 11 : i64} {
  func.func @_decoder_stack_kernel(%arg0: i32, %arg1: memref<34x128xf32, #tpu.memory_space<vmem>>, %arg2: memref<17x128xf32, #tpu.memory_space<vmem>>, %arg3: memref<1x1x128xf32, #tpu.memory_space<vmem>>, %arg4: memref<1x1x128xf32, #tpu.memory_space<vmem>>, %arg5: memref<1x128x768xbf16, #tpu.memory_space<vmem>>, %arg6: memref<1x1x768xf32, #tpu.memory_space<vmem>>, %arg7: memref<1x256x128xbf16, #tpu.memory_space<vmem>>, %arg8: memref<1x1x128xf32, #tpu.memory_space<vmem>>, %arg9: memref<1x1x128xf32, #tpu.memory_space<vmem>>, %arg10: memref<1x1x128xf32, #tpu.memory_space<vmem>>, %arg11: memref<1x128x128xbf16, #tpu.memory_space<vmem>>, %arg12: memref<1x1x128xf32, #tpu.memory_space<vmem>>, %arg13: memref<1x128x128xbf16, #tpu.memory_space<vmem>>, %arg14: memref<1x1x128xf32, #tpu.memory_space<vmem>>, %arg15: memref<128x128xbf16, #tpu.memory_space<vmem>>, %arg16: memref<1x128xf32, #tpu.memory_space<vmem>>, %arg17: memref<34x128xf32, #tpu.memory_space<vmem>>, %arg18: memref<34x128xf32, #tpu.memory_space<vmem>>) attributes {dimension_semantics = [#tpu.dimension_semantics<arbitrary>], iteration_bounds = array<i64: 2>, scalar_prefetch = 0 : i64, scratch_operands = 1 : i64, tpu.core_type = #tpu.core_type<tc>, window_params = [{pipeline_mode = #tpu.pipeline_mode<synchronous>, transform_indices = @transform_0, window_bounds = array<i64: 34, 128>}, {pipeline_mode = #tpu.pipeline_mode<synchronous>, transform_indices = @transform_1, window_bounds = array<i64: 17, 128>}, {transform_indices = @transform_2, window_bounds = array<i64: 1, 1, 128>}, {transform_indices = @transform_3, window_bounds = array<i64: 1, 1, 128>}, {transform_indices = @transform_4, window_bounds = array<i64: 1, 128, 768>}, {transform_indices = @transform_5, window_bounds = array<i64: 1, 1, 768>}, {transform_indices = @transform_6, window_bounds = array<i64: 1, 256, 128>}, {transform_indices = @transform_7, window_bounds = array<i64: 1, 1, 128>}, {transform_indices = @transform_8, window_bounds = array<i64: 1, 1, 128>}, {transform_indices = @transform_9, window_bounds = array<i64: 1, 1, 128>}, {transform_indices = @transform_10, window_bounds = array<i64: 1, 128, 128>}, {transform_indices = @transform_11, window_bounds = array<i64: 1, 1, 128>}, {transform_indices = @transform_12, window_bounds = array<i64: 1, 128, 128>}, {transform_indices = @transform_13, window_bounds = array<i64: 1, 1, 128>}, {pipeline_mode = #tpu.pipeline_mode<synchronous>, transform_indices = @transform_14, window_bounds = array<i64: 128, 128>}, {pipeline_mode = #tpu.pipeline_mode<synchronous>, transform_indices = @transform_15, window_bounds = array<i64: 1, 128>}, {pipeline_mode = #tpu.pipeline_mode<synchronous>, transform_indices = @transform_16, window_bounds = array<i64: 34, 128>}]} {
    %c0_i32 = arith.constant 0 : i32
    %0 = arith.cmpi eq, %arg0, %c0_i32 : i32
    %1 = arith.extui %0 : i1 to i32
    %c0_i32_0 = arith.constant 0 : i32
    %2 = arith.cmpi ne, %1, %c0_i32_0 : i32
    scf.if %2 {
      %c0_81 = arith.constant 0 : index
      %c0_82 = arith.constant 0 : index
      %180 = vector.load %arg2[%c0_81, %c0_82] : memref<17x128xf32, #tpu.memory_space<vmem>>, vector<17x128xf32>
      %c0_83 = arith.constant 0 : index
      %c0_84 = arith.constant 0 : index
      %181 = vector.load %arg1[%c0_83, %c0_84] : memref<34x128xf32, #tpu.memory_space<vmem>>, vector<34x128xf32>
      %182 = tpu.concatenate %180, %180 in 0 : vector<17x128xf32>, vector<17x128xf32> -> vector<34x128xf32>
      %183 = arith.addf %181, %182 : vector<34x128xf32>
      %c0_85 = arith.constant 0 : index
      %c0_86 = arith.constant 0 : index
      %184 = vector.load %arg18[%c0_85, %c0_86] : memref<34x128xf32, #tpu.memory_space<vmem>>, vector<34x128xf32>
      tpu.vector_store %arg18[%c0_85, %c0_86], %183 {strides = array<i32>} : memref<34x128xf32, #tpu.memory_space<vmem>>, vector<34x128xf32>,
    } else {
    }
    %c0 = arith.constant 0 : index
    %c0_1 = arith.constant 0 : index
    %c0_2 = arith.constant 0 : index
    %3 = vector.load %arg3[%c0, %c0_1, %c0_2] : memref<1x1x128xf32, #tpu.memory_space<vmem>>, vector<1x1x128xf32>
    %4 = vector.shape_cast %3 : vector<1x1x128xf32> to vector<1x128xf32>
    %c0_3 = arith.constant 0 : index
    %c0_4 = arith.constant 0 : index
    %c0_5 = arith.constant 0 : index
    %5 = vector.load %arg4[%c0_3, %c0_4, %c0_5] : memref<1x1x128xf32, #tpu.memory_space<vmem>>, vector<1x1x128xf32>
    %6 = vector.shape_cast %5 : vector<1x1x128xf32> to vector<1x128xf32>
    %c0_6 = arith.constant 0 : index
    %c0_7 = arith.constant 0 : index
    %c0_8 = arith.constant 0 : index
    %7 = vector.load %arg5[%c0_6, %c0_7, %c0_8] : memref<1x128x768xbf16, #tpu.memory_space<vmem>>, vector<1x128x768xbf16>
    %8 = vector.shape_cast %7 : vector<1x128x768xbf16> to vector<128x768xbf16>
    %c0_9 = arith.constant 0 : index
    %c0_10 = arith.constant 0 : index
    %c0_11 = arith.constant 0 : index
    %9 = vector.load %arg6[%c0_9, %c0_10, %c0_11] : memref<1x1x768xf32, #tpu.memory_space<vmem>>, vector<1x1x768xf32>
    %10 = vector.shape_cast %9 : vector<1x1x768xf32> to vector<1x768xf32>
    %c0_12 = arith.constant 0 : index
    %c0_13 = arith.constant 0 : index
    %c0_14 = arith.constant 0 : index
    %11 = vector.load %arg7[%c0_12, %c0_13, %c0_14] : memref<1x256x128xbf16, #tpu.memory_space<vmem>>, vector<1x256x128xbf16>
    %12 = vector.shape_cast %11 : vector<1x256x128xbf16> to vector<256x128xbf16>
    %c0_15 = arith.constant 0 : index
    %c0_16 = arith.constant 0 : index
    %c0_17 = arith.constant 0 : index
    %13 = vector.load %arg8[%c0_15, %c0_16, %c0_17] : memref<1x1x128xf32, #tpu.memory_space<vmem>>, vector<1x1x128xf32>
    %14 = vector.shape_cast %13 : vector<1x1x128xf32> to vector<1x128xf32>
    %c0_18 = arith.constant 0 : index
    %c0_19 = arith.constant 0 : index
    %c0_20 = arith.constant 0 : index
    %15 = vector.load %arg9[%c0_18, %c0_19, %c0_20] : memref<1x1x128xf32, #tpu.memory_space<vmem>>, vector<1x1x128xf32>
    %16 = vector.shape_cast %15 : vector<1x1x128xf32> to vector<1x128xf32>
    %c0_21 = arith.constant 0 : index
    %c0_22 = arith.constant 0 : index
    %c0_23 = arith.constant 0 : index
    %17 = vector.load %arg10[%c0_21, %c0_22, %c0_23] : memref<1x1x128xf32, #tpu.memory_space<vmem>>, vector<1x1x128xf32>
    %18 = vector.shape_cast %17 : vector<1x1x128xf32> to vector<1x128xf32>
    %c0_24 = arith.constant 0 : index
    %c0_25 = arith.constant 0 : index
    %c0_26 = arith.constant 0 : index
    %19 = vector.load %arg11[%c0_24, %c0_25, %c0_26] : memref<1x128x128xbf16, #tpu.memory_space<vmem>>, vector<1x128x128xbf16>
    %20 = vector.shape_cast %19 : vector<1x128x128xbf16> to vector<128x128xbf16>
    %c0_27 = arith.constant 0 : index
    %c0_28 = arith.constant 0 : index
    %c0_29 = arith.constant 0 : index
    %21 = vector.load %arg12[%c0_27, %c0_28, %c0_29] : memref<1x1x128xf32, #tpu.memory_space<vmem>>, vector<1x1x128xf32>
    %22 = vector.shape_cast %21 : vector<1x1x128xf32> to vector<1x128xf32>
    %c0_30 = arith.constant 0 : index
    %c0_31 = arith.constant 0 : index
    %c0_32 = arith.constant 0 : index
    %23 = vector.load %arg13[%c0_30, %c0_31, %c0_32] : memref<1x128x128xbf16, #tpu.memory_space<vmem>>, vector<1x128x128xbf16>
    %24 = vector.shape_cast %23 : vector<1x128x128xbf16> to vector<128x128xbf16>
    %c0_33 = arith.constant 0 : index
    %c0_34 = arith.constant 0 : index
    %c0_35 = arith.constant 0 : index
    %25 = vector.load %arg14[%c0_33, %c0_34, %c0_35] : memref<1x1x128xf32, #tpu.memory_space<vmem>>, vector<1x1x128xf32>
    %26 = vector.shape_cast %25 : vector<1x1x128xf32> to vector<1x128xf32>
    %c0_36 = arith.constant 0 : index
    %c0_37 = arith.constant 0 : index
    %27 = vector.load %arg18[%c0_36, %c0_37] : memref<34x128xf32, #tpu.memory_space<vmem>>, vector<34x128xf32>
    %28 = tpu.iota {dimensions = array<i32: 1>} : vector<34x128xi32>
    %c32_i32 = arith.constant 32 : i32
    %29 = vector.broadcast %c32_i32 : i32 to vector<34x128xi32>
    %30 = arith.cmpi slt, %28, %29 : vector<34x128xi32>
    %cst = arith.constant dense<0.000000e+00> : vector<34xf32>
    %31 = vector.multi_reduction <add>, %27, %cst [1] : vector<34x128xf32> to vector<34xf32>
    %32 = vector.shape_cast %31 : vector<34xf32> to vector<34x1xf32>
    %cst_38 = arith.constant 3.125000e-02 : f32
    %33 = vector.broadcast %cst_38 : f32 to vector<34x1xf32>
    %34 = arith.mulf %32, %33 : vector<34x1xf32>
    %35 = vector.broadcast %34 : vector<34x1xf32> to vector<34x128xf32>
    %36 = arith.subf %27, %35 : vector<34x128xf32>
    %cst_39 = arith.constant 0.000000e+00 : f32
    %37 = vector.broadcast %cst_39 : f32 to vector<34x128xf32>
    %38 = arith.select %30, %36, %37 : vector<34x128xi1>, vector<34x128xf32>
    %39 = arith.mulf %38, %38 : vector<34x128xf32>
    %cst_40 = arith.constant dense<0.000000e+00> : vector<34xf32>
    %40 = vector.multi_reduction <add>, %39, %cst_40 [1] : vector<34x128xf32> to vector<34xf32>
    %41 = vector.shape_cast %40 : vector<34xf32> to vector<34x1xf32>
    %cst_41 = arith.constant 3.125000e-02 : f32
    %42 = vector.broadcast %cst_41 : f32 to vector<34x1xf32>
    %43 = arith.mulf %41, %42 : vector<34x1xf32>
    %cst_42 = arith.constant 9.99999974E-6 : f32
    %44 = vector.broadcast %cst_42 : f32 to vector<34x1xf32>
    %45 = arith.addf %43, %44 : vector<34x1xf32>
    %46 = math.rsqrt %45 : vector<34x1xf32>
    %47 = vector.broadcast %46 : vector<34x1xf32> to vector<34x128xf32>
    %48 = arith.mulf %38, %47 : vector<34x128xf32>
    %49 = vector.broadcast %4 : vector<1x128xf32> to vector<34x128xf32>
    %50 = arith.mulf %48, %49 : vector<34x128xf32>
    %51 = vector.broadcast %6 : vector<1x128xf32> to vector<34x128xf32>
    %52 = arith.addf %50, %51 : vector<34x128xf32>
    %53 = arith.truncf %52 : vector<34x128xf32> to vector<34x128xbf16>
    %cst_43 = arith.constant dense<0.000000e+00> : vector<34x768xf32>
    %54 = tpu.matmul %53, %8, %cst_43 {dimension_numbers = #tpu.dot_dimension_numbers<[1], [0], [0], [1], [0, 0, 1, 1], [], []>} : vector<34x128xbf16>, vector<128x768xbf16>, vector<34x768xf32> -> vector<34x768xf32>
    %55 = vector.broadcast %10 : vector<1x768xf32> to vector<34x768xf32>
    %56 = arith.addf %54, %55 : vector<34x768xf32>
    %57 = vector.extract_strided_slice %56 {offsets = [0, 0], sizes = [17, 128], strides = [1, 1]} : vector<34x768xf32> to vector<17x128xf32>
    %cst_44 = arith.constant 2.500000e-01 : f32
    %58 = vector.broadcast %cst_44 : f32 to vector<17x128xf32>
    %59 = arith.mulf %57, %58 : vector<17x128xf32>
    %60 = vector.extract_strided_slice %56 {offsets = [0, 256], sizes = [17, 128], strides = [1, 1]} : vector<34x768xf32> to vector<17x128xf32>
    %61 = vector.extract_strided_slice %56 {offsets = [0, 512], sizes = [17, 128], strides = [1, 1]} : vector<34x768xf32> to vector<17x128xf32>
    %cst_45 = arith.constant dense<0.000000e+00> : vector<17x17xf32>
    %62 = tpu.matmul %59, %60, %cst_45 {dimension_numbers = #tpu.dot_dimension_numbers<[1], [1], [0], [0], [0, 0, 1, 0], [], []>} : vector<17x128xf32>, vector<17x128xf32>, vector<17x17xf32> -> vector<17x17xf32>
    %cst_46 = arith.constant dense<0xFF800000> : vector<17xf32>
    %63 = vector.multi_reduction <maximumf>, %62, %cst_46 [1] : vector<17x17xf32> to vector<17xf32>
    %64 = vector.shape_cast %63 : vector<17xf32> to vector<17x1xf32>
    %65 = vector.broadcast %64 : vector<17x1xf32> to vector<17x17xf32>
    %66 = arith.subf %62, %65 : vector<17x17xf32>
    %67 = math.exp %66 : vector<17x17xf32>
    %cst_47 = arith.constant dense<0.000000e+00> : vector<17xf32>
    %68 = vector.multi_reduction <add>, %67, %cst_47 [1] : vector<17x17xf32> to vector<17xf32>
    %69 = vector.shape_cast %68 : vector<17xf32> to vector<17x1xf32>
    %cst_48 = arith.constant dense<0.000000e+00> : vector<17x128xf32>
    %70 = tpu.matmul %67, %61, %cst_48 {dimension_numbers = #tpu.dot_dimension_numbers<[1], [0], [0], [1], [0, 0, 1, 1], [], []>} : vector<17x17xf32>, vector<17x128xf32>, vector<17x128xf32> -> vector<17x128xf32>
    %71 = vector.broadcast %69 : vector<17x1xf32> to vector<17x128xf32>
    %72 = arith.divf %70, %71 : vector<17x128xf32>
    %73 = vector.extract_strided_slice %56 {offsets = [0, 128], sizes = [17, 128], strides = [1, 1]} : vector<34x768xf32> to vector<17x128xf32>
    %cst_49 = arith.constant 2.500000e-01 : f32
    %74 = vector.broadcast %cst_49 : f32 to vector<17x128xf32>
    %75 = arith.mulf %73, %74 : vector<17x128xf32>
    %76 = vector.extract_strided_slice %56 {offsets = [0, 384], sizes = [17, 128], strides = [1, 1]} : vector<34x768xf32> to vector<17x128xf32>
    %77 = vector.extract_strided_slice %56 {offsets = [0, 640], sizes = [17, 128], strides = [1, 1]} : vector<34x768xf32> to vector<17x128xf32>
    %cst_50 = arith.constant dense<0.000000e+00> : vector<17x17xf32>
    %78 = tpu.matmul %75, %76, %cst_50 {dimension_numbers = #tpu.dot_dimension_numbers<[1], [1], [0], [0], [0, 0, 1, 0], [], []>} : vector<17x128xf32>, vector<17x128xf32>, vector<17x17xf32> -> vector<17x17xf32>
    %cst_51 = arith.constant dense<0xFF800000> : vector<17xf32>
    %79 = vector.multi_reduction <maximumf>, %78, %cst_51 [1] : vector<17x17xf32> to vector<17xf32>
    %80 = vector.shape_cast %79 : vector<17xf32> to vector<17x1xf32>
    %81 = vector.broadcast %80 : vector<17x1xf32> to vector<17x17xf32>
    %82 = arith.subf %78, %81 : vector<17x17xf32>
    %83 = math.exp %82 : vector<17x17xf32>
    %cst_52 = arith.constant dense<0.000000e+00> : vector<17xf32>
    %84 = vector.multi_reduction <add>, %83, %cst_52 [1] : vector<17x17xf32> to vector<17xf32>
    %85 = vector.shape_cast %84 : vector<17xf32> to vector<17x1xf32>
    %cst_53 = arith.constant dense<0.000000e+00> : vector<17x128xf32>
    %86 = tpu.matmul %83, %77, %cst_53 {dimension_numbers = #tpu.dot_dimension_numbers<[1], [0], [0], [1], [0, 0, 1, 1], [], []>} : vector<17x17xf32>, vector<17x128xf32>, vector<17x128xf32> -> vector<17x128xf32>
    %87 = vector.broadcast %85 : vector<17x1xf32> to vector<17x128xf32>
    %88 = arith.divf %86, %87 : vector<17x128xf32>
    %89 = tpu.concatenate %72, %88 in 1 : vector<17x128xf32>, vector<17x128xf32> -> vector<17x256xf32>
    %90 = vector.extract_strided_slice %56 {offsets = [17, 0], sizes = [17, 128], strides = [1, 1]} : vector<34x768xf32> to vector<17x128xf32>
    %cst_54 = arith.constant 2.500000e-01 : f32
    %91 = vector.broadcast %cst_54 : f32 to vector<17x128xf32>
    %92 = arith.mulf %90, %91 : vector<17x128xf32>
    %93 = vector.extract_strided_slice %56 {offsets = [17, 256], sizes = [17, 128], strides = [1, 1]} : vector<34x768xf32> to vector<17x128xf32>
    %94 = vector.extract_strided_slice %56 {offsets = [17, 512], sizes = [17, 128], strides = [1, 1]} : vector<34x768xf32> to vector<17x128xf32>
    %cst_55 = arith.constant dense<0.000000e+00> : vector<17x17xf32>
    %95 = tpu.matmul %92, %93, %cst_55 {dimension_numbers = #tpu.dot_dimension_numbers<[1], [1], [0], [0], [0, 0, 1, 0], [], []>} : vector<17x128xf32>, vector<17x128xf32>, vector<17x17xf32> -> vector<17x17xf32>
    %cst_56 = arith.constant dense<0xFF800000> : vector<17xf32>
    %96 = vector.multi_reduction <maximumf>, %95, %cst_56 [1] : vector<17x17xf32> to vector<17xf32>
    %97 = vector.shape_cast %96 : vector<17xf32> to vector<17x1xf32>
    %98 = vector.broadcast %97 : vector<17x1xf32> to vector<17x17xf32>
    %99 = arith.subf %95, %98 : vector<17x17xf32>
    %100 = math.exp %99 : vector<17x17xf32>
    %cst_57 = arith.constant dense<0.000000e+00> : vector<17xf32>
    %101 = vector.multi_reduction <add>, %100, %cst_57 [1] : vector<17x17xf32> to vector<17xf32>
    %102 = vector.shape_cast %101 : vector<17xf32> to vector<17x1xf32>
    %cst_58 = arith.constant dense<0.000000e+00> : vector<17x128xf32>
    %103 = tpu.matmul %100, %94, %cst_58 {dimension_numbers = #tpu.dot_dimension_numbers<[1], [0], [0], [1], [0, 0, 1, 1], [], []>} : vector<17x17xf32>, vector<17x128xf32>, vector<17x128xf32> -> vector<17x128xf32>
    %104 = vector.broadcast %102 : vector<17x1xf32> to vector<17x128xf32>
    %105 = arith.divf %103, %104 : vector<17x128xf32>
    %106 = vector.extract_strided_slice %56 {offsets = [17, 128], sizes = [17, 128], strides = [1, 1]} : vector<34x768xf32> to vector<17x128xf32>
    %cst_59 = arith.constant 2.500000e-01 : f32
    %107 = vector.broadcast %cst_59 : f32 to vector<17x128xf32>
    %108 = arith.mulf %106, %107 : vector<17x128xf32>
    %109 = vector.extract_strided_slice %56 {offsets = [17, 384], sizes = [17, 128], strides = [1, 1]} : vector<34x768xf32> to vector<17x128xf32>
    %110 = vector.extract_strided_slice %56 {offsets = [17, 640], sizes = [17, 128], strides = [1, 1]} : vector<34x768xf32> to vector<17x128xf32>
    %cst_60 = arith.constant dense<0.000000e+00> : vector<17x17xf32>
    %111 = tpu.matmul %108, %109, %cst_60 {dimension_numbers = #tpu.dot_dimension_numbers<[1], [1], [0], [0], [0, 0, 1, 0], [], []>} : vector<17x128xf32>, vector<17x128xf32>, vector<17x17xf32> -> vector<17x17xf32>
    %cst_61 = arith.constant dense<0xFF800000> : vector<17xf32>
    %112 = vector.multi_reduction <maximumf>, %111, %cst_61 [1] : vector<17x17xf32> to vector<17xf32>
    %113 = vector.shape_cast %112 : vector<17xf32> to vector<17x1xf32>
    %114 = vector.broadcast %113 : vector<17x1xf32> to vector<17x17xf32>
    %115 = arith.subf %111, %114 : vector<17x17xf32>
    %116 = math.exp %115 : vector<17x17xf32>
    %cst_62 = arith.constant dense<0.000000e+00> : vector<17xf32>
    %117 = vector.multi_reduction <add>, %116, %cst_62 [1] : vector<17x17xf32> to vector<17xf32>
    %118 = vector.shape_cast %117 : vector<17xf32> to vector<17x1xf32>
    %cst_63 = arith.constant dense<0.000000e+00> : vector<17x128xf32>
    %119 = tpu.matmul %116, %110, %cst_63 {dimension_numbers = #tpu.dot_dimension_numbers<[1], [0], [0], [1], [0, 0, 1, 1], [], []>} : vector<17x17xf32>, vector<17x128xf32>, vector<17x128xf32> -> vector<17x128xf32>
    %120 = vector.broadcast %118 : vector<17x1xf32> to vector<17x128xf32>
    %121 = arith.divf %119, %120 : vector<17x128xf32>
    %122 = tpu.concatenate %105, %121 in 1 : vector<17x128xf32>, vector<17x128xf32> -> vector<17x256xf32>
    %123 = tpu.concatenate %89, %122 in 0 : vector<17x256xf32>, vector<17x256xf32> -> vector<34x256xf32>
    %124 = arith.truncf %123 : vector<34x256xf32> to vector<34x256xbf16>
    %cst_64 = arith.constant dense<0.000000e+00> : vector<34x128xf32>
    %125 = tpu.matmul %124, %12, %cst_64 {dimension_numbers = #tpu.dot_dimension_numbers<[1], [0], [0], [1], [0, 0, 1, 1], [], []>} : vector<34x256xbf16>, vector<256x128xbf16>, vector<34x128xf32> -> vector<34x128xf32>
    %126 = arith.addf %27, %125 : vector<34x128xf32>
    %127 = vector.broadcast %14 : vector<1x128xf32> to vector<34x128xf32>
    %128 = arith.addf %126, %127 : vector<34x128xf32>
    %129 = tpu.iota {dimensions = array<i32: 1>} : vector<34x128xi32>
    %c32_i32_65 = arith.constant 32 : i32
    %130 = vector.broadcast %c32_i32_65 : i32 to vector<34x128xi32>
    %131 = arith.cmpi slt, %129, %130 : vector<34x128xi32>
    %cst_66 = arith.constant dense<0.000000e+00> : vector<34xf32>
    %132 = vector.multi_reduction <add>, %128, %cst_66 [1] : vector<34x128xf32> to vector<34xf32>
    %133 = vector.shape_cast %132 : vector<34xf32> to vector<34x1xf32>
    %cst_67 = arith.constant 3.125000e-02 : f32
    %134 = vector.broadcast %cst_67 : f32 to vector<34x1xf32>
    %135 = arith.mulf %133, %134 : vector<34x1xf32>
    %136 = vector.broadcast %135 : vector<34x1xf32> to vector<34x128xf32>
    %137 = arith.subf %128, %136 : vector<34x128xf32>
    %cst_68 = arith.constant 0.000000e+00 : f32
    %138 = vector.broadcast %cst_68 : f32 to vector<34x128xf32>
    %139 = arith.select %131, %137, %138 : vector<34x128xi1>, vector<34x128xf32>
    %140 = arith.mulf %139, %139 : vector<34x128xf32>
    %cst_69 = arith.constant dense<0.000000e+00> : vector<34xf32>
    %141 = vector.multi_reduction <add>, %140, %cst_69 [1] : vector<34x128xf32> to vector<34xf32>
    %142 = vector.shape_cast %141 : vector<34xf32> to vector<34x1xf32>
    %cst_70 = arith.constant 3.125000e-02 : f32
    %143 = vector.broadcast %cst_70 : f32 to vector<34x1xf32>
    %144 = arith.mulf %142, %143 : vector<34x1xf32>
    %cst_71 = arith.constant 9.99999974E-6 : f32
    %145 = vector.broadcast %cst_71 : f32 to vector<34x1xf32>
    %146 = arith.addf %144, %145 : vector<34x1xf32>
    %147 = math.rsqrt %146 : vector<34x1xf32>
    %148 = vector.broadcast %147 : vector<34x1xf32> to vector<34x128xf32>
    %149 = arith.mulf %139, %148 : vector<34x128xf32>
    %150 = vector.broadcast %16 : vector<1x128xf32> to vector<34x128xf32>
    %151 = arith.mulf %149, %150 : vector<34x128xf32>
    %152 = vector.broadcast %18 : vector<1x128xf32> to vector<34x128xf32>
    %153 = arith.addf %151, %152 : vector<34x128xf32>
    %154 = arith.truncf %153 : vector<34x128xf32> to vector<34x128xbf16>
    %cst_72 = arith.constant dense<0.000000e+00> : vector<34x128xf32>
    %155 = tpu.matmul %154, %20, %cst_72 {dimension_numbers = #tpu.dot_dimension_numbers<[1], [0], [0], [1], [0, 0, 1, 1], [], []>} : vector<34x128xbf16>, vector<128x128xbf16>, vector<34x128xf32> -> vector<34x128xf32>
    %156 = vector.broadcast %22 : vector<1x128xf32> to vector<34x128xf32>
    %157 = arith.addf %155, %156 : vector<34x128xf32>
    %cst_73 = arith.constant 5.000000e-01 : f32
    %158 = vector.broadcast %cst_73 : f32 to vector<34x128xf32>
    %159 = arith.mulf %158, %157 : vector<34x128xf32>
    %cst_74 = arith.constant 4.471500e-02 : f32
    %160 = vector.broadcast %cst_74 : f32 to vector<34x128xf32>
    %161 = arith.mulf %160, %157 : vector<34x128xf32>
    %162 = arith.mulf %161, %157 : vector<34x128xf32>
    %163 = arith.mulf %162, %157 : vector<34x128xf32>
    %164 = arith.addf %157, %163 : vector<34x128xf32>
    %cst_75 = arith.constant 0.797884583 : f32
    %165 = vector.broadcast %cst_75 : f32 to vector<34x128xf32>
    %166 = arith.mulf %165, %164 : vector<34x128xf32>
    %167 = math.tanh %166 : vector<34x128xf32>
    %cst_76 = arith.constant 1.000000e+00 : f32
    %168 = vector.broadcast %cst_76 : f32 to vector<34x128xf32>
    %169 = arith.addf %168, %167 : vector<34x128xf32>
    %170 = arith.mulf %159, %169 : vector<34x128xf32>
    %171 = arith.truncf %170 : vector<34x128xf32> to vector<34x128xbf16>
    %cst_77 = arith.constant dense<0.000000e+00> : vector<34x128xf32>
    %172 = tpu.matmul %171, %24, %cst_77 {dimension_numbers = #tpu.dot_dimension_numbers<[1], [0], [0], [1], [0, 0, 1, 1], [], []>} : vector<34x128xbf16>, vector<128x128xbf16>, vector<34x128xf32> -> vector<34x128xf32>
    %173 = arith.addf %128, %172 : vector<34x128xf32>
    %174 = vector.broadcast %26 : vector<1x128xf32> to vector<34x128xf32>
    %175 = arith.addf %173, %174 : vector<34x128xf32>
    %c0_78 = arith.constant 0 : index
    %c0_79 = arith.constant 0 : index
    %176 = vector.load %arg18[%c0_78, %c0_79] : memref<34x128xf32, #tpu.memory_space<vmem>>, vector<34x128xf32>
    tpu.vector_store %arg18[%c0_78, %c0_79], %175 {strides = array<i32>} : memref<34x128xf32, #tpu.memory_space<vmem>>, vector<34x128xf32>,
    %c1_i32 = arith.constant 1 : i32
    %177 = arith.cmpi eq, %arg0, %c1_i32 : i32
    %178 = arith.extui %177 : i1 to i32
    %c0_i32_80 = arith.constant 0 : i32
    %179 = arith.cmpi ne, %178, %c0_i32_80 : i32
    scf.if %179 {
      %c0_81 = arith.constant 0 : index
      %c0_82 = arith.constant 0 : index
      %180 = vector.load %arg15[%c0_81, %c0_82] : memref<128x128xbf16, #tpu.memory_space<vmem>>, vector<128x128xbf16>
      %181 = arith.truncf %175 : vector<34x128xf32> to vector<34x128xbf16>
      %cst_83 = arith.constant dense<0.000000e+00> : vector<34x128xf32>
      %182 = tpu.matmul %181, %180, %cst_83 {dimension_numbers = #tpu.dot_dimension_numbers<[1], [0], [0], [1], [0, 0, 1, 1], [], []>} : vector<34x128xbf16>, vector<128x128xbf16>, vector<34x128xf32> -> vector<34x128xf32>
      %c0_84 = arith.constant 0 : index
      %c0_85 = arith.constant 0 : index
      %183 = vector.load %arg16[%c0_84, %c0_85] : memref<1x128xf32, #tpu.memory_space<vmem>>, vector<1x128xf32>
      %184 = vector.broadcast %183 : vector<1x128xf32> to vector<34x128xf32>
      %185 = arith.addf %182, %184 : vector<34x128xf32>
      %c0_86 = arith.constant 0 : index
      %c0_87 = arith.constant 0 : index
      %186 = vector.load %arg17[%c0_86, %c0_87] : memref<34x128xf32, #tpu.memory_space<vmem>>, vector<34x128xf32>
      tpu.vector_store %arg17[%c0_86, %c0_87], %185 {strides = array<i32>} : memref<34x128xf32, #tpu.memory_space<vmem>>, vector<34x128xf32>,
    } else {
    }
    return
  }
  func.func @transform_0(%arg0: i32) -> (i32, i32) {
    %c0_i32 = arith.constant 0 : i32
    %c0_i32_0 = arith.constant 0 : i32
    %c0_i32_1 = arith.constant 0 : i32
    return %c0_i32, %c0_i32_0 : i32, i32
  }
  func.func @transform_1(%arg0: i32) -> (i32, i32) {
    %c0_i32 = arith.constant 0 : i32
    %c0_i32_0 = arith.constant 0 : i32
    %c0_i32_1 = arith.constant 0 : i32
    return %c0_i32, %c0_i32_0 : i32, i32
  }
  func.func @transform_2(%arg0: i32) -> (i32, i32, i32) {
    %c0_i32 = arith.constant 0 : i32
    %c0_i32_0 = arith.constant 0 : i32
    %c0_i32_1 = arith.constant 0 : i32
    return %arg0, %c0_i32, %c0_i32_0 : i32, i32, i32
  }
  func.func @transform_3(%arg0: i32) -> (i32, i32, i32) {
    %c0_i32 = arith.constant 0 : i32
    %c0_i32_0 = arith.constant 0 : i32
    %c0_i32_1 = arith.constant 0 : i32
    return %arg0, %c0_i32, %c0_i32_0 : i32, i32, i32
  }
  func.func @transform_4(%arg0: i32) -> (i32, i32, i32) {
    %c0_i32 = arith.constant 0 : i32
    %c0_i32_0 = arith.constant 0 : i32
    %c0_i32_1 = arith.constant 0 : i32
    return %arg0, %c0_i32, %c0_i32_0 : i32, i32, i32
  }
  func.func @transform_5(%arg0: i32) -> (i32, i32, i32) {
    %c0_i32 = arith.constant 0 : i32
    %c0_i32_0 = arith.constant 0 : i32
    %c0_i32_1 = arith.constant 0 : i32
    return %arg0, %c0_i32, %c0_i32_0 : i32, i32, i32
  }
  func.func @transform_6(%arg0: i32) -> (i32, i32, i32) {
    %c0_i32 = arith.constant 0 : i32
    %c0_i32_0 = arith.constant 0 : i32
    %c0_i32_1 = arith.constant 0 : i32
    return %arg0, %c0_i32, %c0_i32_0 : i32, i32, i32
  }
  func.func @transform_7(%arg0: i32) -> (i32, i32, i32) {
    %c0_i32 = arith.constant 0 : i32
    %c0_i32_0 = arith.constant 0 : i32
    %c0_i32_1 = arith.constant 0 : i32
    return %arg0, %c0_i32, %c0_i32_0 : i32, i32, i32
  }
  func.func @transform_8(%arg0: i32) -> (i32, i32, i32) {
    %c0_i32 = arith.constant 0 : i32
    %c0_i32_0 = arith.constant 0 : i32
    %c0_i32_1 = arith.constant 0 : i32
    return %arg0, %c0_i32, %c0_i32_0 : i32, i32, i32
  }
  func.func @transform_9(%arg0: i32) -> (i32, i32, i32) {
    %c0_i32 = arith.constant 0 : i32
    %c0_i32_0 = arith.constant 0 : i32
    %c0_i32_1 = arith.constant 0 : i32
    return %arg0, %c0_i32, %c0_i32_0 : i32, i32, i32
  }
  func.func @transform_10(%arg0: i32) -> (i32, i32, i32) {
    %c0_i32 = arith.constant 0 : i32
    %c0_i32_0 = arith.constant 0 : i32
    %c0_i32_1 = arith.constant 0 : i32
    return %arg0, %c0_i32, %c0_i32_0 : i32, i32, i32
  }
  func.func @transform_11(%arg0: i32) -> (i32, i32, i32) {
    %c0_i32 = arith.constant 0 : i32
    %c0_i32_0 = arith.constant 0 : i32
    %c0_i32_1 = arith.constant 0 : i32
    return %arg0, %c0_i32, %c0_i32_0 : i32, i32, i32
  }
  func.func @transform_12(%arg0: i32) -> (i32, i32, i32) {
    %c0_i32 = arith.constant 0 : i32
    %c0_i32_0 = arith.constant 0 : i32
    %c0_i32_1 = arith.constant 0 : i32
    return %arg0, %c0_i32, %c0_i32_0 : i32, i32, i32
  }
  func.func @transform_13(%arg0: i32) -> (i32, i32, i32) {
    %c0_i32 = arith.constant 0 : i32
    %c0_i32_0 = arith.constant 0 : i32
    %c0_i32_1 = arith.constant 0 : i32
    return %arg0, %c0_i32, %c0_i32_0 : i32, i32, i32
  }
  func.func @transform_14(%arg0: i32) -> (i32, i32) {
    %c0_i32 = arith.constant 0 : i32
    %c0_i32_0 = arith.constant 0 : i32
    %c0_i32_1 = arith.constant 0 : i32
    return %c0_i32, %c0_i32_0 : i32, i32
  }
  func.func @transform_15(%arg0: i32) -> (i32, i32) {
    %c0_i32 = arith.constant 0 : i32
    %c0_i32_0 = arith.constant 0 : i32
    %c0_i32_1 = arith.constant 0 : i32
    return %c0_i32, %c0_i32_0 : i32, i32
  }
  func.func @transform_16(%arg0: i32) -> (i32, i32) {
    %c0_i32 = arith.constant 0 : i32
    %c0_i32_0 = arith.constant 0 : i32
    %c0_i32_1 = arith.constant 0 : i32
    return %c0_i32, %c0_i32_0 : i32, i32
  }
}

</mosaic_0001>

<bundles_post_ra>
// kernel: squeeze.7
= control target key start
LH: loop header
LB: loop body
LE: loop exit
PB: predicated region body
PF: predicated region fallthrough
CT: control target
= control target key end

     0   :  { %s144_s8 = smov 120   ;;  %vm3_vm0 = vcmask 64512   ;;  %s217_s0 = inlined_call_operand.vmem [shape: f32[2,1,16,8], index: 0, kind: input, shape index: {}]   ;;  %s218_s1 = inlined_call_operand.vmem [shape: f32[2,2,8,8,1], index: 1, kind: output, shape index: {}]  }
   0x1   :  { %v13_v0 = vld [vmem:[%s217_s0] sm:$0xff]   ;;  %v127_v1 = vld [vmem:[%s217_s0 + $0x8] sm:$0xff]  }
   0x2   :  { %14 = vrot.lane.b32.xlu0 %v13_v0, %s144_s8  ;;  %4 = vst.msk [vmem:[#allocation0] ss:$8 sm:$0xf] %vm3_vm0, %v13_v0  }
   0x3   :  { %5 = vst.msk [vmem:[#allocation0] ss:$8 sm:$0xf0] %vm3_vm0, %v13_v0  }
   0x4   :  { %10 = vst.msk [vmem:[#allocation0 + $0x40] ss:$8 sm:$0xf] %vm3_vm0, %v127_v1  }
   0x5   :  { %12 = vst.msk [vmem:[#allocation0 + $0x40] ss:$8 sm:$0xf0] %vm3_vm0, %v127_v1  }
   0xa   :  { %23 = vrot.lane.b32.xlu0 %v127_v1, %s144_s8 }
  0x74   :  { %v15_v2 = vpop.permute.xlu0 %14  }
  0x75   :  { %18 = vst.msk [vmem:[#allocation0 + $0x1] ss:$8 sm:$0xf] %vm3_vm0, %v15_v2  }
  0x76   :  { %20 = vst.msk [vmem:[#allocation0 + $0x1] ss:$8 sm:$0xf0] %vm3_vm0, %v15_v2  }
  0x7c   :  { %v32_v3 = vld [vmem:[#allocation0] sm:$0x3]  ;;  %v37_v4 = vld [vmem:[#allocation0 + $0x8] sm:$0x3]  ;;  %v43_v5 = vld [vmem:[#allocation0 + $0x10] sm:$0x3]  ;;  %v24_v6 = vpop.permute.xlu0 %23  }
  0x7d   :  { %35 = vst [vmem:[%s218_s1] sm:$0x3] %v32_v3  ;;  %v49_v7 = vld [vmem:[#allocation0 + $0x18] sm:$0x3]  ;;  %v55_v8 = vld [vmem:[#allocation0 + $0x20] sm:$0x3] }
  0x7e   :  { %128 = vst [vmem:[%s218_s1 + $0x2] sm:$0x3] %v37_v4  ;;  %v61_v9 = vld [vmem:[#allocation0 + $0x28] sm:$0x3]  ;;  %v67_v10 = vld [vmem:[#allocation0 + $0x30] sm:$0x3] }
  0x7f   :  { %129 = vst [vmem:[%s218_s1 + $0x4] sm:$0x3] %v43_v5  ;;  %v73_v11 = vld [vmem:[#allocation0 + $0x38] sm:$0x3] }
  0x80   :  { %130 = vst [vmem:[%s218_s1 + $0x6] sm:$0x3] %v49_v7 }
  0x81   :  { %131 = vst [vmem:[%s218_s1 + $0x8] sm:$0x3] %v55_v8 }
  0x82   :  { %132 = vst [vmem:[%s218_s1 + $0xa] sm:$0x3] %v61_v9 }
  0x83   :  { %133 = vst [vmem:[%s218_s1 + $0xc] sm:$0x3] %v67_v10 }
  0x84   :  { %134 = vst [vmem:[%s218_s1 + $0xe] sm:$0x3] %v73_v11 }
  0x85   :  { %27 = vst.msk [vmem:[#allocation0 + $0x41] ss:$8 sm:$0xf] %vm3_vm0, %v24_v6  }
  0x86   :  { %29 = vst.msk [vmem:[#allocation0 + $0x41] ss:$8 sm:$0xf0] %vm3_vm0, %v24_v6  }
  0x8c   :  { %v79_v12 = vld [vmem:[#allocation0 + $0x40] sm:$0x3]  ;;  %v85_v13 = vld [vmem:[#allocation0 + $0x48] sm:$0x3]  ;;  %v91_v14 = vld [vmem:[#allocation0 + $0x50] sm:$0x3] }
  0x8d   :  { %135 = vst [vmem:[%s218_s1 + $0x10] sm:$0x3] %v79_v12  ;;  %v97_v15 = vld [vmem:[#allocation0 + $0x58] sm:$0x3]  ;;  %v103_v16 = vld [vmem:[#allocation0 + $0x60] sm:$0x3] }
  0x8e   :  { %136 = vst [vmem:[%s218_s1 + $0x12] sm:$0x3] %v85_v13  ;;  %v109_v17 = vld [vmem:[#allocation0 + $0x68] sm:$0x3]  ;;  %v115_v18 = vld [vmem:[#allocation0 + $0x70] sm:$0x3] }
  0x8f   :  { %137 = vst [vmem:[%s218_s1 + $0x14] sm:$0x3] %v91_v14  ;;  %v121_v19 = vld [vmem:[#allocation0 + $0x78] sm:$0x3] }
  0x90   :  { %138 = vst [vmem:[%s218_s1 + $0x16] sm:$0x3] %v97_v15 }
  0x91   :  { %139 = vst [vmem:[%s218_s1 + $0x18] sm:$0x3] %v103_v16 }
  0x92   :  { %140 = vst [vmem:[%s218_s1 + $0x1a] sm:$0x3] %v109_v17 }
  0x93   :  { %141 = vst [vmem:[%s218_s1 + $0x1c] sm:$0x3] %v115_v18 }
  0x94   :  { %142 = vst [vmem:[%s218_s1 + $0x1e] sm:$0x3] %v121_v19 }

// kernel: mae_vit_forward.3
= control target key start
LH: loop header
LB: loop body
LE: loop exit
PB: predicated region body
PF: predicated region fallthrough
CT: control target
= control target key end

     0   :  { %s255_s1 = inlined_call_operand.vmem [shape: bf16[128,128], index: 1, kind: input, shape index: {}]   ;;  %s256_s2 = inlined_call_operand.vmem [shape: f32[1,128], index: 2, kind: input, shape index: {}]   ;;  %s257_s0 = inlined_call_operand.vmem [shape: f32[32,128], index: 0, kind: input, shape index: {}]   ;;  %s258_s3 = inlined_call_operand.vmem [shape: f32[16,128], index: 3, kind: input, shape index: {}]   ;;  %s259_s4 = inlined_call_operand.vmem [shape: f32[32,128], index: 4, kind: output, shape index: {}]  }
   0x1   :  { %v163_v0 = vld [vmem:[%s255_s1 + $0x38] sm:$0xff]  ;;  %v162_v1 = vld [vmem:[%s255_s1 + $0x30] sm:$0xff]  ;;  %v161_v2 = vld [vmem:[%s255_s1 + $0x28] sm:$0xff] }
   0x2   :  { %91 = vmatpush.bf16.msra.mxu0 %v163_v0  ;;  %164 = vmatpush.bf16.msra.mxu1 %v163_v0  ;;  %v160_v3 = vld [vmem:[%s255_s1 + $0x20] sm:$0xff]  ;;  %v159_v4 = vld [vmem:[%s255_s1 + $0x18] sm:$0xff]  ;;  %v158_v5 = vld [vmem:[%s255_s1 + $0x10] sm:$0xff] }
   0x3   :  { %v157_v6 = vld [vmem:[%s255_s1 + $0x8] sm:$0xff]  ;;  %v156_v7 = vld [vmem:[%s255_s1] sm:$0xff]  ;;  %v19_v10 = vld [vmem:[%s257_s0 + $0x10] sm:$0xff] }
   0x4   :  { %v17_v8 = vld [vmem:[%s257_s0] sm:$0xff]  ;;  %v18_v9 = vld [vmem:[%s257_s0 + $0x8] sm:$0xff]  ;;  %v20_v11 = vld [vmem:[%s257_s0 + $0x18] sm:$0xff] }
   0x5   :  { %v37_v12 = vpack.c.bf16 %v18_v9, %v17_v8  ;;  %v38_v13 = vpack.c.bf16 %v20_v11, %v19_v10  ;;  %v172_v14 = vld [vmem:[%s256_s2] ss:$0 sm:$0xff]  ;;  %v111_v23 = vld [vmem:[%s258_s3 + $0x8] sm:$0xff] }
   0x6   :  { %92 = vmatpush.bf16.msra.mxu0 %v162_v1  ;;  %165 = vmatpush.bf16.msra.mxu1 %v162_v1  ;;  %v110_v16 = vld [vmem:[%s258_s3] sm:$0xff] }
   0xa   :  { %93 = vmatpush.bf16.msra.mxu0 %v161_v2  ;;  %166 = vmatpush.bf16.msra.mxu1 %v161_v2 }
   0xe   :  { %94 = vmatpush.bf16.msra.mxu0 %v160_v3  ;;  %167 = vmatpush.bf16.msra.mxu1 %v160_v3 }
  0x12   :  { %95 = vmatpush.bf16.msra.mxu0 %v159_v4  ;;  %168 = vmatpush.bf16.msra.mxu1 %v159_v4 }
  0x16   :  { %96 = vmatpush.bf16.msra.mxu0 %v158_v5  ;;  %169 = vmatpush.bf16.msra.mxu1 %v158_v5 }
  0x1a   :  { %97 = vmatpush.bf16.msra.mxu0 %v157_v6  ;;  %170 = vmatpush.bf16.msra.mxu1 %v157_v6 }
  0x1e   :  { %98 = vmatpush.bf16.msra.mxu0 %v156_v7  ;;  %171 = vmatpush.bf16.msra.mxu1 %v156_v7 }
  0x21   :  { %99 = vmatmul.bf16.vlgmr.msra.gmra.mxu0 %v37_v12  ;;  %104 = vmatmul.bf16.vlgmr.msra.gmra.mxu1 %v38_v13 }
  0x9e   :  { %v100_v15 = vpop.f32.mrf.mxu0  ;;  %v105_v17 = vpop.f32.mrf.mxu1 }
  0x9f   :  { %v101_v18 = vadd.f32 %v172_v14, %v100_v15  ;;  %v106_v19 = vadd.f32 %v172_v14, %v105_v17 }
  0xa1   :  { %v112_v20 = vadd.f32 %v110_v16, %v101_v18  ;;  %v114_v21 = vadd.f32 %v110_v16, %v106_v19 }
  0xa3   :  { %116 = vst [vmem:[%s259_s4] sm:$0xff] %v112_v20 }
  0xa4   :  { %118 = vst [vmem:[%s259_s4 + $0x10] sm:$0xff] %v114_v21 }
  0xa6   :  { %v102_v22 = vpop.f32.mrf.mxu0  ;;  %v107_v24 = vpop.f32.mrf.mxu1 }
  0xa7   :  { %v103_v25 = vadd.f32 %v172_v14, %v102_v22  ;;  %v108_v26 = vadd.f32 %v172_v14, %v107_v24 }
  0xa9   :  { %v113_v27 = vadd.f32 %v111_v23, %v103_v25  ;;  %v115_v28 = vadd.f32 %v111_v23, %v108_v26 }
  0xab   :  { %117 = vst [vmem:[%s259_s4 + $0x8] sm:$0xff] %v113_v27 }
  0xac   :  { %119 = vst [vmem:[%s259_s4 + $0x18] sm:$0xff] %v115_v28 }

// kernel: mae_vit_forward.4
= control target key start
LH: loop header
LB: loop body
LE: loop exit
PB: predicated region body
PF: predicated region fallthrough
CT: control target
= control target key end

     0   :  { %s3916_s0 = inlined_call_operand.vmem [shape: f32[10,128], index: 0, kind: input, shape index: {}]   ;;  %s3917_s1 = inlined_call_operand.vmem [shape: f32[2,1,128], index: 1, kind: input, shape index: {}]   ;;  %s3918_s2 = inlined_call_operand.vmem [shape: f32[2,1,128], index: 2, kind: input, shape index: {}]   ;;  %s3919_s3 = inlined_call_operand.hbm [shape: bf16[2,128,768], index: 3, kind: input, shape index: {}]   ;;  %s3920_s4 = inlined_call_operand.hbm [shape: f32[2,1,768], index: 4, kind: input, shape index: {}]   ;;  %s3921_s5 = inlined_call_operand.vmem [shape: bf16[2,256,128], index: 5, kind: input, shape index: {}]   ;;  %s3922_s6 = inlined_call_operand.hbm [shape: f32[2,1,128], index: 6, kind: input, shape index: {}]   ;;  %s3923_s7 = inlined_call_operand.hbm [shape: f32[2,1,128], index: 7, kind: input, shape index: {}]   ;;  %s3924_s8 = inlined_call_operand.hbm [shape: f32[2,1,128], index: 8, kind: input, shape index: {}]   ;;  %s3925_s9 = inlined_call_operand.vmem [shape: bf16[2,128,128], index: 9, kind: input, shape index: {}]   ;;  %s3926_s10 = inlined_call_operand.hbm [shape: f32[2,1,128], index: 10, kind: input, shape index: {}]   ;;  %s3927_s11 = inlined_call_operand.hbm [shape: bf16[2,128,128], index: 11, kind: input, shape index: {}]   ;;  %s3928_s12 = inlined_call_operand.hbm [shape: f32[2,1,128], index: 12, kind: input, shape index: {}]   ;;  %s3929_s13 = inlined_call_operand.hbm [shape: f32[1,128], index: 13, kind: input, shape index: {}]   ;;  %s3930_s14 = inlined_call_operand.hbm [shape: f32[1,128], index: 14, kind: input, shape index: {}]   ;;  %s3931_s15 = inlined_call_operand.vmem [shape: f32[10,128], index: 15, kind: output, shape index: {}]  }
   0x1   :  { %3944 = sst [smem:[#allocation31_spill]] %s3916_s0 }
   0x2   :  { %3945 = sst [smem:[#allocation32_spill]] %s3917_s1 }
   0x3   :  { %3946 = sst [smem:[#allocation33_spill]] %s3918_s2 }
   0x4   :  { %3947 = sst [smem:[#allocation34_spill]] %s3919_s3 }
   0x5   :  { %3948 = sst [smem:[#allocation35_spill]] %s3920_s4 }
   0x6   :  { %3949 = sst [smem:[#allocation36_spill]] %s3921_s5 }
   0x7   :  { %3950 = sst [smem:[#allocation37_spill]] %s3922_s6 }
   0x8   :  { %3951 = sst [smem:[#allocation38_spill]] %s3925_s9 }
   0x9   :  { %3952 = sst [smem:[#allocation39_spill]] %s3929_s13 }
   0xa   :  { %3953 = sst [smem:[#allocation40_spill]] %s3931_s15 }
   0xb   :  { %20 = vsyncpa [#allocation4], 0 }
   0xc   :  { %22 = vsyncpa [#allocation4 + $0x1], 0 }
   0xd   :  { %23 = vsyncpa [#allocation6], 0 }
   0xe   :  { %25 = vsyncpa [#allocation6 + $0x1], 0 }
   0xf   :  { %26 = vsyncpa [#allocation9], 0 }
  0x10   :  { %28 = vsyncpa [#allocation9 + $0x1], 0 }
  0x11   :  { %29 = vsyncpa [#allocation12], 0 }
  0x12   :  { %31 = vsyncpa [#allocation12 + $0x1], 0 }
  0x13   :  { %32 = vsyncpa [#allocation15], 0 }
  0x14   :  { %34 = vsyncpa [#allocation15 + $0x1], 0 }
  0x15   :  { %35 = vsyncpa [#allocation18], 0  ;;  %s3359_s18 = smov 0   ;;  %s3361_s19 = smov 0  }
  0x16   :  { %s3363_s20 = smov 0   ;;  %s3365_s21 = smov 0  }
  0x17 LB: > { %3954 = sst [smem:[#allocation26_spill]] %s3267_s20  ;;  %s3378_s22 = sadd.s32 4294967295, %s3271_s21   ;;  %s3271_s21 = sphi %s3365_s21, %s3988_s21   ;;  %s3267_s20 = sphi %s3363_s20, %s3990_s20   ;;  %s3263_s19 = sphi %s3361_s19, %s3992_s19   ;;  %s3259_s18 = sphi %s3359_s18, %s3991_s18  }
  0x18   : > { %3955 = sst [smem:[#allocation27_spill]] %s3378_s22  ;;  %s3381_s23 = sadd.s32 1, %s3271_s21  }
  0x19   : > { %3956 = sst [smem:[#allocation28_spill]] %s3381_s23  ;;  %s118_s24 = ssub.s32 %s3271_s21, %s3381_s23 }
  0x1a   : > { %s121_s25 = sadd.s32 1, %s3267_s20  ;;  %p119_p0 = scmp.eq.s32.totalorder %s118_s24, 0 }
  0x1b   : > { %p128_p1 = scmp.ne.s32.totalorder %s3267_s20, %s3263_s19  ;;  %p129_p2 = scmp.eq.s32.totalorder %s3271_s21, 0 }
  0x1c   : > { %p134_p3 = scmp.ne.s32.totalorder %s3263_s19, %s3259_s18  ;;  %p135_p5 = scmp.eq.s32.totalorder %s3378_s22, 0 }
  0x1d   : > { %s3391_s26 = scalar_select %p119_p0, %s3267_s20, %s121_s25  }
  0x1e   : > { %p3393_p4 = por %p129_p2, %p128_p1  ;;  %p2336_p6 = scmp.ge.s32.totalorder %s3271_s21, 1 }
  0x1f   : > { %3957 = sst [smem:[#allocation29_spill]] %s3391_s26  ;;  %p442_p7 = scmp.lt.s32.totalorder %s3271_s21, 3 }
  0x20   : > { %p3402_p8 = por %p135_p5, %p134_p3  ;;  %p2337_p9 = scmp.ne.s32.totalorder %s3378_s22, 0 }
  0x21   : > { %p3407_p10 = pnand %p2336_p6, %p442_p7  ;;  %s3962_s13 = sld [smem:[#allocation39_spill]] }
  0x22   : > { %s3959_s28 = scalar_select %p3402_p8, 1, 0 }
  0x23   : > { %p2797_p11 = pneg %p3407_p10  ;;  %s3273_s18 = smov [#allocation16]  }
  0x24   : > { %3960 = sst [smem:[#allocation30_spill]] %s3959_s28  ;;  %s459_s24 = sshll.u32 %s3273_s18, 4  ;;  %s460_s24 = int_to_ptr.vmem [resolvable:$true] %s459_s24 }
  0x25   : > { %p3418_p12 = pnand %p2797_p11, %p135_p5  ;;  %p2831_p13 = scmp.lt.s32.totalorder %s3271_s21, 2 }
  0x26   : > { %s3424_s26 = sand.u32 1, %s3267_s20   ;;  %s3427_s23 = sand.u32 1, %s3271_s21  }
  0x27   : > { %s457_s17 = sshll.u32 %s3962_s13, 4  ;;  %p3431_p0 = pnand %p2831_p13, %p3393_p4  ;;  %s458_s17 = int_to_ptr.hbm [resolvable:$true] %s457_s17 }
  0x28   : > { %2800 = dma.hbm_to_vmem [thread:$0]  (!%p3418_p12), %s458_s17, 16, %s460_s24, [#allocation15]  }
  0x29   : > { %s2769_s16 = smul.u32 6, %s3424_s26  ;;  %s566_s0 = scalar_lea.hbm %s3923_s7, %s3271_s21 }
  0x2a   : > { %s2770_s18 = smul.u32 6, %s3271_s21  ;;  %s3965_s4 = sld [smem:[#allocation35_spill]] }
  0x2b   : > { %s520_s2 = scalar_lea.vmem [#allocation5], %s2769_s16  ;;  %s3446_s22 = sshll.u32 %s566_s0, 4  ;;  %s569_s22 = int_to_ptr.hbm [resolvable:$true] %s3446_s22 }
  0x2c   : > { %s528_s27 = sshll.u32 %s520_s2, 4  ;;  %s3941_s28 = scalar_lea.sflag [#allocation6], %s3427_s23  ;;  %s529_s27 = int_to_ptr.vmem [resolvable:$true] %s528_s27 }
  0x2d   : > { %p3451_p2 = pneg %p3431_p0 }
  0x30   : > { %s524_s5 = scalar_lea.hbm %s3965_s4, %s2770_s18  ;;  %s2950_s9 = scalar_lea.hbm %s3965_s4, 12 }
  0x31   : > { %s526_s1 = sshll.u32 %s524_s5, 4  ;;  %s527_s1 = int_to_ptr.hbm [resolvable:$true] %s526_s1 }
  0x32   : > { %s2943_s17 = sshra.s32 %s527_s1, 4  ;;  %s2944_s17 = int_to_ptr.hbm [resolvable:$true] %s2943_s17 }
  0x33   : > { %s2945_s24 = scalar_lea.hbm %s2944_s17, 6  ;;  %p2951_p6 = scmp.lt.s32.totalorder %s2944_s17, %s3965_s4 }
  0x34   : > { %p2946_p1 = scmp.ne.s32.totalorder %s2944_s17, %s2945_s24  ;;  %p2952_p7 = scmp.lt.s32.totalorder %s2950_s9, %s2945_s24 }
  0x36   : > { %p2948_p3 = pnand %p3451_p2, %p2946_p1  ;;  %p2953_p11 = por %p2952_p7, %p2951_p6 }
  0x38   : > { %p2949_p4 = pneg %p2948_p3 }
  0x3a   : > { %p2954_p13 = pnand %p2953_p11, %p2949_p4 }
  0x3c   : > { %2957 = shalt.err (!%p2954_p13)
}
  0x3d   : > { %2810 = dma.hbm_to_vmem [thread:$0]  (!%p3431_p0), %s527_s1, 96, %s529_s27, %s3941_s28  }
  0x3e   : > { %s563_s20 = scalar_lea.vmem [#allocation8], %s3424_s26  ;;  %s3942_s18 = scalar_lea.sflag [#allocation9], %s3427_s23 }
  0x3f   : > { %s570_s16 = sshll.u32 %s563_s20, 4  ;;  %s2973_s2 = sshra.s32 %s569_s22, 4  ;;  %s571_s16 = int_to_ptr.vmem [resolvable:$true] %s570_s16  ;;  %s2974_s2 = int_to_ptr.hbm [resolvable:$true] %s2973_s2 }
  0x40   : > { %s2975_s17 = scalar_lea.hbm %s2974_s2, 1  ;;  %s2980_s9 = scalar_lea.hbm %s3923_s7, 2 }
  0x41   : > { %p2976_p1 = scmp.ne.s32.totalorder %s2974_s2, %s2975_s17  ;;  %p2981_p6 = scmp.lt.s32.totalorder %s2974_s2, %s3923_s7 }
  0x42   : > { %p2982_p7 = scmp.lt.s32.totalorder %s2980_s9, %s2975_s17 }
  0x43   : > { %p2978_p3 = pnand %p2976_p1, %p3451_p2 }
  0x44   : > { %p2983_p11 = por %p2982_p7, %p2981_p6 }
  0x45   : > { %p2979_p4 = pneg %p2978_p3 }
  0x47   : > { %p2984_p13 = pnand %p2983_p11, %p2979_p4 }
  0x49   : > { %2987 = shalt.err (!%p2984_p13)
}
  0x4a   : > { %2816 = dma.hbm_to_vmem [thread:$0]  (!%p3431_p0), %s569_s22, 16, %s571_s16, %s3942_s18  }
  0x4b   : > { %s608_s20 = scalar_lea.hbm %s3926_s10, %s3271_s21  ;;  %s605_s5 = scalar_lea.vmem [#allocation11], %s3424_s26 }
  0x4c   : > { %s610_s24 = sshll.u32 %s608_s20, 4  ;;  %s612_s2 = sshll.u32 %s605_s5, 4  ;;  %s611_s24 = int_to_ptr.hbm [resolvable:$true] %s610_s24  ;;  %s613_s2 = int_to_ptr.vmem [resolvable:$true] %s612_s2 }
  0x4d   : > { %s3943_s17 = scalar_lea.sflag [#allocation12], %s3427_s23  ;;  %s3003_s9 = sshra.s32 %s611_s24, 4  ;;  %s3004_s9 = int_to_ptr.hbm [resolvable:$true] %s3003_s9 }
  0x4e   : > { %s3005_s0 = scalar_lea.hbm %s3004_s9, 1  ;;  %s3010_s22 = scalar_lea.hbm %s3926_s10, 2 }
  0x4f   : > { %p3006_p1 = scmp.ne.s32.totalorder %s3004_s9, %s3005_s0  ;;  %p3011_p6 = scmp.lt.s32.totalorder %s3004_s9, %s3926_s10 }
  0x50   : > { %p3012_p7 = scmp.lt.s32.totalorder %s3010_s22, %s3005_s0 }
  0x51   : > { %p3008_p3 = pnand %p3006_p1, %p3451_p2 }
  0x52   : > { %p3013_p11 = por %p3012_p7, %p3011_p6 }
  0x53   : > { %p3009_p4 = pneg %p3008_p3 }
  0x55   : > { %p3014_p13 = pnand %p3013_p11, %p3009_p4 }
  0x57   : > { %3017 = shalt.err (!%p3014_p13)
}
  0x58   : > { %2822 = dma.hbm_to_vmem [thread:$0]  (!%p3431_p0), %s611_s24, 16, %s613_s2, %s3943_s17  }
  0x59   : > { %s469_s20 = sshll.u32 %s3930_s14, 4  ;;  %s3274_s5 = smov [#allocation17]   ;;  %s470_s20 = int_to_ptr.hbm [resolvable:$true] %s469_s20 }
  0x5a   : > { %s471_s9 = sshll.u32 %s3274_s5, 4  ;;  %s2767_s0 = smul.u32 384, %s3424_s26  ;;  %s472_s9 = int_to_ptr.vmem [resolvable:$true] %s471_s9 }
  0x5b   : > { %2803 = dma.hbm_to_vmem [thread:$0]  (!%p3418_p12), %s470_s20, 16, %s472_s9, [#allocation18]  }
  0x5c   : > { %s2768_s15 = smul.u32 384, %s3271_s21  ;;  %s3967_s3 = sld [smem:[#allocation34_spill]] }
  0x5d   : > { %s498_s18 = scalar_lea.vmem [#allocation3], %s2767_s0  ;;  %s3968_s6 = sld [smem:[#allocation37_spill]] }
  0x5e   : > { %s506_s24 = sshll.u32 %s498_s18, 4  ;;  %s495_s5 = scalar_lea.sflag [#allocation4], %s3424_s26  ;;  %s507_s24 = int_to_ptr.vmem [resolvable:$true] %s506_s24 }
  0x62   : > { %s503_s1 = scalar_lea.hbm %s3967_s3, %s2768_s15  ;;  %s3070_s0 = scalar_lea.hbm %s3967_s3, 768 }
  0x63   : > { %s504_s2 = sshll.u32 %s503_s1, 4  ;;  %s549_s17 = scalar_lea.hbm %s3968_s6, %s3271_s21  ;;  %s505_s2 = int_to_ptr.hbm [resolvable:$true] %s504_s2 }
  0x64   : > { %s3063_s4 = sshra.s32 %s505_s2, 4  ;;  %s3064_s4 = int_to_ptr.hbm [resolvable:$true] %s3063_s4 }
  0x65   : > { %s3065_s25 = scalar_lea.hbm %s3064_s4, 384  ;;  %p3071_p4 = scmp.lt.s32.totalorder %s3064_s4, %s3967_s3 }
  0x66   : > { %p3066_p12 = scmp.ne.s32.totalorder %s3064_s4, %s3065_s25  ;;  %p3072_p6 = scmp.lt.s32.totalorder %s3070_s0, %s3065_s25 }
  0x68   : > { %p3068_p1 = pnand %p3066_p12, %p3451_p2  ;;  %p3073_p7 = por %p3072_p6, %p3071_p4 }
  0x6a   : > { %p3069_p3 = pneg %p3068_p1 }
  0x6c   : > { %p3074_p11 = pnand %p3073_p7, %p3069_p3 }
  0x6e   : > { %3077 = shalt.err (!%p3074_p11)
}
  0x6f   : > { %s3275_s22 = smov 384   ;;  %s3276_s16 = smov 24  }
  0x70   : > { %2807 = dma.hbm_to_vmem [thread:$0]  (!%p3431_p0), %s505_s2, 6144, %s507_s24, %s495_s5, %s3275_s22, %s3275_s22, %s3276_s16  }
  0x71   : > { %s551_s1 = sshll.u32 %s549_s17, 4  ;;  %s546_s27 = scalar_lea.vmem [#allocation7], %s3424_s26  ;;  %s552_s1 = int_to_ptr.hbm [resolvable:$true] %s551_s1 }
  0x72   : > { %s553_s28 = sshll.u32 %s546_s27, 4  ;;  %s3093_s20 = sshra.s32 %s552_s1, 4  ;;  %s554_s28 = int_to_ptr.vmem [resolvable:$true] %s553_s28  ;;  %s3094_s20 = int_to_ptr.hbm [resolvable:$true] %s3093_s20 }
  0x73   : > { %s3095_s9 = scalar_lea.hbm %s3094_s20, 1  ;;  %s3100_s0 = scalar_lea.hbm %s3968_s6, 2 }
  0x74   : > { %p3096_p13 = scmp.ne.s32.totalorder %s3094_s20, %s3095_s9  ;;  %p3101_p3 = scmp.lt.s32.totalorder %s3094_s20, %s3968_s6 }
  0x75   : > { %p3102_p4 = scmp.lt.s32.totalorder %s3100_s0, %s3095_s9 }
  0x76   : > { %p3098_p12 = pnand %p3096_p13, %p3451_p2 }
  0x77   : > { %p3103_p6 = por %p3102_p4, %p3101_p3 }
  0x78   : > { %p3099_p1 = pneg %p3098_p12 }
  0x7a   : > { %p3104_p7 = pnand %p3103_p6, %p3099_p1 }
  0x7c   : > { %3107 = shalt.err (!%p3104_p7)
}
  0x7d   : > { %s3969_s17 = scalar_lea.sflag [#allocation6], %s3427_s23  ;;  %s583_s5 = scalar_lea.hbm %s3924_s8, %s3271_s21 }
  0x7e   : > { %2813 = dma.hbm_to_vmem [thread:$0]  (!%p3431_p0), %s552_s1, 16, %s554_s28, %s3969_s17  }
  0x7f   : > { %s585_s22 = sshll.u32 %s583_s5, 4  ;;  %s580_s16 = scalar_lea.vmem [#allocation10], %s3424_s26  ;;  %s586_s22 = int_to_ptr.hbm [resolvable:$true] %s585_s22 }
  0x80   : > { %s587_s27 = sshll.u32 %s580_s16, 4  ;;  %s3123_s20 = sshra.s32 %s586_s22, 4  ;;  %s588_s27 = int_to_ptr.vmem [resolvable:$true] %s587_s27  ;;  %s3124_s20 = int_to_ptr.hbm [resolvable:$true] %s3123_s20 }
  0x81   : > { %s3125_s9 = scalar_lea.hbm %s3124_s20, 1  ;;  %s3130_s1 = scalar_lea.hbm %s3924_s8, 2 }
  0x82   : > { %p3126_p11 = scmp.ne.s32.totalorder %s3124_s20, %s3125_s9  ;;  %p3131_p1 = scmp.lt.s32.totalorder %s3124_s20, %s3924_s8 }
  0x83   : > { %p3132_p3 = scmp.lt.s32.totalorder %s3130_s1, %s3125_s9 }
  0x84   : > { %p3128_p13 = pnand %p3126_p11, %p3451_p2 }
  0x85   : > { %p3133_p4 = por %p3132_p3, %p3131_p1 }
  0x86   : > { %p3129_p12 = pneg %p3128_p13 }
  0x88   : > { %p3134_p6 = pnand %p3133_p4, %p3129_p12 }
  0x8a   : > { %3137 = shalt.err (!%p3134_p6)
}
  0x8b   : > { %s3970_s18 = scalar_lea.sflag [#allocation9], %s3427_s23  ;;  %s2341_s15 = sshll.u32 %s3424_s26, 6 }
  0x8c   : > { %2819 = dma.hbm_to_vmem [thread:$0]  (!%p3431_p0), %s586_s22, 16, %s588_s27, %s3970_s18  }
  0x8d   : > { %s2684_s17 = sshll.u32 %s3271_s21, 6  ;;  %s623_s20 = scalar_lea.vmem [#allocation13], %s2341_s15 }
  0x8e   : > { %s628_s5 = scalar_lea.hbm %s3927_s11, %s2684_s17  ;;  %s631_s9 = sshll.u32 %s623_s20, 4  ;;  %s632_s9 = int_to_ptr.vmem [resolvable:$true] %s631_s9 }
  0x8f   : > { %s629_s16 = sshll.u32 %s628_s5, 4  ;;  %s3160_s27 = scalar_lea.hbm %s3927_s11, 128  ;;  %s630_s16 = int_to_ptr.hbm [resolvable:$true] %s629_s16 }
  0x90   : > { %s3153_s4 = sshra.s32 %s630_s16, 4  ;;  %s3154_s4 = int_to_ptr.hbm [resolvable:$true] %s3153_s4 }
  0x91   : > { %s3155_s25 = scalar_lea.hbm %s3154_s4, 64  ;;  %p3161_p12 = scmp.lt.s32.totalorder %s3154_s4, %s3927_s11 }
  0x92   : > { %p3156_p7 = scmp.ne.s32.totalorder %s3154_s4, %s3155_s25  ;;  %p3162_p1 = scmp.lt.s32.totalorder %s3160_s27, %s3155_s25 }
  0x94   : > { %p3158_p11 = pnand %p3156_p7, %p3451_p2  ;;  %p3163_p3 = por %p3162_p1, %p3161_p12 }
  0x96   : > { %p3159_p13 = pneg %p3158_p11 }
  0x98   : > { %p3164_p4 = pnand %p3163_p3, %p3159_p13 }
  0x9a   : > { %3167 = shalt.err (!%p3164_p4)
}
  0x9b   : > { %s3277_s18 = smov 64   ;;  %s3278_s15 = smov 4  }
  0x9c   : > { %s3971_s17 = scalar_lea.sflag [#allocation12], %s3427_s23  ;;  %s647_s5 = scalar_lea.hbm %s3928_s12, %s3271_s21 }
  0x9d   : > { %2825 = dma.hbm_to_vmem [thread:$0]  (!%p3431_p0), %s630_s16, 1024, %s632_s9, %s3971_s17, %s3277_s18, %s3277_s18, %s3278_s15  }
  0x9e   : > { %s644_s20 = scalar_lea.vmem [#allocation14], %s3424_s26  ;;  %s649_s25 = sshll.u32 %s647_s5, 4  ;;  %s650_s25 = int_to_ptr.hbm [resolvable:$true] %s649_s25 }
  0x9f   : > { %s651_s4 = sshll.u32 %s644_s20, 4  ;;  %s642_s1 = scalar_lea.sflag [#allocation15], %s3427_s23  ;;  %s652_s4 = int_to_ptr.vmem [resolvable:$true] %s651_s4 }
  0xa0   : > { %s3183_s22 = sshra.s32 %s650_s25, 4  ;;  %s3190_s16 = scalar_lea.hbm %s3928_s12, 2  ;;  %s3184_s22 = int_to_ptr.hbm [resolvable:$true] %s3183_s22 }
  0xa1   : > { %s3185_s27 = scalar_lea.hbm %s3184_s22, 1  ;;  %p3191_p13 = scmp.lt.s32.totalorder %s3184_s22, %s3928_s12 }
  0xa2   : > { %p3186_p6 = scmp.ne.s32.totalorder %s3184_s22, %s3185_s27  ;;  %p3192_p12 = scmp.lt.s32.totalorder %s3190_s16, %s3185_s27 }
  0xa4   : > { %p3188_p7 = pnand %p3186_p6, %p3451_p2  ;;  %p3193_p1 = por %p3192_p12, %p3191_p13 }
  0xa6   : > { %p3189_p11 = pneg %p3188_p7 }
  0xa8   : > { %p3194_p3 = pnand %p3193_p1, %p3189_p11 }
  0xaa   : > { %3197 = shalt.err (!%p3194_p3)
}
  0xab   : > { %2828 = dma.hbm_to_vmem [thread:$0]  (!%p3431_p0), %s650_s25, 16, %s652_s4, %s642_s1  }
  0xac   : > { %660 = sbr.rel (%p3407_p10) target bundleno = 2075 (0x81b), region = 80  ;;  %s3591_s23 = sand.u32 (!%p3407_p10), 1, %s3263_s19  }
  0xad   : > { %s2771_s26 = smul.u32 (!%p3407_p10), 384, %s3591_s23  ;;  %s663_s13 = scalar_lea.sflag (!%p3407_p10), [#allocation4], %s3591_s23 }
  0xaf   : > { %s3595_s15 = scalar_lea.vmem (!%p3407_p10), [#allocation3], %s2771_s26 }
  0xb1   : > { %3230 = dma.done.wait (%p3402_p8), %s663_s13, 6144  }
  0xb2   : > { %3232 = vsyncadd (%p3402_p8), %s663_s13, 4294961152  ;;  %s3973_s30 = sld [smem:[#allocation27_spill]]  ;;  %s2772_s17 = smul.u32 6, %s3591_s23 }
  0xb4   : > { %s3603_s2 = scalar_lea.vmem [#allocation5], %s2772_s17 }
  0xb8   : > { %s672_s29 = sand.u32 1, %s3973_s30  }
  0xb9   : > { %s673_s24 = scalar_lea.sflag [#allocation6], %s672_s29 }
  0xba   : > { %3234 = dma.done.wait (%p3402_p8), %s673_s24, 112  }
  0xbb   : > { %3236 = vsyncadd (%p3402_p8), %s673_s24, 4294967184  ;;  %s692_s20 = scalar_lea.sflag [#allocation9], %s672_s29 }
  0xbc   : > { %3238 = dma.done.wait (%p3402_p8), %s692_s20, 32  }
  0xbd   : > { %3240 = vsyncadd (%p3402_p8), %s692_s20, 4294967264  ;;  %s710_s1 = scalar_lea.sflag [#allocation12], %s672_s29 }
  0xbe   : > { %3242 = dma.done.wait (%p3402_p8), %s710_s1, 1040  }
  0xbf   : > { %3244 = vsyncadd (%p3402_p8), %s710_s1, 4294966256  ;;  %s2345_s27 = sshll.u32 %s3591_s23, 6  ;;  %s729_s0 = scalar_lea.sflag [#allocation15], %s672_s29 }
  0xc0   : > { %s3622_s28 = scalar_lea.vmem [#allocation13], %s2345_s27 }
  0xc1   : > { %3246 = dma.done.wait (%p3402_p8), %s729_s0, 16  }
  0xc2   : > { %3248 = vsyncadd (%p3402_p8), %s729_s0, 4294967280 }
  0xc3   : > { %3250 = dma.done.wait (%p135_p5), [#allocation15], 16  }
  0xc4   : > { %3252 = vsyncadd (%p135_p5), [#allocation15], 4294967280 }
  0xc5   : > { %3254 = dma.done.wait (%p135_p5), [#allocation18], 16  }
  0xc6   : > { %3256 = vsyncadd (%p135_p5), [#allocation18], 4294967280  ;;  %p830_p10 = scmp.lt.s32.totalorder %s3973_s30, 1  ;;  %s3974_s26 = sld [smem:[#allocation32_spill]] }
  0xc7   : > { %s3975_s24 = sld [smem:[#allocation33_spill]] }
  0xc8   : > { %s3639_s9 = scalar_select %p830_p10, %s3973_s30, 1 }
  0xc9   : > { %s3976_s22 = sld [smem:[#allocation36_spill]] }
  0xca   : > { %s2685_s1 = sshll.u32 %s3639_s9, 7  ;;  %s2686_s27 = sshll.u32 %s3639_s9, 6 }
  0xcb   : > { %s3977_s3 = sld [smem:[#allocation38_spill]] }
  0xcc   : > { %s832_s13 = scalar_lea.vmem %s3974_s26, %s3639_s9  ;;  %s3978_s26 = sld [smem:[#allocation31_spill]] (!%p2337_p9) }
  0xcd   : > { %s835_s20 = scalar_lea.vmem %s3975_s24, %s3639_s9  ;;  %849 = sbr.rel (%p2337_p9) target bundleno = 213 (0xd5), region = 124 }
  0xcf   : > { %s3654_s25 = scalar_lea.vmem %s3976_s22, %s2685_s1 }
  0xd1   : > { %s3659_s6 = scalar_lea.vmem %s3977_s3, %s2686_s27 }
  0xd2   : > { %v850_v0 = vld [vmem:[%s3978_s26] sm:$0xff]  ;;  %v851_v1 = vld [vmem:[%s3978_s26 + $0x8] sm:$0x3] }
  0xd3   : > { %852 = vst [vmem:[#allocation2] sm:$0xff] %v850_v0 }
  0xd4   : > { %853 = vst [vmem:[#allocation2 + $0x8] sm:$0x3] %v851_v1 }
  0xd5 PF: > { %vm981_vm0 = vcmask 1041408   ;;  %v2523_v5 = vld [vmem:[%s3595_s15 + $0x150] sm:$0xf]  ;;  %v2732_v6 = vld [vmem:[%s3595_s15 + $0x164] sm:$0xf0]  ;;  %v976_v18 = vlaneseq  ;;  %vm1407_vm8 = vcmask 1044480  }
  0xd6   : > { %v2729_v7 = vld [vmem:[%s3595_s15 + $0x154] sm:$0xf]  ;;  %v2524_v8 = vor.u32 %v2732_v6, %v2523_v5  ;;  %v2525_v9 = vld [vmem:[%s3595_s15 + $0x168] sm:$0xf0]  ;;  %v2499_v10 = vld [vmem:[%s3595_s15 + $0x120] sm:$0xf] }
  0xd7   : > { %v2726_v11 = vld [vmem:[%s3595_s15 + $0x134] sm:$0xf0]  ;;  %v2528_v12 = vor.u32 %v2729_v7, %v2525_v9  ;;  %v2723_v13 = vld [vmem:[%s3595_s15 + $0x124] sm:$0xf]  ;;  %v2501_v14 = vld [vmem:[%s3595_s15 + $0x138] sm:$0xf0] }
  0xd8   : > { %1288 = vmatpush.bf16.msra.mxu0 %v2524_v8  ;;  %v2500_v15 = vor.u32 %v2726_v11, %v2499_v10  ;;  %v2504_v16 = vor.u32 %v2723_v13, %v2501_v14  ;;  %v3684_v21 = vand.u32 127, %v976_v18  ;;  %v2475_v30 = vld [vmem:[%s3595_s15 + $0xf0] sm:$0xf]  ;;  %v2720_v31 = vld [vmem:[%s3595_s15 + $0x104] sm:$0xf0]  ;;  %vm1520_vm9 = vcmask 1042432  }
  0xd9   : > { %1302 = vmatpush.bf16.msra.mxu1 %v2528_v12  ;;  %v2717_v32 = vld [vmem:[%s3595_s15 + $0xf4] sm:$0xf]  ;;  %v2476_v33 = vor.u32 %v2720_v31, %v2475_v30  ;;  %v2477_v34 = vld [vmem:[%s3595_s15 + $0x108] sm:$0xf0]  ;;  %v2451_v36 = vld [vmem:[%s3595_s15 + $0xc0] sm:$0xf] }
  0xda   : > { %v3673_v4 = vld [vmem:[#allocation2] sm:$0xff]  ;;  %vm978_vm1 = vcmp.lt.s32.totalorder %v3684_v21, 32  ;;  %v2480_v35 = vor.u32 %v2717_v32, %v2477_v34  ;;  %v2714_v37 = vld [vmem:[%s3595_s15 + $0xd4] sm:$0xf0]  ;;  %v2711_v38 = vld [vmem:[%s3595_s15 + $0xc4] sm:$0xf] }
  0xdb   : > { %v3669_v2 = vld [vmem:[#allocation2 + $0x8] sm:$0x3]  ;;  %v2452_v39 = vor.u32 %v2714_v37, %v2451_v36  ;;  %v2453_v40 = vld [vmem:[%s3595_s15 + $0xd8] sm:$0xf0]  ;;  %v2733_v42 = vld [vmem:[%s3595_s15 + $0x16c] sm:$0xf0] }
  0xdc   : > { %v982_v3 = vsel %vm981_vm0, %v3669_v2, 0.0  ;;  %1289 = vmatpush.bf16.msra.mxu0 %v2500_v15  ;;  %v2531_v41 = vld [vmem:[%s3595_s15 + $0x158] sm:$0xf]  ;;  %v2456_v43 = vor.u32 %v2711_v38, %v2453_v40  ;;  %v2730_v45 = vld [vmem:[%s3595_s15 + $0x15c] sm:$0xf]  ;;  %vm1393_vm10 = vcmask 36864  }
  0xdd   : > { %983 = vadd.xlane.f32.xlu0 %v982_v3  ;;  %1303 = vmatpush.bf16.msra.mxu1 %v2504_v16  ;;  %v2532_v44 = vor.u32 %v2733_v42, %v2531_v41  ;;  %v2533_v46 = vld [vmem:[%s3595_s15 + $0x170] sm:$0xf0]  ;;  %v2427_v48 = vld [vmem:[%s3595_s15 + $0x90] sm:$0xf]  ;;  %v2708_v49 = vld [vmem:[%s3595_s15 + $0xa4] sm:$0xf0] }
  0xde   : > { %v2536_v47 = vor.u32 %v2730_v45, %v2533_v46  ;;  %v2705_v50 = vld [vmem:[%s3595_s15 + $0x94] sm:$0xf]  ;;  %v2428_v51 = vor.u32 %v2708_v49, %v2427_v48  ;;  %v2429_v52 = vld [vmem:[%s3595_s15 + $0xa8] sm:$0xf0]  ;;  %v2507_v53 = vld [vmem:[%s3595_s15 + $0x128] sm:$0xf] }
  0xdf   : > { %1316 = vmatpush.bf16.msra.mxu2 %v2532_v44  ;;  %v2727_v54 = vld [vmem:[%s3595_s15 + $0x13c] sm:$0xf0]  ;;  %v2432_v55 = vor.u32 %v2705_v50, %v2429_v52  ;;  %v2724_v57 = vld [vmem:[%s3595_s15 + $0x12c] sm:$0xf]  ;;  %v2509_v58 = vld [vmem:[%s3595_s15 + $0x140] sm:$0xf0] }
  0xe0   : > { %1290 = vmatpush.bf16.msra.mxu0 %v2476_v33  ;;  %1330 = vmatpush.bf16.msra.mxu3 %v2536_v47  ;;  %v2508_v56 = vor.u32 %v2727_v54, %v2507_v53  ;;  %v2512_v59 = vor.u32 %v2724_v57, %v2509_v58  ;;  %v2403_v60 = vld [vmem:[%s3595_s15 + $0x60] sm:$0xf]  ;;  %v2702_v61 = vld [vmem:[%s3595_s15 + $0x74] sm:$0xf0]  ;;  %v2699_v62 = vld [vmem:[%s3595_s15 + $0x64] sm:$0xf] }
  0xe1   : > { %1304 = vmatpush.bf16.msra.mxu1 %v2480_v35  ;;  %v2404_v63 = vor.u32 %v2702_v61, %v2403_v60  ;;  %v2405_v0 = vld [vmem:[%s3595_s15 + $0x78] sm:$0xf0]  ;;  %v2483_v1 = vld [vmem:[%s3595_s15 + $0xf8] sm:$0xf]  ;;  %v2721_v3 = vld [vmem:[%s3595_s15 + $0x10c] sm:$0xf0] }
  0xe2   : > { %v2408_v5 = vor.u32 %v2699_v62, %v2405_v0  ;;  %v2484_v6 = vor.u32 %v2721_v3, %v2483_v1  ;;  %v2718_v7 = vld [vmem:[%s3595_s15 + $0xfc] sm:$0xf]  ;;  %v2485_v8 = vld [vmem:[%s3595_s15 + $0x110] sm:$0xf0]  ;;  %v2379_v10 = vld [vmem:[%s3595_s15 + $0x30] sm:$0xf] }
  0xe3   : > { %1317 = vmatpush.bf16.msra.mxu2 %v2508_v56  ;;  %v2488_v9 = vor.u32 %v2718_v7, %v2485_v8  ;;  %v2696_v11 = vld [vmem:[%s3595_s15 + $0x44] sm:$0xf0]  ;;  %v2693_v12 = vld [vmem:[%s3595_s15 + $0x34] sm:$0xf]  ;;  %v2381_v14 = vld [vmem:[%s3595_s15 + $0x48] sm:$0xf0] }
  0xe4   : > { %1291 = vmatpush.bf16.msra.mxu0 %v2452_v39  ;;  %1331 = vmatpush.bf16.msra.mxu3 %v2512_v59  ;;  %v2380_v13 = vor.u32 %v2696_v11, %v2379_v10  ;;  %v2459_v15 = vld [vmem:[%s3595_s15 + $0xc8] sm:$0xf]  ;;  %v2715_v16 = vld [vmem:[%s3595_s15 + $0xdc] sm:$0xf0]  ;;  %v2435_v30 = vld [vmem:[%s3595_s15 + $0x98] sm:$0xf] }
  0xe5   : > { %979 = vadd.xlane.f32.xlu0 %v3673_v4  ;;  %1305 = vmatpush.bf16.msra.mxu1 %v2456_v43  ;;  %v2460_v18 = vor.u32 %v2715_v16, %v2459_v15  ;;  %v2709_v31 = vld [vmem:[%s3595_s15 + $0xac] sm:$0xf0]  ;;  %v2706_v34 = vld [vmem:[%s3595_s15 + $0x9c] sm:$0xf]  ;;  %v2437_v35 = vld [vmem:[%s3595_s15 + $0xb0] sm:$0xf0] }
  0xe6   : > { %v2436_v33 = vor.u32 %v2709_v31, %v2435_v30  ;;  %v2539_v36 = vld [vmem:[%s3595_s15 + $0x160] sm:$0xf]  ;;  %v2440_v37 = vor.u32 %v2706_v34, %v2437_v35  ;;  %v2734_v38 = vld [vmem:[%s3595_s15 + $0x174] sm:$0xf0]  ;;  %v2731_v39 = vld [vmem:[%s3595_s15 + $0x164] sm:$0xf] }
  0xe7   : > { %1318 = vmatpush.bf16.msra.mxu2 %v2484_v6  ;;  %v2540_v40 = vor.u32 %v2734_v38, %v2539_v36  ;;  %v2541_v41 = vld [vmem:[%s3595_s15 + $0x178] sm:$0xf0]  ;;  %v2411_v43 = vld [vmem:[%s3595_s15 + $0x68] sm:$0xf]  ;;  %v2703_v44 = vld [vmem:[%s3595_s15 + $0x7c] sm:$0xf0] }
  0xe8   : > { %1292 = vmatpush.bf16.msra.mxu0 %v2428_v51  ;;  %1332 = vmatpush.bf16.msra.mxu3 %v2488_v9  ;;  %v2544_v42 = vor.u32 %v2731_v39, %v2541_v41  ;;  %v2412_v45 = vor.u32 %v2703_v44, %v2411_v43  ;;  %v2700_v46 = vld [vmem:[%s3595_s15 + $0x6c] sm:$0xf]  ;;  %v2413_v47 = vld [vmem:[%s3595_s15 + $0x80] sm:$0xf0]  ;;  %v2515_v48 = vld [vmem:[%s3595_s15 + $0x130] sm:$0xf] }
  0xe9   : > { %1306 = vmatpush.bf16.msra.mxu1 %v2432_v55  ;;  %v2416_v49 = vor.u32 %v2700_v46, %v2413_v47  ;;  %v2728_v50 = vld [vmem:[%s3595_s15 + $0x144] sm:$0xf0]  ;;  %v2725_v51 = vld [vmem:[%s3595_s15 + $0x134] sm:$0xf]  ;;  %v2517_v52 = vld [vmem:[%s3595_s15 + $0x148] sm:$0xf0] }
  0xea   : > { %v2516_v53 = vor.u32 %v2728_v50, %v2515_v48  ;;  %v2520_v54 = vor.u32 %v2725_v51, %v2517_v52  ;;  %v2387_v55 = vld [vmem:[%s3595_s15 + $0x38] sm:$0xf]  ;;  %v2697_v56 = vld [vmem:[%s3595_s15 + $0x4c] sm:$0xf0]  ;;  %v2694_v57 = vld [vmem:[%s3595_s15 + $0x3c] sm:$0xf] }
  0xeb   : > { %1319 = vmatpush.bf16.msra.mxu2 %v2460_v18  ;;  %v2388_v58 = vor.u32 %v2697_v56, %v2387_v55  ;;  %v2389_v59 = vld [vmem:[%s3595_s15 + $0x50] sm:$0xf0]  ;;  %v2491_v60 = vld [vmem:[%s3595_s15 + $0x100] sm:$0xf]  ;;  %v2722_v61 = vld [vmem:[%s3595_s15 + $0x114] sm:$0xf0] }
  0xec   : > { %1293 = vmatpush.bf16.msra.mxu0 %v2404_v63  ;;  %v2392_v62 = vor.u32 %v2694_v57, %v2389_v59  ;;  %v2492_v63 = vor.u32 %v2722_v61, %v2491_v60  ;;  %v2719_v0 = vld [vmem:[%s3595_s15 + $0x104] sm:$0xf]  ;;  %v2493_v1 = vld [vmem:[%s3595_s15 + $0x118] sm:$0xf0]  ;;  %v2363_v7 = vld [vmem:[%s3595_s15 + $0x8] sm:$0xf] }
  0xed   : > { %1307 = vmatpush.bf16.msra.mxu1 %v2408_v5  ;;  %v2496_v5 = vor.u32 %v2719_v0, %v2493_v1  ;;  %v2691_v8 = vld [vmem:[%s3595_s15 + $0x1c] sm:$0xf0]  ;;  %v2688_v10 = vld [vmem:[%s3595_s15 + $0xc] sm:$0xf]  ;;  %v2365_v11 = vld [vmem:[%s3595_s15 + $0x20] sm:$0xf0] }
  0xee   : > { %v2364_v9 = vor.u32 %v2691_v8, %v2363_v7  ;;  %v2716_v15 = vld [vmem:[%s3595_s15 + $0xe4] sm:$0xf0]  ;;  %v2713_v16 = vld [vmem:[%s3595_s15 + $0xd4] sm:$0xf]  ;;  %v2469_v18 = vld [vmem:[%s3595_s15 + $0xe8] sm:$0xf0] }
  0xef   : > { %1320 = vmatpush.bf16.msra.mxu2 %v2436_v33  ;;  %v2419_v30 = vld [vmem:[%s3595_s15 + $0x70] sm:$0xf]  ;;  %v2704_v31 = vld [vmem:[%s3595_s15 + $0x84] sm:$0xf0]  ;;  %v2421_v34 = vld [vmem:[%s3595_s15 + $0x88] sm:$0xf0] }
  0xf0   : > { %1294 = vmatpush.bf16.msra.mxu0 %v2380_v13  ;;  %v2420_v35 = vor.u32 %v2704_v31, %v2419_v30  ;;  %v2395_v39 = vld [vmem:[%s3595_s15 + $0x40] sm:$0xf]  ;;  %v2397_v43 = vld [vmem:[%s3595_s15 + $0x58] sm:$0xf0]  ;;  %v2371_v47 = vld [vmem:[%s3595_s15 + $0x10] sm:$0xf] }
  0xf1   : > { %v2692_v48 = vld [vmem:[%s3595_s15 + $0x24] sm:$0xf0]  ;;  %v2689_v50 = vld [vmem:[%s3595_s15 + $0x14] sm:$0xf]  ;;  %v2373_v51 = vld [vmem:[%s3595_s15 + $0x28] sm:$0xf0] }
  0xf2   : > { %v2376_v55 = vor.u32 %v2689_v50, %v2373_v51  ;;  %vm1403_vm11 = vcmask 39936   ;;  %s3984_s16 = scalar_lea.vmem [#allocation11], %s3591_s23  ;;  %s3986_s9 = sld [smem:[#allocation27_spill]] }
  0xf3   : > { %1321 = vmatpush.bf16.msra.mxu2 %v2412_v45 }
  0xf7   : > { %1322 = vmatpush.bf16.msra.mxu2 %v2388_v58 }
  0xf8   : > { %p2681_p5 = scmp.ne.s32.totalorder %s3986_s9, 1 }
  0xf9   : > { %s3987_s24 = sld [smem:[#allocation40_spill]] (!%p2681_p5) }
  0xfb   : > { %1323 = vmatpush.bf16.msra.mxu2 %v2364_v9 }
 0x150   : > { %v984_v17 = vpop.xlane.xlu0 %983 }
 0x151   : > { %v986_v19 = vmul.f32 0.03125, %v984_v17  ;;  %v2384_v17 = vor.u32 %v2693_v12, %v2381_v14  ;;  %v2467_v12 = vld [vmem:[%s3595_s15 + $0xd0] sm:$0xf]  ;;  %v2368_v14 = vor.u32 %v2688_v10, %v2365_v11  ;;  %v904_v10 = vld [vmem:[%s3603_s2] sm:$0x3f]  ;;  %s3981_s2 = scalar_lea.vmem [#allocation7], %s3591_s23 }
 0x153   : > { %v988_v24 = vsub.f32 %v3669_v2, %v986_v19  ;;  %v2712_v19 = vld [vmem:[%s3595_s15 + $0xcc] sm:$0xf]  ;;  %1308 = vmatpush.bf16.msra.mxu1 %v2384_v17  ;;  %v2468_v17 = vor.u32 %v2716_v15, %v2467_v12  ;;  %v1039_v15 = vperm.slane %v904_v10, 3 }
 0x155   : > { %v3697_v27 = vsel %vm978_vm1, %v988_v24, 0.0  ;;  %v2690_v24 = vld [vmem:[%s3595_s15 + $0x14] sm:$0xf0] }
 0x156   : > { %v992_v28 = vmul.f32 %v3697_v27, %v3697_v27 }
 0x158   : > { %v980_v20 = vpop.xlane.xlu0 %979  ;;  %v995_v29 = vsel %vm981_vm0, %v992_v28, 0.0 }
 0x159   : > { %v985_v22 = vmul.f32 0.03125, %v980_v20  ;;  %v2461_v20 = vld [vmem:[%s3595_s15 + $0xe0] sm:$0xf0] }
 0x15b   : > { %v987_v23 = vsub.f32 %v3673_v4, %v985_v22  ;;  %v2464_v22 = vor.u32 %v2712_v19, %v2461_v20  ;;  %v2472_v19 = vor.u32 %v2713_v16, %v2469_v18  ;;  %v2443_v20 = vld [vmem:[%s3595_s15 + $0xa0] sm:$0xf] }
 0x15d   : > { %v3691_v25 = vsel %vm978_vm1, %v987_v23, 0.0  ;;  %v2355_v23 = vld [vmem:[%s3595_s15] sm:$0xf]  ;;  %1333 = vmatpush.bf16.msra.mxu3 %v2464_v22  ;;  %v2710_v22 = vld [vmem:[%s3595_s15 + $0xb4] sm:$0xf0] }
 0x15e   : > { %v991_v26 = vmul.f32 %v3691_v25, %v3691_v25  ;;  %v2356_v28 = vor.u32 %v2690_v24, %v2355_v23  ;;  %v2707_v23 = vld [vmem:[%s3595_s15 + $0xa4] sm:$0xf]  ;;  %v2444_v24 = vor.u32 %v2710_v22, %v2443_v20 }
 0x160   : > { %993 = vadd.xlane.f32.xlu1 %v991_v26  ;;  %v2687_v26 = vld [vmem:[%s3595_s15 + $0x4] sm:$0xf]  ;;  %1295 = vmatpush.bf16.msra.mxu0 %v2356_v28 }
 0x161   : > { %1334 = vmatpush.bf16.msra.mxu3 %v2440_v37 }
 0x164   : > { %1344 = vmatpush.bf16.msrb.mxu0 %v2540_v40  ;;  %v2698_v40 = vld [vmem:[%s3595_s15 + $0x54] sm:$0xf0] }
 0x165   : > { %1335 = vmatpush.bf16.msra.mxu3 %v2416_v49  ;;  %v2396_v45 = vor.u32 %v2698_v40, %v2395_v39 }
 0x168   : > { %996 = vadd.xlane.f32.xlu1 %v995_v29  ;;  %v2357_v29 = vld [vmem:[%s3595_s15 + $0x18] sm:$0xf0]  ;;  %1345 = vmatpush.bf16.msrb.mxu0 %v2516_v53  ;;  %v2372_v53 = vor.u32 %v2692_v48, %v2371_v47 }
 0x169   : > { %v2360_v32 = vor.u32 %v2687_v26, %v2357_v29  ;;  %1336 = vmatpush.bf16.msra.mxu3 %v2392_v62  ;;  %v2445_v26 = vld [vmem:[%s3595_s15 + $0xb8] sm:$0xf0] }
 0x16a   : > { %v2448_v29 = vor.u32 %v2707_v23, %v2445_v26  ;;  %v1040_v26 = vperm.slane %v904_v10, 4 }
 0x16b   : > { %1309 = vmatpush.bf16.msra.mxu1 %v2360_v32  ;;  %v2701_v32 = vld [vmem:[%s3595_s15 + $0x74] sm:$0xf] }
 0x16c   : > { %1346 = vmatpush.bf16.msrb.mxu0 %v2492_v63  ;;  %v2424_v38 = vor.u32 %v2701_v32, %v2421_v34  ;;  %v2872_v63 = vld [vmem:[%s832_s13] ss:$0 sm:$0xff] }
 0x16d   : > { %1337 = vmatpush.bf16.msra.mxu3 %v2368_v14  ;;  %v1038_v14 = vperm.slane %v904_v10, 2 }
 0x16f   : > { %1358 = vmatpush.bf16.msrb.mxu1 %v2544_v42  ;;  %v2695_v42 = vld [vmem:[%s3595_s15 + $0x44] sm:$0xf] }
 0x170   : > { %1347 = vmatpush.bf16.msrb.mxu0 %v2468_v17  ;;  %v2400_v46 = vor.u32 %v2695_v42, %v2397_v43 }
 0x173   : > { %1359 = vmatpush.bf16.msrb.mxu1 %v2520_v54 }
 0x174   : > { %1348 = vmatpush.bf16.msrb.mxu0 %v2444_v24  ;;  %v1037_v24 = vperm.slane %v904_v10, 1 }
 0x177   : > { %1360 = vmatpush.bf16.msrb.mxu1 %v2496_v5  ;;  %v2873_v5 = vld [vmem:[%s835_s20] ss:$0 sm:$0xff] }
 0x178   : > { %1349 = vmatpush.bf16.msrb.mxu0 %v2420_v35 }
 0x17b   : > { %1361 = vmatpush.bf16.msrb.mxu1 %v2472_v19 }
 0x17c   : > { %1350 = vmatpush.bf16.msrb.mxu0 %v2396_v45 }
 0x17f   : > { %1362 = vmatpush.bf16.msrb.mxu1 %v2448_v29 }
 0x180   : > { %1351 = vmatpush.bf16.msrb.mxu0 %v2372_v53 }
 0x183   : > { %1363 = vmatpush.bf16.msrb.mxu1 %v2424_v38 }
 0x187   : > { %1364 = vmatpush.bf16.msrb.mxu1 %v2400_v46 }
 0x18b   : > { %1365 = vmatpush.bf16.msrb.mxu1 %v2376_v55 }
 0x1d3   : > { %v994_v3 = vpop.xlane.xlu1 %993 }
 0x1d4   : > { %v998_v6 = vmul.f32 0.03125, %v994_v3 }
 0x1d6   : > { %v1000_v13 = vadd.f32 1e-05, %v998_v6 }
 0x1d8   : > { %2879 = vrsqrt.f32 %v1000_v13  ;;  %vm1008_vm3 = vweird.f32 %v1000_v13 }
 0x1db   : > { %v997_v28 = vpop.xlane.xlu1 %996 }
 0x1dc   : > { %v999_v33 = vmul.f32 0.03125, %v997_v28  ;;  %v1041_v28 = vperm.slane %v904_v10, 5 }
 0x1de   : > { %v2880_v36 = vpop.eup %2879  ;;  %v1001_v37 = vadd.f32 1e-05, %v999_v33 }
 0x1df   : > { %v1003_v41 = vmul.f32 %v2880_v36, %v1000_v13  ;;  %vm1009_vm2 = vweird.f32 %v2880_v36  ;;  %v1036_v13 = vperm.slane %v904_v10, 0 }
 0x1e0   : > { %2881 = vrsqrt.f32 %v1001_v37  ;;  %vm1010_vm4 = vmor %vm1008_vm3, %vm1009_vm2  ;;  %vm1018_vm6 = vweird.f32 %v1001_v37 }
 0x1e1   : > { %v1004_v44 = vmul.f32 %v2880_v36, %v1003_v41 }
 0x1e3   : > { %v1005_v49 = vmul.f32 0.5, %v1004_v44 }
 0x1e5   : > { %v1006_v52 = vsub.f32 1.5, %v1005_v49 }
 0x1e6   : > { %v2882_v54 = vpop.eup %2881 }
 0x1e7   : > { %v1007_v56 = vmul.f32 %v2880_v36, %v1006_v52  ;;  %v1013_v57 = vmul.f32 %v2882_v54, %v1001_v37  ;;  %vm1019_vm5 = vweird.f32 %v2882_v54 }
 0x1e8   : > { %vm1020_vm7 = vmor %vm1018_vm6, %vm1019_vm5 }
 0x1e9   : > { %v1014_v58 = vmul.f32 %v2882_v54, %v1013_v57  ;;  %v1011_v59 = vsel %vm1010_vm4, %v2880_v36, %v1007_v56 }
 0x1ea   : > { %v1022_v62 = vmul.f32 %v1011_v59, %v3691_v25 }
 0x1eb   : > { %v1015_v60 = vmul.f32 0.5, %v1014_v58 }
 0x1ec   : > { %v1027_v3 = vmul.f32 %v2872_v63, %v1022_v62 }
 0x1ed   : > { %v1016_v61 = vsub.f32 1.5, %v1015_v60 }
 0x1ee   : > { %v1032_v25 = vadd.f32 %v2873_v5, %v1027_v3 }
 0x1ef   : > { %v1017_v0 = vmul.f32 %v2882_v54, %v1016_v61 }
 0x1f1   : > { %v1021_v1 = vsel %vm1020_vm7, %v2882_v54, %v1017_v0 }
 0x1f2   : > { %v1023_v6 = vmul.f32 %v1021_v1, %v3697_v27 }
 0x1f4   : > { %v1028_v7 = vmul.f32 %v2872_v63, %v1023_v6 }
 0x1f6   : > { %v1033_v8 = vadd.f32 %v2873_v5, %v1028_v7 }
 0x1f8   : > { %v1034_v9 = vpack.c.bf16 %v1033_v8, %v1032_v25 }
 0x1fa   : > { %1296 = vmatmul.bf16.vlgmr.msra.gmra.mxu0 %v1034_v9  ;;  %1310 = vmatmul.bf16.vlgmr.msra.gmra.mxu1 %v1034_v9 }
 0x1fb   : > { %1324 = vmatmul.bf16.vlgmr.msra.gmra.mxu2 %v1034_v9  ;;  %1338 = vmatmul.bf16.vlgmr.msra.gmra.mxu3 %v1034_v9 }
 0x20a   : > { %1352 = vmatmul.bf16.vlgmr.msrb.gmra.mxu0 %v1034_v9  ;;  %1366 = vmatmul.bf16.vlgmr.msrb.gmra.mxu1 %v1034_v9 }
 0x277   : > { %v1297_v11 = vpop.f32.mrf.mxu0  ;;  %v1311_v12 = vpop.f32.mrf.mxu1 }
 0x278   : > { %v1298_v16 = vadd.f32 %v1297_v11, %v1036_v13  ;;  %v1312_v29 = vadd.f32 %v1311_v12, %v1037_v24 }
 0x27a   : > { %v1372_v23 = vmul.f32 0.25, %v1298_v16  ;;  %v1446_v43 = vmul.f32 0.25, %v1312_v29 }
 0x27c   : > { %v1521_v53 = vrot.slane %v1372_v23, 5  ;;  %v1607_v63 = vrot.slane %v1446_v43, 5 }
 0x27e   : > { %v1325_v17 = vpop.f32.mrf.mxu2  ;;  %v1339_v18 = vpop.f32.mrf.mxu3 }
 0x27f   : > { %v1326_v27 = vadd.f32 %v1325_v17, %v1038_v14  ;;  %v1340_v19 = vadd.f32 %v1339_v18, %v1039_v15  ;;  %v1299_v20 = vpop.f32.mrf.mxu0  ;;  %v1313_v22 = vpop.f32.mrf.mxu1 }
 0x280   : > { %v1300_v32 = vadd.f32 %v1299_v20, %v1036_v13  ;;  %v1314_v48 = vadd.f32 %v1313_v22, %v1037_v24 }
 0x281   : > { %1388 = vmatpush.xpose.msrb.mxu2 %v1326_v27  ;;  %v1527_v39 = vrot.slane %v1326_v27, 5  ;;  %v1613_v40 = vrot.slane %v1340_v19, 5 }
 0x282   : > { %v1517_v44 = vmul.f32 0.25, %v1300_v32  ;;  %v1604_v58 = vmul.f32 0.25, %v1314_v48  ;;  %v2742_v32 = vld [vmem:[%s3654_s25 + $0x38] sm:$0xff]  ;;  %v2744_v48 = vld [vmem:[%s3654_s25 + $0x48] sm:$0xff] }
 0x283   : > { %1796 = vmatpush.bf16.msra.mxu0 %v2742_v32 }
 0x284   : > { %1389 = vmatmul.f32.vlgmr.msrb.gmra.mxu2 %v1372_v23  ;;  %v1522_v47 = vrot.slane %v1517_v44, 5  ;;  %v1608_v62 = vrot.slane %v1604_v58, 5  ;;  %v2746_v44 = vld [vmem:[%s3654_s25 + $0x58] sm:$0xff] }
 0x285   : > { %1462 = vmatpush.xpose.msra.mxu2 %v1340_v19 }
 0x286   : > { %v1327_v30 = vpop.f32.mrf.mxu2  ;;  %v1341_v31 = vpop.f32.mrf.mxu3  ;;  %v1523_v59 = vsel %vm1520_vm9, %v1521_v53, %v1522_v47  ;;  %v1609_v0 = vsel %vm1520_vm9, %v1607_v63, %v1608_v62 }
 0x287   : > { %v1328_v33 = vadd.f32 %v1327_v30, %v1038_v14  ;;  %v1342_v34 = vadd.f32 %v1341_v31, %v1039_v15  ;;  %v1353_v35 = vpop.f32.mrf.mxu0  ;;  %v1367_v36 = vpop.f32.mrf.mxu1 }
 0x288   : > { %v1354_v37 = vadd.f32 %v1353_v35, %v1040_v26  ;;  %v1368_v38 = vadd.f32 %v1367_v36, %v1041_v28  ;;  %v2750_v35 = vld [vmem:[%s3654_s25 + $0x78] sm:$0xff]  ;;  %v2739_v36 = vld [vmem:[%s3654_s25 + $0x20] sm:$0xff] }
 0x289   : > { %v1528_v41 = vrot.slane %v1328_v33, 5  ;;  %v1614_v42 = vrot.slane %v1342_v34, 5  ;;  %v2741_v33 = vld [vmem:[%s3654_s25 + $0x30] sm:$0xff]  ;;  %v2740_v34 = vld [vmem:[%s3654_s25 + $0x28] sm:$0xff]  ;;  %1810 = vmatpush.bf16.msra.mxu1 %v2750_v35 }
 0x28a   : > { %2545 = vmatpush.msk.msrb.mxu3 %vm1407_vm8, %v1354_v37  ;;  %v1561_v54 = vrot.slane %v1354_v37, 5  ;;  %v1647_v55 = vrot.slane %v1368_v38, 5  ;;  %1797 = vmatpush.bf16.msra.mxu0 %v2741_v33  ;;  %v2749_v37 = vld [vmem:[%s3654_s25 + $0x70] sm:$0xff] }
 0x28b   : > { %v1529_v45 = vsel %vm1520_vm9, %v1527_v39, %v1528_v41  ;;  %v1615_v46 = vsel %vm1520_vm9, %v1613_v40, %v1614_v42  ;;  %v2748_v39 = vld [vmem:[%s3654_s25 + $0x68] sm:$0xff]  ;;  %v2737_v40 = vld [vmem:[%s3654_s25 + $0x10] sm:$0xff]  ;;  %v2747_v41 = vld [vmem:[%s3654_s25 + $0x60] sm:$0xff] }
 0x28c   : > { %2547 = vmatpush.msk.msra.mxu3 %vm1407_vm8, %v1368_v38  ;;  %1463 = vmatmul.f32.vlgmr.msra.gmra.mxu2 %v1446_v43  ;;  %v2738_v38 = vld [vmem:[%s3654_s25 + $0x18] sm:$0xff]  ;;  %v2736_v43 = vld [vmem:[%s3654_s25 + $0x8] sm:$0xff] }
 0x28d   : > { %1546 = vmatpush.xpose.msrb.mxu2 %v1529_v45  ;;  %1811 = vmatpush.bf16.msra.mxu1 %v2749_v37  ;;  %v2735_v45 = vld [vmem:[%s3654_s25] sm:$0xff] }
 0x28e   : > { %1798 = vmatpush.bf16.msra.mxu0 %v2740_v34 }
 0x28f   : > { %v1355_v49 = vpop.f32.mrf.mxu0  ;;  %v1369_v50 = vpop.f32.mrf.mxu1 }
 0x290   : > { %v1356_v51 = vadd.f32 %v1355_v49, %v1040_v26  ;;  %v1370_v52 = vadd.f32 %v1369_v50, %v1041_v28  ;;  %v2743_v50 = vld [vmem:[%s3654_s25 + $0x40] sm:$0xff] }
 0x291   : > { %1632 = vmatpush.xpose.msra.mxu2 %v1615_v46  ;;  %1812 = vmatpush.bf16.msra.mxu1 %v2748_v39  ;;  %v2745_v46 = vld [vmem:[%s3654_s25 + $0x50] sm:$0xff]  ;;  %s3983_s25 = scalar_lea.vmem [#allocation10], %s3591_s23 }
 0x292   : > { %v1562_v56 = vrot.slane %v1356_v51, 5  ;;  %v1648_v57 = vrot.slane %v1370_v52, 5  ;;  %1799 = vmatpush.bf16.msra.mxu0 %v2739_v36 }
 0x294   : > { %v1563_v60 = vsel %vm1520_vm9, %v1561_v54, %v1562_v56  ;;  %v1649_v61 = vsel %vm1520_vm9, %v1647_v55, %v1648_v57  ;;  %1547 = vmatmul.f32.vlgmr.msrb.gmra.mxu2 %v1523_v59 }
 0x295   : > { %1813 = vmatpush.bf16.msra.mxu1 %v2747_v41 }
 0x296   : > { %1800 = vmatpush.bf16.msra.mxu0 %v2738_v38 }
 0x299   : > { %1814 = vmatpush.bf16.msra.mxu1 %v2746_v44 }
 0x29a   : > { %1801 = vmatpush.bf16.msra.mxu0 %v2737_v40 }
 0x29c   : > { %1633 = vmatmul.f32.vlgmr.msra.gmra.mxu2 %v1609_v0 }
 0x29d   : > { %1815 = vmatpush.bf16.msra.mxu1 %v2745_v46 }
 0x29e   : > { %1802 = vmatpush.bf16.msra.mxu0 %v2736_v43 }
 0x2a1   : > { %1816 = vmatpush.bf16.msra.mxu1 %v2744_v48  ;;  %v2874_v48 = vld [vmem:[%s3981_s2] ss:$0 sm:$0xff] }
 0x2a2   : > { %1803 = vmatpush.bf16.msra.mxu0 %v2735_v45 }
 0x2a5   : > { %1817 = vmatpush.bf16.msra.mxu1 %v2743_v50 }
 0x307   : > { %v1390_v1 = vpop.f32.mrf.mxu2 }
 0x308   : > { %v1394_v3 = vsel %vm1393_vm10, %v1390_v1, -inf }
 0x309   : > { %1395 = vmax.xlane.f32.xlu2 %v1394_v3 }
 0x30f   : > { %v1464_v5 = vpop.f32.mrf.mxu2 }
 0x310   : > { %v1467_v6 = vsel %vm1393_vm10, %v1464_v5, -inf }
 0x311   : > { %1468 = vmax.xlane.f32.xlu2 %v1467_v6 }
 0x317   : > { %v1548_v7 = vpop.f32.mrf.mxu2 }
 0x318   : > { %v1551_v25 = vsel %vm1393_vm10, %v1548_v7, -inf }
 0x319   : > { %1552 = vmax.xlane.f32.xlu0 %v1551_v25 }
 0x31f   : > { %v1634_v8 = vpop.f32.mrf.mxu2 }
 0x320   : > { %v1637_v9 = vsel %vm1393_vm10, %v1634_v8, -inf }
 0x321   : > { %1638 = vmax.xlane.f32.xlu1 %v1637_v9 }
 0x37c   : > { %v1396_v10 = vpop.xlane.xlu2 %1395 }
 0x37d   : > { %v1397_v11 = vsub.f32 %v1390_v1, %v1396_v10 }
 0x37f   : > { %v1398_v12 = vmul.f32 1.442695, %v1397_v11 }
 0x381   : > { %2883 = vpow2.f32 %v1398_v12 }
 0x384   : > { %v1469_v13 = vpop.xlane.xlu2 %1468 }
 0x385   : > { %v1470_v14 = vsub.f32 %v1464_v5, %v1469_v13 }
 0x387   : > { %v2884_v15 = vpop.eup %2883  ;;  %v1471_v16 = vmul.f32 1.442695, %v1470_v14 }
 0x388   : > { %2546 = vmatmul.msk.f32.vlgmr.msrb.gmra.mxu3 %vm1403_vm11, %v2884_v15  ;;  %v1400_v17 = vsel %vm1393_vm10, %v2884_v15, 0.0 }
 0x389   : > { %2885 = vpow2.f32 %v1471_v16  ;;  %2549 = vmatpush.msk.msrb.mxu3 %vm1407_vm8, %v1563_v60  ;;  %1401 = vadd.xlane.f32.xlu1 %v1400_v17 }
 0x38c   : > { %v1553_v18 = vpop.xlane.xlu0 %1552 }
 0x38d   : > { %v1554_v27 = vsub.f32 %v1548_v7, %v1553_v18 }
 0x38f   : > { %v2886_v19 = vpop.eup %2885  ;;  %v1555_v20 = vmul.f32 1.442695, %v1554_v27 }
 0x390   : > { %2548 = vmatmul.msk.f32.vlgmr.msra.gmra.mxu3 %vm1403_vm11, %v2886_v19  ;;  %v1473_v31 = vsel %vm1393_vm10, %v2886_v19, 0.0 }
 0x391   : > { %2887 = vpow2.f32 %v1555_v20  ;;  %2551 = vmatpush.msk.msra.mxu3 %vm1407_vm8, %v1649_v61 }
 0x394   : > { %v1639_v22 = vpop.xlane.xlu1 %1638 }
 0x395   : > { %v1640_v23 = vsub.f32 %v1634_v8, %v1639_v22 }
 0x397   : > { %v2888_v24 = vpop.eup %2887  ;;  %v1641_v26 = vmul.f32 1.442695, %v1640_v23 }
 0x398   : > { %2550 = vmatmul.msk.f32.vlgmr.msrb.gmra.mxu3 %vm1403_vm11, %v2888_v24  ;;  %v1557_v28 = vsel %vm1393_vm10, %v2888_v24, 0.0 }
 0x399   : > { %2889 = vpow2.f32 %v1641_v26  ;;  %1558 = vadd.xlane.f32.xlu2 %v1557_v28 }
 0x39f   : > { %v2890_v29 = vpop.eup %2889 }
 0x3a0   : > { %2552 = vmatmul.msk.f32.vlgmr.msra.gmra.mxu3 %vm1403_vm11, %v2890_v29  ;;  %v1643_v30 = vsel %vm1393_vm10, %v2890_v29, 0.0 }
 0x3a1   : > { %1644 = vadd.xlane.f32.xlu0 %v1643_v30  ;;  %1474 = vadd.xlane.f32.xlu2 %v1473_v31 }
 0x3fc   : > { %v1402_v42 = vpop.xlane.xlu1 %1401 }
 0x3fd   : > { %2891 = vrcp.f32 %v1402_v42  ;;  %v1442_v61 = vand.u32 2147483648, %v1402_v42  ;;  %vm1436_vm13 = vweird.f32 %v1402_v42  ;;  %v1440_v63 = vand.u32 2147483647, %v1402_v42 }
 0x3ff   : > { %v1443_v6 = vor.u32 1.1754944e-38, %v1442_v61  ;;  %vm1441_vm3 = vcmp.eq.f32.partialorder %v1440_v63, 8.507059e+37 }
 0x403   : > { %v2892_v47 = vpop.eup %2891 }
 0x404   : > { %v1432_v49 = vmul.f32 %v2892_v47, %v1402_v42  ;;  %vm1437_vm12 = vweird.f32 %v2892_v47 }
 0x405   : > { %vm1438_vm14 = vmor %vm1436_vm13, %vm1437_vm12 }
 0x406   : > { %v1433_v53 = vsub.f32 1.0, %v1432_v49 }
 0x408   : > { %v1434_v54 = vmul.f32 %v2892_v47, %v1433_v53 }
 0x40a   : > { %v1435_v60 = vadd.f32 %v2892_v47, %v1434_v54 }
 0x40b   : > { %v1428_v51 = vpop.f32.mrf.mxu3 }
 0x40c   : > { %v1559_v52 = vpop.xlane.xlu2 %1558  ;;  %v1439_v5 = vsel %vm1438_vm14, %v2892_v47, %v1435_v60 }
 0x40d   : > { %2893 = vrcp.f32 %v1559_v52  ;;  %v1600_v0 = vand.u32 2147483648, %v1559_v52  ;;  %v1598_v3 = vand.u32 2147483647, %v1559_v52  ;;  %vm1594_vm2 = vweird.f32 %v1559_v52 }
 0x40e   : > { %v1444_v11 = vsel %vm1441_vm3, %v1443_v6, %v1439_v5  ;;  %v2757_v5 = vld [vmem:[%s3659_s6 + $0x30] sm:$0xff]  ;;  %v2756_v6 = vld [vmem:[%s3659_s6 + $0x28] sm:$0xff] }
 0x40f   : > { %v1601_v9 = vor.u32 1.1754944e-38, %v1600_v0  ;;  %vm1599_vm5 = vcmp.eq.f32.partialorder %v1598_v3, 8.507059e+37  ;;  %v1445_v18 = vmul.f32 %v1444_v11, %v1428_v51  ;;  %v2758_v3 = vld [vmem:[%s3659_s6 + $0x38] sm:$0xff]  ;;  %v2752_v11 = vld [vmem:[%s3659_s6 + $0x8] sm:$0xff] }
 0x410   : > { %1937 = vmatpush.bf16.msrb.mxu2 %v2758_v3 }
 0x413   : > { %v2894_v55 = vpop.eup %2893  ;;  %v3841_v56 = vpop.f32.mrf.mxu3 }
 0x414   : > { %v1590_v57 = vmul.f32 %v2894_v55, %v1559_v52  ;;  %v1645_v58 = vpop.xlane.xlu0 %1644  ;;  %v1475_v59 = vpop.xlane.xlu2 %1474  ;;  %vm1595_vm15 = vweird.f32 %v2894_v55  ;;  %1938 = vmatpush.bf16.msrb.mxu2 %v2757_v5 }
 0x415   : > { %2895 = vrcp.f32 %v1645_v58  ;;  %vm1596_vm4 = vmor %vm1594_vm2, %vm1595_vm15  ;;  %v1513_v19 = vand.u32 2147483648, %v1475_v59  ;;  %v1686_v20 = vand.u32 2147483648, %v1645_v58  ;;  %v1684_v24 = vand.u32 2147483647, %v1645_v58 }
 0x416   : > { %v1591_v62 = vsub.f32 1.0, %v1590_v57  ;;  %2897 = vrcp.f32 %v1475_v59  ;;  %v1511_v28 = vand.u32 2147483647, %v1475_v59  ;;  %vm1680_vm9 = vweird.f32 %v1645_v58 }
 0x417   : > { %vm1507_vm10 = vweird.f32 %v1475_v59  ;;  %v1687_v33 = vor.u32 1.1754944e-38, %v1686_v20  ;;  %v1514_v34 = vor.u32 1.1754944e-38, %v1513_v19  ;;  %vm1685_vm13 = vcmp.eq.f32.partialorder %v1684_v24, 8.507059e+37 }
 0x418   : > { %v1592_v1 = vmul.f32 %v2894_v55, %v1591_v62  ;;  %vm1512_vm14 = vcmp.eq.f32.partialorder %v1511_v28, 8.507059e+37  ;;  %1939 = vmatpush.bf16.msrb.mxu2 %v2756_v6 }
 0x41a   : > { %v1593_v7 = vadd.f32 %v2894_v55, %v1592_v1 }
 0x41b   : > { %v2896_v25 = vpop.eup %2895  ;;  %v1586_v8 = vpop.f32.mrf.mxu3 }
 0x41c   : > { %v2898_v10 = vpop.eup %2897  ;;  %v1676_v12 = vmul.f32 %v2896_v25, %v1645_v58  ;;  %v1597_v13 = vsel %vm1596_vm4, %v2894_v55, %v1593_v7  ;;  %vm1681_vm6 = vweird.f32 %v2896_v25  ;;  %v2755_v7 = vld [vmem:[%s3659_s6 + $0x20] sm:$0xff] }
 0x41d   : > { %v1503_v14 = vmul.f32 %v2898_v10, %v1475_v59  ;;  %v1602_v15 = vsel %vm1599_vm5, %v1601_v9, %v1597_v13  ;;  %vm1508_vm7 = vweird.f32 %v2898_v10  ;;  %vm1682_vm11 = vmor %vm1680_vm9, %vm1681_vm6  ;;  %1940 = vmatpush.bf16.msrb.mxu2 %v2755_v7  ;;  %v2751_v13 = vld [vmem:[%s3659_s6] sm:$0xff] }
 0x41e   : > { %v1677_v16 = vsub.f32 1.0, %v1676_v12  ;;  %v1603_v17 = vmul.f32 %v1602_v15, %v1586_v8  ;;  %vm1509_vm12 = vmor %vm1507_vm10, %vm1508_vm7  ;;  %v2753_v8 = vld [vmem:[%s3659_s6 + $0x10] sm:$0xff] }
 0x41f   : > { %v1504_v27 = vsub.f32 1.0, %v1503_v14 }
 0x420   : > { %v1692_v22 = vrot.slane %v1603_v17, 3  ;;  %v1678_v23 = vmul.f32 %v2896_v25, %v1677_v16 }
 0x421   : > { %v1505_v26 = vmul.f32 %v2898_v10, %v1504_v27 }
 0x422   : > { %v1696_v29 = vsel %vm1407_vm8, %v1445_v18, %v1692_v22  ;;  %v1679_v30 = vadd.f32 %v2896_v25, %v1678_v23 }
 0x423   : > { %v1506_v31 = vadd.f32 %v2898_v10, %v1505_v26  ;;  %v1698_v32 = vpack.c.bf16 %v1692_v22, %v1696_v29  ;;  %v1672_v37 = vpop.f32.mrf.mxu3 }
 0x424   : > { %v1683_v35 = vsel %vm1682_vm11, %v2896_v25, %v1679_v30  ;;  %v2754_v25 = vld [vmem:[%s3659_s6 + $0x18] sm:$0xff]  ;;  %s3982_s6 = scalar_lea.vmem [#allocation8], %s3591_s23 }
 0x425   : > { %v1510_v36 = vsel %vm1509_vm12, %v2898_v10, %v1506_v31  ;;  %v1688_v38 = vsel %vm1685_vm13, %v1687_v33, %v1683_v35  ;;  %1804 = vmatmul.bf16.vlgmr.msra.gmra.mxu0 %v1698_v32  ;;  %1941 = vmatpush.bf16.msrb.mxu2 %v2754_v25  ;;  %v2875_v31 = vld [vmem:[%s3982_s6] ss:$0 sm:$0xff] }
 0x426   : > { %v1515_v39 = vsel %vm1512_vm14, %v1514_v34, %v1510_v36  ;;  %v1689_v40 = vmul.f32 %v1688_v38, %v1672_v37  ;;  %v2876_v37 = vld [vmem:[%s3983_s25] ss:$0 sm:$0xff] }
 0x427   : > { %v1516_v41 = vmul.f32 %v1515_v39, %v3841_v56 }
 0x428   : > { %v1693_v42 = vrot.slane %v1689_v40, 3 }
 0x429   : > { %1942 = vmatpush.bf16.msrb.mxu2 %v2753_v8 }
 0x42a   : > { %v1697_v43 = vsel %vm1407_vm8, %v1516_v41, %v1693_v42 }
 0x42b   : > { %v1699_v44 = vpack.c.bf16 %v1693_v42, %v1697_v43  ;;  %v2766_v42 = vld [vmem:[%s3622_s28 + $0x38] sm:$0xff]  ;;  %v2765_v43 = vld [vmem:[%s3622_s28 + $0x30] sm:$0xff] }
 0x42c   : > { %2018 = vmatpush.bf16.msrb.mxu3 %v2766_v42 }
 0x42d   : > { %1818 = vmatmul.bf16.vlgmr.msra.gmra.mxu1 %v1699_v44  ;;  %1943 = vmatpush.bf16.msrb.mxu2 %v2752_v11  ;;  %v2764_v44 = vld [vmem:[%s3622_s28 + $0x28] sm:$0xff] }
 0x430   : > { %2019 = vmatpush.bf16.msrb.mxu3 %v2765_v43 }
 0x431   : > { %1944 = vmatpush.bf16.msrb.mxu2 %v2751_v13 }
 0x434   : > { %2020 = vmatpush.bf16.msrb.mxu3 %v2764_v44 }
 0x4a2   : > { %v1805_v45 = vpop.f32.mrf.mxu0 }
 0x4aa   : > { %v1819_v46 = vpop.f32.mrf.mxu1  ;;  %v1807_v51 = vpop.f32.mrf.mxu0 }
 0x4ab   : > { %v1820_v47 = vadd.f32 %v1819_v46, %v1805_v45  ;;  %v2763_v45 = vld [vmem:[%s3622_s28 + $0x20] sm:$0xff]  ;;  %v2762_v46 = vld [vmem:[%s3622_s28 + $0x18] sm:$0xff] }
 0x4ac   : > { %2021 = vmatpush.bf16.msrb.mxu3 %v2763_v45 }
 0x4ad   : > { %v1824_v49 = vadd.f32 %v1820_v47, %v3673_v4  ;;  %v2761_v47 = vld [vmem:[%s3622_s28 + $0x10] sm:$0xff] }
 0x4af   : > { %v3849_v50 = vadd.f32 %v2874_v48, %v1824_v49  ;;  %v2877_v49 = vld [vmem:[%s3984_s16] ss:$0 sm:$0xff] }
 0x4b0   : > { %2022 = vmatpush.bf16.msrb.mxu3 %v2762_v46 }
 0x4b1   : > { %1831 = vadd.xlane.f32.xlu1 %v3849_v50 }
 0x4b2   : > { %v1821_v52 = vpop.f32.mrf.mxu1 }
 0x4b3   : > { %v1822_v53 = vadd.f32 %v1821_v52, %v1807_v51  ;;  %v2759_v51 = vld [vmem:[%s3622_s28] sm:$0xff] }
 0x4b4   : > { %2023 = vmatpush.bf16.msrb.mxu3 %v2761_v47 }
 0x4b5   : > { %v1825_v54 = vadd.f32 %v1822_v53, %v3669_v2 }
 0x4b7   : > { %v3853_v55 = vadd.f32 %v2874_v48, %v1825_v54  ;;  %v2760_v48 = vld [vmem:[%s3622_s28 + $0x8] sm:$0xff]  ;;  %s3985_s28 = scalar_lea.vmem [#allocation14], %s3591_s23 }
 0x4b8   : > { %2024 = vmatpush.bf16.msrb.mxu3 %v2760_v48  ;;  %v2878_v11 = vld [vmem:[%s3985_s28] ss:$0 sm:$0xff] }
 0x4b9   : > { %v1833_v56 = vsel %vm981_vm0, %v3853_v55, 0.0 }
 0x4ba   : > { %1834 = vadd.xlane.f32.xlu0 %v1833_v56 }
 0x4bc   : > { %2025 = vmatpush.bf16.msrb.mxu3 %v2759_v51 }
 0x524   : > { %v1832_v57 = vpop.xlane.xlu1 %1831 }
 0x525   : > { %v1836_v58 = vmul.f32 0.03125, %v1832_v57 }
 0x527   : > { %v1838_v4 = vsub.f32 %v3849_v50, %v1836_v58 }
 0x529   : > { %v1840_v59 = vsel %vm978_vm1, %v1838_v4, 0.0 }
 0x52a   : > { %v1842_v60 = vmul.f32 %v1840_v59, %v1840_v59 }
 0x52c   : > { %1844 = vadd.xlane.f32.xlu2 %v1842_v60 }
 0x52d   : > { %v1835_v2 = vpop.xlane.xlu0 %1834 }
 0x52e   : > { %v1837_v61 = vmul.f32 0.03125, %v1835_v2 }
 0x530   : > { %v1839_v62 = vsub.f32 %v3853_v55, %v1837_v61 }
 0x532   : > { %v1841_v63 = vsel %vm978_vm1, %v1839_v62, 0.0 }
 0x533   : > { %v1843_v0 = vmul.f32 %v1841_v63, %v1841_v63 }
 0x535   : > { %v1846_v1 = vsel %vm981_vm0, %v1843_v0, 0.0 }
 0x536   : > { %1847 = vadd.xlane.f32.xlu0 %v1846_v1 }
 0x59f   : > { %v1845_v9 = vpop.xlane.xlu2 %1844 }
 0x5a0   : > { %v1849_v10 = vmul.f32 0.03125, %v1845_v9 }
 0x5a2   : > { %v1851_v12 = vadd.f32 1e-05, %v1849_v10 }
 0x5a4   : > { %2899 = vrsqrt.f32 %v1851_v12  ;;  %vm1859_vm15 = vweird.f32 %v1851_v12 }
 0x5a9   : > { %v1848_v14 = vpop.xlane.xlu0 %1847 }
 0x5aa   : > { %v2900_v15 = vpop.eup %2899  ;;  %v1850_v16 = vmul.f32 0.03125, %v1848_v14 }
 0x5ab   : > { %v1854_v17 = vmul.f32 %v2900_v15, %v1851_v12  ;;  %vm1860_vm8 = vweird.f32 %v2900_v15 }
 0x5ac   : > { %v1852_v18 = vadd.f32 1e-05, %v1850_v16  ;;  %vm1861_vm2 = vmor %vm1859_vm15, %vm1860_vm8 }
 0x5ad   : > { %v1855_v27 = vmul.f32 %v2900_v15, %v1854_v17 }
 0x5ae   : > { %2901 = vrsqrt.f32 %v1852_v18  ;;  %vm1869_vm4 = vweird.f32 %v1852_v18 }
 0x5af   : > { %v1856_v19 = vmul.f32 0.5, %v1855_v27 }
 0x5b1   : > { %v1857_v20 = vsub.f32 1.5, %v1856_v19 }
 0x5b3   : > { %v1858_v23 = vmul.f32 %v2900_v15, %v1857_v20 }
 0x5b4   : > { %v2902_v22 = vpop.eup %2901 }
 0x5b5   : > { %v1864_v24 = vmul.f32 %v2902_v22, %v1852_v18  ;;  %v1862_v28 = vsel %vm1861_vm2, %v2900_v15, %v1858_v23  ;;  %vm1870_vm3 = vweird.f32 %v2902_v22 }
 0x5b6   : > { %v1873_v32 = vmul.f32 %v1862_v28, %v1840_v59  ;;  %vm1871_vm5 = vmor %vm1869_vm4, %vm1870_vm3 }
 0x5b7   : > { %v1865_v26 = vmul.f32 %v2902_v22, %v1864_v24 }
 0x5b8   : > { %v1878_v35 = vmul.f32 %v2875_v31, %v1873_v32 }
 0x5b9   : > { %v1866_v29 = vmul.f32 0.5, %v1865_v26 }
 0x5ba   : > { %v1883_v39 = vadd.f32 %v2876_v37, %v1878_v35 }
 0x5bb   : > { %v1867_v30 = vsub.f32 1.5, %v1866_v29 }
 0x5bd   : > { %v1868_v33 = vmul.f32 %v2902_v22, %v1867_v30 }
 0x5bf   : > { %v1872_v34 = vsel %vm1871_vm5, %v2902_v22, %v1868_v33 }
 0x5c0   : > { %v1874_v36 = vmul.f32 %v1872_v34, %v1841_v63 }
 0x5c2   : > { %v1879_v38 = vmul.f32 %v2875_v31, %v1874_v36 }
 0x5c4   : > { %v1884_v40 = vadd.f32 %v2876_v37, %v1879_v38 }
 0x5c6   : > { %v1885_v41 = vpack.c.bf16 %v1884_v40, %v1883_v39 }
 0x5c8   : > { %1945 = vmatmul.bf16.vlgmr.msrb.gmra.mxu2 %v1885_v41 }
 0x64b   : > { %v1946_v52 = vpop.f32.mrf.mxu2 }
 0x64c   : > { %v1947_v53 = vadd.f32 %v2877_v49, %v1946_v52 }
 0x64e   : > { %v1953_v54 = vmul.f32 0.044715, %v1947_v53  ;;  %v1951_v6 = vmul.f32 0.5, %v1947_v53 }
 0x650   : > { %v1955_v56 = vmul.f32 %v1953_v54, %v1947_v53 }
 0x652   : > { %v1957_v57 = vmul.f32 %v1955_v56, %v1947_v53 }
 0x653   : > { %v1948_v58 = vpop.f32.mrf.mxu2 }
 0x654   : > { %v1959_v4 = vadd.f32 %v1957_v57, %v1947_v53  ;;  %v1949_v59 = vadd.f32 %v2877_v49, %v1948_v58 }
 0x656   : > { %v1954_v60 = vmul.f32 0.044715, %v1949_v59  ;;  %v1961_v2 = vmul.f32 0.7978846, %v1959_v4  ;;  %v1952_v7 = vmul.f32 0.5, %v1949_v59 }
 0x658   : > { %v1956_v61 = vmul.f32 %v1954_v60, %v1949_v59  ;;  %2903 = vtanh.f32 %v1961_v2 }
 0x65a   : > { %v1958_v62 = vmul.f32 %v1956_v61, %v1949_v59 }
 0x65c   : > { %v1960_v63 = vadd.f32 %v1958_v62, %v1949_v59 }
 0x65e   : > { %v1962_v0 = vmul.f32 0.7978846, %v1960_v63  ;;  %v2904_v1 = vpop.eup %2903 }
 0x65f   : > { %v1965_v3 = vadd.f32 1.0, %v2904_v1 }
 0x660   : > { %2905 = vtanh.f32 %v1962_v0 }
 0x661   : > { %v1967_v8 = vmul.f32 %v1965_v3, %v1951_v6 }
 0x666   : > { %v2906_v5 = vpop.eup %2905 }
 0x667   : > { %v1966_v25 = vadd.f32 1.0, %v2906_v5 }
 0x669   : > { %v1968_v9 = vmul.f32 %v1966_v25, %v1952_v7 }
 0x66b   : > { %v1969_v10 = vpack.c.bf16 %v1968_v9, %v1967_v8 }
 0x66d   : > { %2026 = vmatmul.bf16.vlgmr.msrb.gmra.mxu3 %v1969_v10 }
 0x6f0   : > { %v2027_v12 = vpop.f32.mrf.mxu3 }
 0x6f1   : > { %v2032_v13 = vadd.f32 %v2027_v12, %v3849_v50 }
 0x6f3   : > { %v2037_v14 = vadd.f32 %v2878_v11, %v2032_v13 }
 0x6f5   : > { %2039 = vst [vmem:[#allocation2] sm:$0xff] %v2037_v14 }
 0x6f8   : > { %v2029_v15 = vpop.f32.mrf.mxu3 }
 0x6f9   : > { %v2033_v16 = vadd.f32 %v2029_v15, %v3853_v55  ;;  %2044 = sbr.rel (%p2681_p5) target bundleno = 2075 (0x81b), region = 128 }
 0x6fb   : > { %v2038_v17 = vadd.f32 %v2878_v11, %v2033_v16 }
 0x6fd   : > { %2040 = vst [vmem:[#allocation2 + $0x8] sm:$0x3] %v2038_v17 }
 0x6fe   : > { %v2049_v18 = vsel %vm981_vm0, %v2038_v17, 0.0  ;;  %v2907_v43 = vld [vmem:[#allocation16] ss:$0 sm:$0xff]  ;;  %v2908_v47 = vld [vmem:[#allocation17] ss:$0 sm:$0xff] }
 0x6ff   : > { %2050 = vadd.xlane.f32.xlu0 %v2049_v18 }
 0x707   : > { %2047 = vadd.xlane.f32.xlu0 %v2037_v14 }
 0x772   : > { %v2051_v27 = vpop.xlane.xlu0 %2050 }
 0x773   : > { %v2053_v19 = vmul.f32 0.03125, %v2051_v27 }
 0x775   : > { %v2055_v50 = vsub.f32 %v2038_v17, %v2053_v19 }
 0x777   : > { %v2057_v55 = vsel %vm978_vm1, %v2055_v50, 0.0 }
 0x778   : > { %v2059_v28 = vmul.f32 %v2057_v55, %v2057_v55 }
 0x77a   : > { %v2048_v20 = vpop.xlane.xlu0 %2047  ;;  %v2062_v29 = vsel %vm981_vm0, %v2059_v28, 0.0 }
 0x77b   : > { %v2052_v22 = vmul.f32 0.03125, %v2048_v20 }
 0x77d   : > { %v2054_v23 = vsub.f32 %v2037_v14, %v2052_v22 }
 0x77f   : > { %v2056_v24 = vsel %vm978_vm1, %v2054_v23, 0.0 }
 0x780   : > { %v2058_v26 = vmul.f32 %v2056_v24, %v2056_v24 }
 0x782   : > { %2060 = vadd.xlane.f32.xlu1 %v2058_v26 }
 0x78a   : > { %2063 = vadd.xlane.f32.xlu1 %v2062_v29 }
 0x7f5   : > { %v2061_v30 = vpop.xlane.xlu1 %2060 }
 0x7f6   : > { %v2065_v31 = vmul.f32 0.03125, %v2061_v30 }
 0x7f8   : > { %v2067_v32 = vadd.f32 1e-05, %v2065_v31 }
 0x7fa   : > { %2909 = vrsqrt.f32 %v2067_v32  ;;  %vm2075_vm1 = vweird.f32 %v2067_v32 }
 0x7fd   : > { %v2064_v33 = vpop.xlane.xlu1 %2063 }
 0x7fe   : > { %v2066_v34 = vmul.f32 0.03125, %v2064_v33 }
 0x800   : > { %v2910_v35 = vpop.eup %2909  ;;  %v2068_v36 = vadd.f32 1e-05, %v2066_v34 }
 0x801   : > { %v2070_v37 = vmul.f32 %v2910_v35, %v2067_v32  ;;  %vm2076_vm6 = vweird.f32 %v2910_v35 }
 0x802   : > { %2911 = vrsqrt.f32 %v2068_v36  ;;  %vm2077_vm0 = vmor %vm2075_vm1, %vm2076_vm6  ;;  %vm2085_vm9 = vweird.f32 %v2068_v36 }
 0x803   : > { %v2071_v38 = vmul.f32 %v2910_v35, %v2070_v37 }
 0x805   : > { %v2072_v39 = vmul.f32 0.5, %v2071_v38 }
 0x807   : > { %v2073_v40 = vsub.f32 1.5, %v2072_v39 }
 0x808   : > { %v2912_v21 = vpop.eup %2911 }
 0x809   : > { %v2074_v41 = vmul.f32 %v2910_v35, %v2073_v40  ;;  %v2080_v42 = vmul.f32 %v2912_v21, %v2068_v36  ;;  %vm2086_vm7 = vweird.f32 %v2912_v21 }
 0x80a   : > { %vm2087_vm10 = vmor %vm2085_vm9, %vm2086_vm7 }
 0x80b   : > { %v2078_v44 = vsel %vm2077_vm0, %v2910_v35, %v2074_v41  ;;  %v2081_v45 = vmul.f32 %v2912_v21, %v2080_v42 }
 0x80c   : > { %v2089_v46 = vmul.f32 %v2078_v44, %v2056_v24 }
 0x80d   : > { %v2082_v48 = vmul.f32 0.5, %v2081_v45 }
 0x80e   : > { %v2094_v49 = vmul.f32 %v2907_v43, %v2089_v46 }
 0x80f   : > { %v2083_v51 = vsub.f32 1.5, %v2082_v48 }
 0x810   : > { %v2099_v52 = vadd.f32 %v2908_v47, %v2094_v49 }
 0x811   : > { %v2084_v53 = vmul.f32 %v2912_v21, %v2083_v51 }
 0x812   : > { %2101 = vst [vmem:[%s3987_s24] sm:$0xff] %v2099_v52 }
 0x813   : > { %v2088_v54 = vsel %vm2087_vm10, %v2912_v21, %v2084_v53 }
 0x814   : > { %v2090_v56 = vmul.f32 %v2088_v54, %v2057_v55 }
 0x816   : > { %v2095_v57 = vmul.f32 %v2907_v43, %v2090_v56 }
 0x818   : > { %v2100_v58 = vadd.f32 %v2908_v47, %v2095_v57 }
 0x81a   : > { %2102 = vst [vmem:[%s3987_s24 + $0x8] sm:$0x3] %v2100_v58 }
 0x81b PF: > { %s3988_s21 = sld [smem:[#allocation28_spill]]  ;;  %s3991_s18 = smov %s3263_s19 }
 0x81c   : > { %s3989_s27 = sld [smem:[#allocation26_spill]] }
 0x81d   : > { %s3990_s20 = sld [smem:[#allocation29_spill]] }
 0x821   : > { %p38_p8 = scmp.ge.s32.totalorder %s3988_s21, 4  }
 0x822   : > { %s3992_s19 = smov %s3989_s27 }
 0x823   :  { %40 = sbr.rel (!%p38_p8) target bundleno = 23 (0x17), region = 229 }
 0x828   :  { %2114 = vsyncpa [#allocation4], 1 }
 0x829   :  { %2116 = vsyncpa [#allocation4 + $0x1], 1 }
 0x82a   :  { %2117 = vsyncpa [#allocation6], 1 }
 0x82b   :  { %2119 = vsyncpa [#allocation6 + $0x1], 1 }
 0x82c   :  { %2120 = vsyncpa [#allocation9], 1 }
 0x82d   :  { %2122 = vsyncpa [#allocation9 + $0x1], 1 }
 0x82e   :  { %2123 = vsyncpa [#allocation12], 1 }
 0x82f   :  { %2125 = vsyncpa [#allocation12 + $0x1], 1 }
 0x830   :  { %2126 = vsyncpa [#allocation15], 1 }
 0x831   :  { %2128 = vsyncpa [#allocation15 + $0x1], 1 }
 0x832   :  { %2129 = vsyncpa [#allocation18], 1 }

// kernel: mae_vit_forward.5
= control target key start
LH: loop header
LB: loop body
LE: loop exit
PB: predicated region body
PF: predicated region fallthrough
CT: control target
= control target key end

     0   :  { %s5152_s0 = inlined_call_operand.vmem [shape: f32[34,128], index: 0, kind: input, shape index: {}]   ;;  %s5153_s1 = inlined_call_operand.vmem [shape: f32[17,128], index: 1, kind: input, shape index: {}]   ;;  %s5154_s2 = inlined_call_operand.hbm [shape: f32[2,1,128], index: 2, kind: input, shape index: {}]   ;;  %s5155_s3 = inlined_call_operand.hbm [shape: f32[2,1,128], index: 3, kind: input, shape index: {}]   ;;  %s5156_s4 = inlined_call_operand.vmem [shape: bf16[2,128,768], index: 4, kind: input, shape index: {}]   ;;  %s5157_s5 = inlined_call_operand.vmem [shape: f32[2,1,768], index: 5, kind: input, shape index: {}]   ;;  %s5158_s6 = inlined_call_operand.hbm [shape: bf16[2,256,128], index: 6, kind: input, shape index: {}]   ;;  %s5159_s7 = inlined_call_operand.hbm [shape: f32[2,1,128], index: 7, kind: input, shape index: {}]   ;;  %s5160_s8 = inlined_call_operand.hbm [shape: f32[2,1,128], index: 8, kind: input, shape index: {}]   ;;  %s5161_s9 = inlined_call_operand.hbm [shape: f32[2,1,128], index: 9, kind: input, shape index: {}]   ;;  %s5162_s10 = inlined_call_operand.vmem [shape: bf16[2,128,128], index: 10, kind: input, shape index: {}]   ;;  %s5163_s11 = inlined_call_operand.hbm [shape: f32[2,1,128], index: 11, kind: input, shape index: {}]   ;;  %s5164_s12 = inlined_call_operand.hbm [shape: bf16[2,128,128], index: 12, kind: input, shape index: {}]   ;;  %s5165_s13 = inlined_call_operand.hbm [shape: f32[2,1,128], index: 13, kind: input, shape index: {}]   ;;  %s5166_s14 = inlined_call_operand.hbm [shape: bf16[128,128], index: 14, kind: input, shape index: {}]   ;;  %s5167_s15 = inlined_call_operand.hbm [shape: f32[1,128], index: 15, kind: input, shape index: {}]   ;;  %s5168_s16 = inlined_call_operand.vmem [shape: f32[34,128], index: 16, kind: output, shape index: {}]  }
   0x1   :  { %5188 = sst [smem:[#allocation32_spill]] %s5152_s0 }
   0x2   :  { %5189 = sst [smem:[#allocation33_spill]] %s5153_s1 }
   0x3   :  { %5190 = sst [smem:[#allocation34_spill]] %s5155_s3 }
   0x4   :  { %5191 = sst [smem:[#allocation35_spill]] %s5156_s4 }
   0x5   :  { %5192 = sst [smem:[#allocation36_spill]] %s5157_s5 }
   0x6   :  { %5193 = sst [smem:[#allocation37_spill]] %s5159_s7 }
   0x7   :  { %5194 = sst [smem:[#allocation38_spill]] %s5161_s9 }
   0x8   :  { %5195 = sst [smem:[#allocation39_spill]] %s5162_s10 }
   0x9   :  { %5196 = sst [smem:[#allocation40_spill]] %s5166_s14 }
   0xa   :  { %5197 = sst [smem:[#allocation41_spill]] %s5168_s16 }
   0xb   :  { %21 = vsyncpa [#allocation4], 0 }
   0xc   :  { %23 = vsyncpa [#allocation4 + $0x1], 0 }
   0xd   :  { %24 = vsyncpa [#allocation6], 0 }
   0xe   :  { %26 = vsyncpa [#allocation6 + $0x1], 0 }
   0xf   :  { %27 = vsyncpa [#allocation9], 0 }
  0x10   :  { %29 = vsyncpa [#allocation9 + $0x1], 0 }
  0x11   :  { %30 = vsyncpa [#allocation12], 0 }
  0x12   :  { %32 = vsyncpa [#allocation12 + $0x1], 0 }
  0x13   :  { %33 = vsyncpa [#allocation15], 0 }
  0x14   :  { %35 = vsyncpa [#allocation15 + $0x1], 0 }
  0x15   :  { %36 = vsyncpa [#allocation18], 0  ;;  %s4222_s21 = smov 0   ;;  %s4224_s22 = smov 0  }
  0x16   :  { %s4226_s23 = smov 0   ;;  %s4228_s24 = smov 0  }
  0x17 LB: > { %5198 = sst [smem:[#allocation26_spill]] %s4123_s22  ;;  %s4241_s25 = sadd.s32 4294967295, %s4131_s24   ;;  %s4131_s24 = sphi %s4228_s24, %s5252_s24   ;;  %s4127_s23 = sphi %s4226_s23, %s5255_s23   ;;  %s4123_s22 = sphi %s4224_s22, %s5254_s22   ;;  %s4119_s21 = sphi %s4222_s21, %s5253_s21  }
  0x18   : > { %5199 = sst [smem:[#allocation27_spill]] %s4127_s23  ;;  %s4244_s26 = sadd.s32 1, %s4131_s24  }
  0x19   : > { %5200 = sst [smem:[#allocation28_spill]] %s4241_s25  ;;  %s88_s27 = ssub.s32 %s4131_s24, %s4244_s26 }
  0x1a   : > { %5201 = sst [smem:[#allocation29_spill]] %s4244_s26  ;;  %s91_s28 = sadd.s32 1, %s4127_s23 }
  0x1b   : > { %p89_p0 = scmp.eq.s32.totalorder %s88_s27, 0  ;;  %p98_p1 = scmp.ne.s32.totalorder %s4127_s23, %s4123_s22 }
  0x1c   : > { %p99_p2 = scmp.eq.s32.totalorder %s4131_s24, 0  ;;  %p104_p3 = scmp.ne.s32.totalorder %s4123_s22, %s4119_s21 }
  0x1d   : > { %s4254_s29 = scalar_select %p89_p0, %s4127_s23, %s91_s28  }
  0x1e   : > { %p4256_p4 = por %p99_p2, %p98_p1  ;;  %p105_p5 = scmp.eq.s32.totalorder %s4241_s25, 0 }
  0x1f   : > { %5202 = sst [smem:[#allocation30_spill]] %s4254_s29  ;;  %p3055_p6 = scmp.ge.s32.totalorder %s4131_s24, 1 }
  0x20   : > { %p464_p7 = scmp.lt.s32.totalorder %s4131_s24, 3  ;;  %p4265_p8 = por %p105_p5, %p104_p3 }
  0x21   : > { %p3056_p9 = scmp.ne.s32.totalorder %s4241_s25, 0  ;;  %s5207_s14 = sld [smem:[#allocation40_spill]] }
  0x22   : > { %s5204_s0 = scalar_select %p4265_p8, 1, 0 }
  0x23   : > { %p4270_p10 = pnand %p3055_p6, %p464_p7  ;;  %s4133_s21 = smov [#allocation17]  }
  0x24   : > { %5205 = sst [smem:[#allocation31_spill]] %s5204_s0  ;;  %s483_s27 = sshll.u32 %s4133_s21, 4  ;;  %s484_s27 = int_to_ptr.vmem [resolvable:$true] %s483_s27 }
  0x25   : > { %p3580_p11 = pneg %p4270_p10  ;;  %p3617_p13 = scmp.lt.s32.totalorder %s4131_s24, 2 }
  0x26   : > { %s4287_s29 = sand.u32 1, %s4127_s23   ;;  %s5175_s26 = smov 64  }
  0x27   : > { %s481_s20 = sshll.u32 %s5207_s14, 4  ;;  %p4281_p12 = pnand %p3580_p11, %p105_p5  ;;  %s482_s20 = int_to_ptr.hbm [resolvable:$true] %s481_s20 }
  0x28   : > { %s5177_s18 = smov 4   ;;  %p4296_p0 = pnand %p3617_p13, %p4256_p4 }
  0x29   : > { %3583 = dma.hbm_to_vmem [thread:$0]  (!%p4281_p12), %s482_s20, 1024, %s484_s27, [#allocation18], %s5175_s26, %s5175_s26, %s5177_s18  }
  0x2a   : > { %s4301_s21 = sand.u32 1, %s4131_s24   ;;  %s5210_s3 = sld [smem:[#allocation34_spill]] }
  0x2b   : > { %s529_s5 = scalar_lea.vmem [#allocation5], %s4287_s29  ;;  %s5183_s10 = scalar_lea.sflag [#allocation6], %s4301_s21 }
  0x2c   : > { %s536_s4 = sshll.u32 %s529_s5, 4  ;;  %p4311_p2 = pneg %p4296_p0  ;;  %s537_s4 = int_to_ptr.vmem [resolvable:$true] %s536_s4 }
  0x30   : > { %s532_s23 = scalar_lea.hbm %s5210_s3, %s4131_s24  ;;  %s3784_s5 = scalar_lea.hbm %s5210_s3, 2 }
  0x31   : > { %s534_s1 = sshll.u32 %s532_s23, 4  ;;  %s535_s1 = int_to_ptr.hbm [resolvable:$true] %s534_s1 }
  0x32   : > { %s3777_s20 = sshra.s32 %s535_s1, 4  ;;  %s3778_s20 = int_to_ptr.hbm [resolvable:$true] %s3777_s20 }
  0x33   : > { %s3779_s30 = scalar_lea.hbm %s3778_s20, 1  ;;  %p3785_p6 = scmp.lt.s32.totalorder %s3778_s20, %s5210_s3 }
  0x34   : > { %p3780_p1 = scmp.ne.s32.totalorder %s3778_s20, %s3779_s30  ;;  %p3786_p7 = scmp.lt.s32.totalorder %s3784_s5, %s3779_s30 }
  0x36   : > { %p3782_p3 = pnand %p4311_p2, %p3780_p1  ;;  %p3787_p11 = por %p3786_p7, %p3785_p6 }
  0x38   : > { %p3783_p4 = pneg %p3782_p3 }
  0x3a   : > { %p3788_p13 = pnand %p3787_p11, %p3783_p4 }
  0x3c   : > { %3791 = shalt.err (!%p3788_p13)
}
  0x3d   : > { %3593 = dma.hbm_to_vmem [thread:$0]  (!%p4296_p0), %s535_s1, 16, %s537_s4, %s5183_s10  }
  0x3e   : > { %s5212_s7 = sld [smem:[#allocation37_spill]]  ;;  %s583_s25 = scalar_lea.vmem [#allocation8], %s4287_s29 }
  0x3f   : > { %s590_s26 = sshll.u32 %s583_s25, 4  ;;  %s5184_s30 = scalar_lea.sflag [#allocation9], %s4301_s21  ;;  %s591_s26 = int_to_ptr.vmem [resolvable:$true] %s590_s26 }
  0x44   : > { %s586_s16 = scalar_lea.hbm %s5212_s7, %s4131_s24  ;;  %s3814_s1 = scalar_lea.hbm %s5212_s7, 2 }
  0x45   : > { %s588_s20 = sshll.u32 %s586_s16, 4  ;;  %s589_s20 = int_to_ptr.hbm [resolvable:$true] %s588_s20 }
  0x46   : > { %s3807_s5 = sshra.s32 %s589_s20, 4  ;;  %s3808_s5 = int_to_ptr.hbm [resolvable:$true] %s3807_s5 }
  0x47   : > { %s3809_s23 = scalar_lea.hbm %s3808_s5, 1  ;;  %p3815_p6 = scmp.lt.s32.totalorder %s3808_s5, %s5212_s7 }
  0x48   : > { %p3810_p1 = scmp.ne.s32.totalorder %s3808_s5, %s3809_s23  ;;  %p3816_p7 = scmp.lt.s32.totalorder %s3814_s1, %s3809_s23 }
  0x4a   : > { %p3812_p3 = pnand %p3810_p1, %p4311_p2  ;;  %p3817_p11 = por %p3816_p7, %p3815_p6 }
  0x4c   : > { %p3813_p4 = pneg %p3812_p3 }
  0x4e   : > { %p3818_p13 = pnand %p3817_p11, %p3813_p4 }
  0x50   : > { %3821 = shalt.err (!%p3818_p13)
}
  0x51   : > { %3599 = dma.hbm_to_vmem [thread:$0]  (!%p4296_p0), %s589_s20, 16, %s591_s26, %s5184_s30  }
  0x52   : > { %s5213_s9 = sld [smem:[#allocation38_spill]]  ;;  %s617_s16 = scalar_lea.vmem [#allocation11], %s4287_s29 }
  0x53   : > { %s624_s5 = sshll.u32 %s617_s16, 4  ;;  %s5186_s23 = scalar_lea.sflag [#allocation12], %s4301_s21  ;;  %s625_s5 = int_to_ptr.vmem [resolvable:$true] %s624_s5 }
  0x58   : > { %s620_s0 = scalar_lea.hbm %s5213_s9, %s4131_s24  ;;  %s3844_s26 = scalar_lea.hbm %s5213_s9, 2 }
  0x59   : > { %s622_s14 = sshll.u32 %s620_s0, 4  ;;  %s623_s14 = int_to_ptr.hbm [resolvable:$true] %s622_s14 }
  0x5a   : > { %s3837_s1 = sshra.s32 %s623_s14, 4  ;;  %s3838_s1 = int_to_ptr.hbm [resolvable:$true] %s3837_s1 }
  0x5b   : > { %s3839_s4 = scalar_lea.hbm %s3838_s1, 1  ;;  %p3845_p6 = scmp.lt.s32.totalorder %s3838_s1, %s5213_s9 }
  0x5c   : > { %p3840_p1 = scmp.ne.s32.totalorder %s3838_s1, %s3839_s4  ;;  %p3846_p7 = scmp.lt.s32.totalorder %s3844_s26, %s3839_s4 }
  0x5e   : > { %p3842_p3 = pnand %p3840_p1, %p4311_p2  ;;  %p3847_p11 = por %p3846_p7, %p3845_p6 }
  0x60   : > { %p3843_p4 = pneg %p3842_p3 }
  0x62   : > { %p3848_p13 = pnand %p3847_p11, %p3843_p4 }
  0x64   : > { %3851 = shalt.err (!%p3848_p13)
}
  0x65   : > { %3605 = dma.hbm_to_vmem [thread:$0]  (!%p4296_p0), %s623_s14, 16, %s625_s5, %s5186_s23  }
  0x66   : > { %s3062_s3 = sshll.u32 %s4287_s29, 6  ;;  %s3446_s10 = sshll.u32 %s4131_s24, 6 }
  0x67   : > { %s665_s18 = scalar_lea.hbm %s5164_s12, %s3446_s10  ;;  %s660_s1 = scalar_lea.vmem [#allocation14], %s3062_s3 }
  0x68   : > { %s668_s4 = sshll.u32 %s660_s1, 4  ;;  %s666_s26 = sshll.u32 %s665_s18, 4  ;;  %s669_s4 = int_to_ptr.vmem [resolvable:$true] %s668_s4  ;;  %s667_s26 = int_to_ptr.hbm [resolvable:$true] %s666_s26 }
  0x69   : > { %s496_s30 = sshll.u32 %s5167_s15, 4  ;;  %s5187_s7 = scalar_lea.sflag [#allocation15], %s4301_s21  ;;  %s497_s30 = int_to_ptr.hbm [resolvable:$true] %s496_s30 }
  0x6a   : > { %s3867_s9 = sshra.s32 %s667_s26, 4  ;;  %s3874_s3 = scalar_lea.hbm %s5164_s12, 128  ;;  %s3868_s9 = int_to_ptr.hbm [resolvable:$true] %s3867_s9 }
  0x6b   : > { %s3869_s22 = scalar_lea.hbm %s3868_s9, 64  ;;  %p3875_p6 = scmp.lt.s32.totalorder %s3868_s9, %s5164_s12 }
  0x6c   : > { %p3870_p1 = scmp.ne.s32.totalorder %s3868_s9, %s3869_s22  ;;  %p3876_p7 = scmp.lt.s32.totalorder %s3874_s3, %s3869_s22 }
  0x6e   : > { %p3872_p3 = pnand %p3870_p1, %p4311_p2  ;;  %p3877_p11 = por %p3876_p7, %p3875_p6 }
  0x70   : > { %p3873_p4 = pneg %p3872_p3 }
  0x72   : > { %p3878_p13 = pnand %p3877_p11, %p3873_p4 }
  0x74   : > { %3881 = shalt.err (!%p3878_p13)
}
  0x75   : > { %s5214_s16 = smov 4   ;;  %s5215_s18 = smov 64  }
  0x76   : > { %3611 = dma.hbm_to_vmem [thread:$0]  (!%p4296_p0), %s667_s26, 1024, %s669_s4, %s5187_s7, %s5215_s18, %s5215_s18, %s5214_s16  }
  0x77   : > { %s4136_s1 = smov [#allocation19]   ;;  %s515_s25 = scalar_lea.hbm %s5154_s2, %s4131_s24 }
  0x78   : > { %s498_s9 = sshll.u32 %s4136_s1, 4  ;;  %s512_s14 = scalar_lea.vmem [#allocation3], %s4287_s29  ;;  %s499_s9 = int_to_ptr.vmem [resolvable:$true] %s498_s9 }
  0x79   : > { %3586 = dma.hbm_to_vmem [thread:$0]  (!%p4281_p12), %s497_s30, 16, %s499_s9, [#allocation18]  }
  0x7a   : > { %s519_s5 = sshll.u32 %s512_s14, 4  ;;  %s517_s3 = sshll.u32 %s515_s25, 4  ;;  %s520_s5 = int_to_ptr.vmem [resolvable:$true] %s519_s5  ;;  %s518_s3 = int_to_ptr.hbm [resolvable:$true] %s517_s3 }
  0x7b   : > { %s3059_s10 = sshll.u32 %s4287_s29, 7  ;;  %s510_s0 = scalar_lea.sflag [#allocation4], %s4287_s29 }
  0x7c   : > { %s3927_s23 = sshra.s32 %s518_s3, 4  ;;  %s3934_s26 = scalar_lea.hbm %s5154_s2, 2  ;;  %s3928_s23 = int_to_ptr.hbm [resolvable:$true] %s3927_s23 }
  0x7d   : > { %s3929_s4 = scalar_lea.hbm %s3928_s23, 1  ;;  %p3935_p12 = scmp.lt.s32.totalorder %s3928_s23, %s5154_s2 }
  0x7e   : > { %p3930_p1 = scmp.ne.s32.totalorder %s3928_s23, %s3929_s4  ;;  %p3936_p6 = scmp.lt.s32.totalorder %s3934_s26, %s3929_s4 }
  0x80   : > { %p3932_p3 = pnand %p3930_p1, %p4311_p2  ;;  %p3937_p7 = por %p3936_p6, %p3935_p12 }
  0x82   : > { %p3933_p4 = pneg %p3932_p3 }
  0x84   : > { %p3938_p11 = pnand %p3937_p7, %p3933_p4 }
  0x86   : > { %3941 = shalt.err (!%p3938_p11)
}
  0x87   : > { %3590 = dma.hbm_to_vmem [thread:$0]  (!%p4296_p0), %s518_s3, 16, %s520_s5, %s510_s0  }
  0x88   : > { %s3445_s22 = sshll.u32 %s4131_s24, 7  ;;  %s562_s28 = scalar_lea.vmem [#allocation7], %s3059_s10 }
  0x89   : > { %s567_s14 = scalar_lea.hbm %s5158_s6, %s3445_s22  ;;  %s570_s30 = sshll.u32 %s562_s28, 4  ;;  %s571_s30 = int_to_ptr.vmem [resolvable:$true] %s570_s30 }
  0x8a   : > { %s568_s7 = sshll.u32 %s567_s14, 4  ;;  %s3964_s5 = scalar_lea.hbm %s5158_s6, 256  ;;  %s569_s7 = int_to_ptr.hbm [resolvable:$true] %s568_s7 }
  0x8b   : > { %s3957_s23 = sshra.s32 %s569_s7, 4  ;;  %s3958_s23 = int_to_ptr.hbm [resolvable:$true] %s3957_s23 }
  0x8c   : > { %s3959_s4 = scalar_lea.hbm %s3958_s23, 128  ;;  %p3965_p4 = scmp.lt.s32.totalorder %s3958_s23, %s5158_s6 }
  0x8d   : > { %p3960_p13 = scmp.ne.s32.totalorder %s3958_s23, %s3959_s4  ;;  %p3966_p12 = scmp.lt.s32.totalorder %s3964_s5, %s3959_s4 }
  0x8f   : > { %p3962_p1 = pnand %p3960_p13, %p4311_p2  ;;  %p3967_p6 = por %p3966_p12, %p3965_p4 }
  0x91   : > { %p3963_p3 = pneg %p3962_p1 }
  0x93   : > { %p3968_p7 = pnand %p3967_p6, %p3963_p3 }
  0x95   : > { %3971 = shalt.err (!%p3968_p7)
}
  0x96   : > { %s5216_s10 = scalar_lea.sflag [#allocation6], %s4301_s21  ;;  %s603_s20 = scalar_lea.hbm %s5160_s8, %s4131_s24 }
  0x97   : > { %3596 = dma.hbm_to_vmem [thread:$0]  (!%p4296_p0), %s569_s7, 2048, %s571_s30, %s5216_s10, %s5215_s18, %s5215_s18, %s5214_s16  }
  0x98   : > { %s600_s25 = scalar_lea.vmem [#allocation10], %s4287_s29  ;;  %s605_s28 = sshll.u32 %s603_s20, 4  ;;  %s606_s28 = int_to_ptr.hbm [resolvable:$true] %s605_s28 }
  0x99   : > { %s607_s14 = sshll.u32 %s600_s25, 4  ;;  %s3987_s23 = sshra.s32 %s606_s28, 4  ;;  %s608_s14 = int_to_ptr.vmem [resolvable:$true] %s607_s14  ;;  %s3988_s23 = int_to_ptr.hbm [resolvable:$true] %s3987_s23 }
  0x9a   : > { %s3989_s4 = scalar_lea.hbm %s3988_s23, 1  ;;  %s3994_s7 = scalar_lea.hbm %s5160_s8, 2 }
  0x9b   : > { %p3990_p11 = scmp.ne.s32.totalorder %s3988_s23, %s3989_s4  ;;  %p3995_p3 = scmp.lt.s32.totalorder %s3988_s23, %s5160_s8 }
  0x9c   : > { %p3996_p4 = scmp.lt.s32.totalorder %s3994_s7, %s3989_s4 }
  0x9d   : > { %p3992_p13 = pnand %p3990_p11, %p4311_p2 }
  0x9e   : > { %p3997_p12 = por %p3996_p4, %p3995_p3 }
  0x9f   : > { %p3993_p1 = pneg %p3992_p13 }
  0xa1   : > { %p3998_p6 = pnand %p3997_p12, %p3993_p1 }
  0xa3   : > { %4001 = shalt.err (!%p3998_p6)
}
  0xa4   : > { %s5217_s30 = scalar_lea.sflag [#allocation9], %s4301_s21  ;;  %s645_s0 = scalar_lea.hbm %s5163_s11, %s4131_s24 }
  0xa5   : > { %3602 = dma.hbm_to_vmem [thread:$0]  (!%p4296_p0), %s606_s28, 16, %s608_s14, %s5217_s30  }
  0xa6   : > { %s642_s10 = scalar_lea.vmem [#allocation13], %s4287_s29  ;;  %s647_s22 = sshll.u32 %s645_s0, 4  ;;  %s648_s22 = int_to_ptr.hbm [resolvable:$true] %s647_s22 }
  0xa7   : > { %s649_s9 = sshll.u32 %s642_s10, 4  ;;  %s4017_s20 = sshra.s32 %s648_s22, 4  ;;  %s650_s9 = int_to_ptr.vmem [resolvable:$true] %s649_s9  ;;  %s4018_s20 = int_to_ptr.hbm [resolvable:$true] %s4017_s20 }
  0xa8   : > { %s4019_s25 = scalar_lea.hbm %s4018_s20, 1  ;;  %s4024_s14 = scalar_lea.hbm %s5163_s11, 2 }
  0xa9   : > { %p4020_p7 = scmp.ne.s32.totalorder %s4018_s20, %s4019_s25  ;;  %p4025_p1 = scmp.lt.s32.totalorder %s4018_s20, %s5163_s11 }
  0xaa   : > { %p4026_p3 = scmp.lt.s32.totalorder %s4024_s14, %s4019_s25 }
  0xab   : > { %p4022_p11 = pnand %p4020_p7, %p4311_p2 }
  0xac   : > { %p4027_p4 = por %p4026_p3, %p4025_p1 }
  0xad   : > { %p4023_p13 = pneg %p4022_p11 }
  0xaf   : > { %p4028_p12 = pnand %p4027_p4, %p4023_p13 }
  0xb1   : > { %4031 = shalt.err (!%p4028_p12)
}
  0xb2   : > { %s5218_s1 = scalar_lea.sflag [#allocation12], %s4301_s21  ;;  %s684_s18 = scalar_lea.hbm %s5165_s13, %s4131_s24 }
  0xb3   : > { %3608 = dma.hbm_to_vmem [thread:$0]  (!%p4296_p0), %s648_s22, 16, %s650_s9, %s5218_s1  }
  0xb4   : > { %s681_s30 = scalar_lea.vmem [#allocation16], %s4287_s29  ;;  %s686_s3 = sshll.u32 %s684_s18, 4  ;;  %s687_s3 = int_to_ptr.hbm [resolvable:$true] %s686_s3 }
  0xb5   : > { %s688_s5 = sshll.u32 %s681_s30, 4  ;;  %s4047_s0 = sshra.s32 %s687_s3, 4  ;;  %s689_s5 = int_to_ptr.vmem [resolvable:$true] %s688_s5  ;;  %s4048_s0 = int_to_ptr.hbm [resolvable:$true] %s4047_s0 }
  0xb6   : > { %s4049_s10 = scalar_lea.hbm %s4048_s0, 1  ;;  %s4054_s9 = scalar_lea.hbm %s5165_s13, 2 }
  0xb7   : > { %p4050_p6 = scmp.ne.s32.totalorder %s4048_s0, %s4049_s10  ;;  %p4055_p13 = scmp.lt.s32.totalorder %s4048_s0, %s5165_s13 }
  0xb8   : > { %p4056_p1 = scmp.lt.s32.totalorder %s4054_s9, %s4049_s10 }
  0xb9   : > { %p4052_p7 = pnand %p4050_p6, %p4311_p2 }
  0xba   : > { %p4057_p3 = por %p4056_p1, %p4055_p13 }
  0xbb   : > { %p4053_p11 = pneg %p4052_p7 }
  0xbd   : > { %p4058_p4 = pnand %p4057_p3, %p4053_p11 }
  0xbf   : > { %4061 = shalt.err (!%p4058_p4)
}
  0xc0   : > { %s5219_s24 = scalar_lea.sflag [#allocation15], %s4301_s21  ;;  %697 = sbr.rel (%p4270_p10) target bundleno = 2053 (0x805), region = 84 }
  0xc1   : > { %3614 = dma.hbm_to_vmem [thread:$0]  (!%p4296_p0), %s687_s3, 16, %s689_s5, %s5219_s24  }
  0xc2   : > { %s5220_s29 = sld [smem:[#allocation26_spill]] (!%p4270_p10) }
  0xc8   : > { %s4479_s4 = sand.u32 1, %s5220_s29  }
  0xc9   : > { %s700_s14 = scalar_lea.sflag [#allocation4], %s4479_s4  ;;  %s702_s28 = scalar_lea.vmem [#allocation3], %s4479_s4 }
  0xca   : > { %4094 = dma.done.wait (%p4265_p8), %s700_s14, 16  }
  0xcb   : > { %4096 = vsyncadd (%p4265_p8), %s700_s14, 4294967280  ;;  %s5222_s19 = sld [smem:[#allocation28_spill]] }
  0xd1   : > { %s708_s21 = sand.u32 1, %s5222_s19  }
  0xd2   : > { %s709_s26 = scalar_lea.sflag [#allocation6], %s708_s21 }
  0xd3   : > { %4098 = dma.done.wait (%p4265_p8), %s709_s26, 2064  }
  0xd4   : > { %4100 = vsyncadd (%p4265_p8), %s709_s26, 4294965232  ;;  %s3066_s1 = sshll.u32 %s4479_s4, 7  ;;  %s728_s16 = scalar_lea.sflag [#allocation9], %s708_s21 }
  0xd5   : > { %s4494_s7 = scalar_lea.vmem [#allocation7], %s3066_s1 }
  0xd6   : > { %4102 = dma.done.wait (%p4265_p8), %s728_s16, 32  }
  0xd7   : > { %4104 = vsyncadd (%p4265_p8), %s728_s16, 4294967264  ;;  %s746_s5 = scalar_lea.sflag [#allocation12], %s708_s21 }
  0xd8   : > { %4106 = dma.done.wait (%p4265_p8), %s746_s5, 32  }
  0xd9   : > { %4108 = vsyncadd (%p4265_p8), %s746_s5, 4294967264  ;;  %s3067_s0 = sshll.u32 %s4479_s4, 6  ;;  %s764_s20 = scalar_lea.sflag [#allocation15], %s708_s21 }
  0xda   : > { %s4509_s25 = scalar_lea.vmem [#allocation14], %s3067_s0 }
  0xdb   : > { %4110 = dma.done.wait (%p4265_p8), %s764_s20, 1040  }
  0xdc   : > { %4112 = vsyncadd (%p4265_p8), %s764_s20, 4294966256 }
  0xdd   : > { %4114 = dma.done.wait (%p105_p5), [#allocation18], 1040  }
  0xde   : > { %4116 = vsyncadd (%p105_p5), [#allocation18], 4294966256  ;;  %p878_p10 = scmp.lt.s32.totalorder %s5222_s19, 1  ;;  %s5223_s26 = sld [smem:[#allocation39_spill]] }
  0xdf   : > { %s5224_s5 = sld [smem:[#allocation35_spill]] }
  0xe0   : > { %s879_s22 = scalar_select %p878_p10, %s5222_s19, 1 }
  0xe1   : > { %s5225_s10 = sld [smem:[#allocation36_spill]] }
  0xe2   : > { %s3552_s23 = smul.u32 384, %s879_s22  ;;  %s3447_s24 = sshll.u32 %s879_s22, 6 }
  0xe3   : > { %s3553_s29 = smul.u32 6, %s879_s22  ;;  %s5226_s18 = sld [smem:[#allocation33_spill]] (!%p3056_p9) }
  0xe4   : > { %s4525_s27 = scalar_lea.vmem %s5223_s26, %s3447_s24  ;;  %895 = sbr.rel (%p3056_p9) target bundleno = 243 (0xf3), region = 132 }
  0xe5   : > { %s4530_s0 = scalar_lea.vmem %s5224_s5, %s3552_s23  ;;  %s5227_s21 = sld [smem:[#allocation32_spill]] (!%p3056_p9) }
  0xe7   : > { %s4535_s3 = scalar_lea.vmem %s5225_s10, %s3553_s29 }
  0xe9   : > { %v896_v0 = vld [vmem:[%s5226_s18] sm:$0xff]  ;;  %v897_v2 = vld [vmem:[%s5226_s18 + $0x8] sm:$0xff]  ;;  %vm907_vm0 = vcmask 1040384   ;;  %v898_v7 = vld [vmem:[%s5226_s18 + $0x10] sm:$0x1] }
  0xea   : > { %v908_v3 = vrot.slane %v896_v0, 7  ;;  %v909_v6 = vrot.slane %v897_v2, 7  ;;  %v911_v10 = vrot.slane %v898_v7, 7 }
  0xeb   : > { %s5228_s26 = smov %s5227_s21  ;;  %v899_v1 = vld [vmem:[%s5227_s21] sm:$0xff] }
  0xec   : > { %v917_v4 = vadd.f32 %v899_v1, %v896_v0  ;;  %v900_v5 = vld [vmem:[%s5228_s26 + $0x8] sm:$0xff]  ;;  %v901_v8 = vld [vmem:[%s5228_s26 + $0x10] sm:$0xff]  ;;  %v902_v11 = vld [vmem:[%s5228_s26 + $0x18] sm:$0xff]  ;;  %v916_v13 = vsel %vm907_vm0, %v898_v7, %v908_v3  ;;  %v910_v14 = vsel %vm907_vm0, %v908_v3, %v909_v6  ;;  %v912_v17 = vsel %vm907_vm0, %v909_v6, %v911_v10 }
  0xed   : > { %v918_v9 = vadd.f32 %v900_v5, %v897_v2  ;;  %v903_v12 = vld [vmem:[%s5228_s26 + $0x20] sm:$0x3]  ;;  %v919_v15 = vadd.f32 %v916_v13, %v901_v8  ;;  %v920_v16 = vadd.f32 %v910_v14, %v902_v11 }
  0xee   : > { %922 = vst [vmem:[#allocation2 + $0x8] sm:$0xff] %v917_v4  ;;  %v921_v18 = vadd.f32 %v912_v17, %v903_v12 }
  0xef   : > { %923 = vst [vmem:[#allocation2] sm:$0xff] %v918_v9 }
  0xf0   : > { %924 = vst [vmem:[#allocation2 + $0x20] sm:$0xff] %v919_v15 }
  0xf1   : > { %925 = vst [vmem:[#allocation2 + $0x10] sm:$0xff] %v920_v16 }
  0xf2   : > { %926 = vst [vmem:[#allocation2 + $0x18] sm:$0x3] %v921_v18 }
  0xf3 PF: > { %vm1063_vm1 = vcmask 1041408   ;;  %v1052_v25 = vlaneseq  ;;  %v3244_v53 = vld [vmem:[%s4530_s0 + $0x150] sm:$0xf]  ;;  %v3493_v54 = vld [vmem:[%s4530_s0 + $0x164] sm:$0xf0] }
  0xf4   : > { %v3490_v55 = vld [vmem:[%s4530_s0 + $0x154] sm:$0xf]  ;;  %v3245_v56 = vor.u32 %v3493_v54, %v3244_v53  ;;  %v3246_v57 = vld [vmem:[%s4530_s0 + $0x168] sm:$0xf0]  ;;  %v3252_v58 = vld [vmem:[%s4530_s0 + $0x158] sm:$0xf] }
  0xf5   : > { %v1047_v20 = vld [vmem:[#allocation2 + $0x8] sm:$0xff]  ;;  %v4567_v26 = vand.u32 127, %v1052_v25  ;;  %v3494_v59 = vld [vmem:[%s4530_s0 + $0x16c] sm:$0xf0]  ;;  %v3249_v60 = vor.u32 %v3490_v55, %v3246_v57  ;;  %v3491_v62 = vld [vmem:[%s4530_s0 + $0x15c] sm:$0xf] }
  0xf6   : > { %1055 = vadd.xlane.f32.xlu0 %v1047_v20  ;;  %v1048_v21 = vld [vmem:[#allocation2] sm:$0xff]  ;;  %v3253_v61 = vor.u32 %v3494_v59, %v3252_v58  ;;  %v3254_v63 = vld [vmem:[%s4530_s0 + $0x170] sm:$0xf0]  ;;  %1435 = vmatpush.bf16.msra.mxu0 %v3245_v56  ;;  %v3487_v2 = vld [vmem:[%s4530_s0 + $0x134] sm:$0xf0] }
  0xf7   : > { %v1049_v19 = vld [vmem:[#allocation2 + $0x20] sm:$0xff]  ;;  %vm1054_vm2 = vcmp.lt.s32.totalorder %v4567_v26, 32  ;;  %v3257_v0 = vor.u32 %v3491_v62, %v3254_v63  ;;  %1458 = vmatpush.bf16.msra.mxu1 %v3249_v60  ;;  %v3222_v5 = vld [vmem:[%s4530_s0 + $0x138] sm:$0xf0]  ;;  %v3228_v6 = vld [vmem:[%s4530_s0 + $0x128] sm:$0xf] }
  0xf8   : > { %1059 = vadd.xlane.f32.xlu1 %v1049_v19  ;;  %v1050_v22 = vld [vmem:[#allocation2 + $0x10] sm:$0xff]  ;;  %1481 = vmatpush.bf16.msra.mxu2 %v3253_v61  ;;  %v3220_v1 = vld [vmem:[%s4530_s0 + $0x120] sm:$0xf]  ;;  %v3484_v3 = vld [vmem:[%s4530_s0 + $0x124] sm:$0xf] }
  0xf9   : > { %v1051_v23 = vld [vmem:[#allocation2 + $0x18] sm:$0x3]  ;;  %1504 = vmatpush.bf16.msra.mxu3 %v3257_v0  ;;  %v3221_v4 = vor.u32 %v3487_v2, %v3220_v1  ;;  %v3488_v7 = vld [vmem:[%s4530_s0 + $0x13c] sm:$0xf0]  ;;  %v3225_v8 = vor.u32 %v3484_v3, %v3222_v5  ;;  %v3485_v10 = vld [vmem:[%s4530_s0 + $0x12c] sm:$0xf] }
  0xfa   : > { %v1064_v24 = vsel %vm1063_vm1, %v1051_v23, 0.0  ;;  %v3229_v9 = vor.u32 %v3488_v7, %v3228_v6  ;;  %v3230_v11 = vld [vmem:[%s4530_s0 + $0x140] sm:$0xf0]  ;;  %v3196_v13 = vld [vmem:[%s4530_s0 + $0xf0] sm:$0xf] }
  0xfb   : > { %1436 = vmatpush.bf16.msra.mxu0 %v3221_v4  ;;  %v3233_v12 = vor.u32 %v3485_v10, %v3230_v11  ;;  %1459 = vmatpush.bf16.msra.mxu1 %v3225_v8  ;;  %v3481_v14 = vld [vmem:[%s4530_s0 + $0x104] sm:$0xf0]  ;;  %v3478_v15 = vld [vmem:[%s4530_s0 + $0xf4] sm:$0xf]  ;;  %v3198_v17 = vld [vmem:[%s4530_s0 + $0x108] sm:$0xf0] }
  0xfc   : > { %1482 = vmatpush.bf16.msra.mxu2 %v3229_v9  ;;  %v3197_v16 = vor.u32 %v3481_v14, %v3196_v13  ;;  %v3204_v18 = vld [vmem:[%s4530_s0 + $0xf8] sm:$0xf]  ;;  %v3172_v25 = vld [vmem:[%s4530_s0 + $0xc0] sm:$0xf]  ;;  %v3460_v57 = vld [vmem:[%s4530_s0 + $0x64] sm:$0xf] }
  0xfd   : > { %1505 = vmatpush.bf16.msra.mxu3 %v3233_v12  ;;  %v3124_v55 = vld [vmem:[%s4530_s0 + $0x60] sm:$0xf]  ;;  %v3463_v56 = vld [vmem:[%s4530_s0 + $0x74] sm:$0xf0]  ;;  %v3126_v59 = vld [vmem:[%s4530_s0 + $0x78] sm:$0xf0] }
  0xfe   : > { %1057 = vadd.xlane.f32.xlu0 %v1048_v21  ;;  %v3125_v58 = vor.u32 %v3463_v56, %v3124_v55  ;;  %v3132_v60 = vld [vmem:[%s4530_s0 + $0x68] sm:$0xf]  ;;  %v3464_v61 = vld [vmem:[%s4530_s0 + $0x7c] sm:$0xf0]  ;;  %v3129_v62 = vor.u32 %v3460_v57, %v3126_v59  ;;  %v3461_v0 = vld [vmem:[%s4530_s0 + $0x6c] sm:$0xf] }
  0xff   : > { %1437 = vmatpush.bf16.msra.mxu0 %v3197_v16  ;;  %v3133_v63 = vor.u32 %v3464_v61, %v3132_v60  ;;  %v3134_v1 = vld [vmem:[%s4530_s0 + $0x80] sm:$0xf0]  ;;  %v3100_v3 = vld [vmem:[%s4530_s0 + $0x30] sm:$0xf]  ;;  %v3457_v4 = vld [vmem:[%s4530_s0 + $0x44] sm:$0xf0] }
 0x100   : > { %1061 = vadd.xlane.f32.xlu1 %v1050_v22  ;;  %v3137_v2 = vor.u32 %v3461_v0, %v3134_v1  ;;  %v3454_v5 = vld [vmem:[%s4530_s0 + $0x34] sm:$0xf]  ;;  %v3101_v6 = vor.u32 %v3457_v4, %v3100_v3  ;;  %v3102_v7 = vld [vmem:[%s4530_s0 + $0x48] sm:$0xf0]  ;;  %v3108_v8 = vld [vmem:[%s4530_s0 + $0x38] sm:$0xf] }
 0x101   : > { %v3458_v9 = vld [vmem:[%s4530_s0 + $0x4c] sm:$0xf0]  ;;  %v3105_v12 = vor.u32 %v3454_v5, %v3102_v7  ;;  %v3455_v14 = vld [vmem:[%s4530_s0 + $0x3c] sm:$0xf]  ;;  %v3260_v59 = vld [vmem:[%s4530_s0 + $0x160] sm:$0xf] }
 0x102   : > { %v3109_v13 = vor.u32 %v3458_v9, %v3108_v8  ;;  %v3495_v60 = vld [vmem:[%s4530_s0 + $0x174] sm:$0xf0]  ;;  %v3492_v61 = vld [vmem:[%s4530_s0 + $0x164] sm:$0xf]  ;;  %v3262_v0 = vld [vmem:[%s4530_s0 + $0x178] sm:$0xf0] }
 0x103   : > { %v3265_v4 = vor.u32 %v3492_v61, %v3262_v0  ;;  %v3236_v5 = vld [vmem:[%s4530_s0 + $0x130] sm:$0xf]  ;;  %v3486_v8 = vld [vmem:[%s4530_s0 + $0x134] sm:$0xf]  ;;  %v3238_v9 = vld [vmem:[%s4530_s0 + $0x148] sm:$0xf0] }
 0x104   : > { %v3465_v0 = vld [vmem:[%s4530_s0 + $0x84] sm:$0xf0]  ;;  %v3514_v26 = vld [vmem:[%s4525_s27 + $0x10] sm:$0xff] }
 0x106   : > { %1065 = vadd.xlane.f32.xlu0 %v1064_v24 }
 0x169   : > { %v1056_v28 = vpop.xlane.xlu0 %1055 }
 0x16a   : > { %v1067_v30 = vmul.f32 0.03125, %v1056_v28  ;;  %v3472_v28 = vld [vmem:[%s4530_s0 + $0xc4] sm:$0xf] }
 0x16b   : > { %v1060_v27 = vpop.xlane.xlu1 %1059 }
 0x16c   : > { %v1069_v29 = vmul.f32 0.03125, %v1060_v27  ;;  %v1072_v32 = vsub.f32 %v1047_v20, %v1067_v30  ;;  %v3201_v20 = vor.u32 %v3478_v15, %v3198_v17  ;;  %v3475_v27 = vld [vmem:[%s4530_s0 + $0xd4] sm:$0xf0]  ;;  %v3174_v30 = vld [vmem:[%s4530_s0 + $0xd8] sm:$0xf0] }
 0x16d   : > { %v3110_v15 = vld [vmem:[%s4530_s0 + $0x50] sm:$0xf0] }
 0x16e   : > { %v1074_v31 = vsub.f32 %v1049_v19, %v1069_v29  ;;  %v4576_v34 = vsel %vm1054_vm2, %v1072_v32, 0.0  ;;  %v3482_v19 = vld [vmem:[%s4530_s0 + $0x10c] sm:$0xf0]  ;;  %1460 = vmatpush.bf16.msra.mxu1 %v3201_v20  ;;  %v3173_v29 = vor.u32 %v3475_v27, %v3172_v25  ;;  %v3476_v32 = vld [vmem:[%s4530_s0 + $0xdc] sm:$0xf0]  ;;  %v3113_v17 = vor.u32 %v3455_v14, %v3110_v15 }
 0x16f   : > { %v1082_v36 = vmul.f32 %v4576_v34, %v4576_v34  ;;  %v3448_v20 = vld [vmem:[%s4530_s0 + $0x4] sm:$0xf]  ;;  %v3084_v27 = vld [vmem:[%s4530_s0 + $0x8] sm:$0xf]  ;;  %v4699_v15 = vld [vmem:[%s702_s28] ss:$0 sm:$0xff] }
 0x170   : > { %v4572_v33 = vsel %vm1054_vm2, %v1074_v31, 0.0  ;;  %v3180_v31 = vld [vmem:[%s4530_s0 + $0xc8] sm:$0xf]  ;;  %1438 = vmatpush.bf16.msra.mxu0 %v3173_v29  ;;  %v3449_v29 = vld [vmem:[%s4530_s0 + $0xc] sm:$0xf]  ;;  %s5231_s28 = scalar_lea.vmem [#allocation5], %s4479_s4 }
 0x171   : > { %v1084_v35 = vmul.f32 %v4572_v33, %v4572_v33  ;;  %1087 = vadd.xlane.f32.xlu2 %v1082_v36  ;;  %v1058_v37 = vpop.xlane.xlu0 %1057  ;;  %v3181_v36 = vor.u32 %v3476_v32, %v3180_v31  ;;  %v3086_v31 = vld [vmem:[%s4530_s0 + $0x20] sm:$0xf0] }
 0x172   : > { %v1068_v39 = vmul.f32 0.03125, %v1058_v37  ;;  %v3473_v37 = vld [vmem:[%s4530_s0 + $0xcc] sm:$0xf]  ;;  %v3089_v32 = vor.u32 %v3449_v29, %v3086_v31  ;;  %v4713_v29 = vld [vmem:[%s5231_s28] ss:$0 sm:$0xff] }
 0x173   : > { %1091 = vadd.xlane.f32.xlu1 %v1084_v35  ;;  %v1062_v38 = vpop.xlane.xlu1 %1061  ;;  %v3177_v35 = vor.u32 %v3472_v28, %v3174_v30  ;;  %v3452_v28 = vld [vmem:[%s4530_s0 + $0x1c] sm:$0xf0] }
 0x174   : > { %v1070_v40 = vmul.f32 0.03125, %v1062_v38  ;;  %v1073_v41 = vsub.f32 %v1048_v21, %v1068_v39  ;;  %v3205_v21 = vor.u32 %v3482_v19, %v3204_v18  ;;  %v3182_v38 = vld [vmem:[%s4530_s0 + $0xe0] sm:$0xf0]  ;;  %v3076_v18 = vld [vmem:[%s4530_s0] sm:$0xf]  ;;  %v3085_v30 = vor.u32 %v3452_v28, %v3084_v27 }
 0x175   : > { %v3185_v39 = vor.u32 %v3473_v37, %v3182_v38  ;;  %1461 = vmatpush.bf16.msra.mxu1 %v3177_v35  ;;  %v3451_v19 = vld [vmem:[%s4530_s0 + $0x14] sm:$0xf0]  ;;  %v3477_v27 = vld [vmem:[%s4530_s0 + $0xe4] sm:$0xf0] }
 0x176   : > { %v1075_v42 = vsub.f32 %v1050_v22, %v1070_v40  ;;  %v4584_v43 = vsel %vm1054_vm2, %v1073_v41, 0.0  ;;  %v3479_v22 = vld [vmem:[%s4530_s0 + $0xfc] sm:$0xf]  ;;  %1483 = vmatpush.bf16.msra.mxu2 %v3205_v21  ;;  %v3148_v40 = vld [vmem:[%s4530_s0 + $0x90] sm:$0xf] }
 0x177   : > { %v1083_v44 = vmul.f32 %v4584_v43, %v4584_v43  ;;  %v3469_v41 = vld [vmem:[%s4530_s0 + $0xa4] sm:$0xf0] }
 0x178   : > { %v4590_v47 = vsel %vm1054_vm2, %v1075_v42, 0.0  ;;  %v3466_v42 = vld [vmem:[%s4530_s0 + $0x94] sm:$0xf] }
 0x179   : > { %1089 = vadd.xlane.f32.xlu2 %v1083_v44  ;;  %v1066_v45 = vpop.xlane.xlu0 %1065  ;;  %v1085_v49 = vmul.f32 %v4590_v47, %v4590_v47  ;;  %v3149_v44 = vor.u32 %v3469_v41, %v3148_v40 }
 0x17a   : > { %v1071_v46 = vmul.f32 0.03125, %v1066_v45  ;;  %1484 = vmatpush.bf16.msra.mxu2 %v3181_v36  ;;  %v3150_v45 = vld [vmem:[%s4530_s0 + $0xa8] sm:$0xf0] }
 0x17b   : > { %1439 = vmatpush.bf16.msra.mxu0 %v3149_v44 }
 0x17c   : > { %v1076_v48 = vsub.f32 %v1051_v23, %v1071_v46  ;;  %v3206_v23 = vld [vmem:[%s4530_s0 + $0x110] sm:$0xf0]  ;;  %v3156_v46 = vld [vmem:[%s4530_s0 + $0x98] sm:$0xf] }
 0x17d   : > { %v3209_v24 = vor.u32 %v3479_v22, %v3206_v23  ;;  %v3077_v23 = vor.u32 %v3451_v19, %v3076_v18  ;;  %v3214_v18 = vld [vmem:[%s4530_s0 + $0x118] sm:$0xf0] }
 0x17e   : > { %v4596_v50 = vsel %vm1054_vm2, %v1076_v48, 0.0  ;;  %v3153_v48 = vor.u32 %v3466_v42, %v3150_v45 }
 0x17f   : > { %v1086_v51 = vmul.f32 %v4596_v50, %v4596_v50  ;;  %1506 = vmatpush.bf16.msra.mxu3 %v3209_v24  ;;  %1440 = vmatpush.bf16.msra.mxu0 %v3125_v58  ;;  %v3078_v24 = vld [vmem:[%s4530_s0 + $0x18] sm:$0xf0] }
 0x180   : > { %1462 = vmatpush.bf16.msra.mxu1 %v3153_v48  ;;  %v3081_v25 = vor.u32 %v3448_v20, %v3078_v24 }
 0x181   : > { %1093 = vadd.xlane.f32.xlu2 %v1085_v49  ;;  %v1095_v52 = vsel %vm1063_vm1, %v1086_v51, 0.0  ;;  %v3470_v49 = vld [vmem:[%s4530_s0 + $0xac] sm:$0xf0]  ;;  %v3467_v51 = vld [vmem:[%s4530_s0 + $0x9c] sm:$0xf] }
 0x182   : > { %1096 = vadd.xlane.f32.xlu0 %v1095_v52  ;;  %v3158_v52 = vld [vmem:[%s4530_s0 + $0xb0] sm:$0xf0]  ;;  %v3157_v53 = vor.u32 %v3470_v49, %v3156_v46 }
 0x183   : > { %1507 = vmatpush.bf16.msra.mxu3 %v3185_v39  ;;  %v3161_v54 = vor.u32 %v3467_v51, %v3158_v52  ;;  %1441 = vmatpush.bf16.msra.mxu0 %v3101_v6  ;;  %v3489_v6 = vld [vmem:[%s4530_s0 + $0x144] sm:$0xf0] }
 0x184   : > { %1485 = vmatpush.bf16.msra.mxu2 %v3157_v53  ;;  %1463 = vmatpush.bf16.msra.mxu1 %v3129_v62  ;;  %v3237_v7 = vor.u32 %v3489_v6, %v3236_v5  ;;  %v3116_v6 = vld [vmem:[%s4530_s0 + $0x40] sm:$0xf] }
 0x187   : > { %1508 = vmatpush.bf16.msra.mxu3 %v3161_v54  ;;  %1442 = vmatpush.bf16.msra.mxu0 %v3077_v23 }
 0x188   : > { %1486 = vmatpush.bf16.msra.mxu2 %v3133_v63  ;;  %1464 = vmatpush.bf16.msra.mxu1 %v3105_v12  ;;  %v3261_v63 = vor.u32 %v3495_v60, %v3260_v59  ;;  %v3212_v12 = vld [vmem:[%s4530_s0 + $0x100] sm:$0xf]  ;;  %v3166_v60 = vld [vmem:[%s4530_s0 + $0xb8] sm:$0xf0] }
 0x18b   : > { %1509 = vmatpush.bf16.msra.mxu3 %v3137_v2  ;;  %1527 = vmatpush.bf16.msrb.mxu0 %v3261_v63  ;;  %v3140_v63 = vld [vmem:[%s4530_s0 + $0x70] sm:$0xf] }
 0x18c   : > { %1487 = vmatpush.bf16.msra.mxu2 %v3109_v13  ;;  %1465 = vmatpush.bf16.msra.mxu1 %v3081_v25  ;;  %v3483_v13 = vld [vmem:[%s4530_s0 + $0x114] sm:$0xf0] }
 0x18f   : > { %1510 = vmatpush.bf16.msra.mxu3 %v3113_v17  ;;  %v3480_v17 = vld [vmem:[%s4530_s0 + $0x104] sm:$0xf]  ;;  %1528 = vmatpush.bf16.msrb.mxu0 %v3237_v7  ;;  %v3459_v7 = vld [vmem:[%s4530_s0 + $0x54] sm:$0xf0] }
 0x190   : > { %1488 = vmatpush.bf16.msra.mxu2 %v3085_v30  ;;  %1550 = vmatpush.bf16.msrb.mxu1 %v3265_v4  ;;  %v3217_v25 = vor.u32 %v3480_v17, %v3214_v18  ;;  %v3142_v4 = vld [vmem:[%s4530_s0 + $0x88] sm:$0xf0]  ;;  %v3450_v18 = vld [vmem:[%s4530_s0 + $0x14] sm:$0xf] }
 0x193   : > { %1511 = vmatpush.bf16.msra.mxu3 %v3089_v32  ;;  %v3474_v32 = vld [vmem:[%s4530_s0 + $0xd4] sm:$0xf] }
 0x1e4   : > { %v1088_v11 = vpop.xlane.xlu2 %1087 }
 0x1e5   : > { %v1098_v16 = vmul.f32 0.03125, %v1088_v11  ;;  %v3241_v11 = vor.u32 %v3486_v8, %v3238_v9  ;;  %v3456_v9 = vld [vmem:[%s4530_s0 + $0x44] sm:$0xf] }
 0x1e6   : > { %v1092_v10 = vpop.xlane.xlu1 %1091 }
 0x1e7   : > { %v1100_v21 = vmul.f32 0.03125, %v1092_v10  ;;  %v1103_v22 = vadd.f32 1e-05, %v1098_v16  ;;  %1551 = vmatpush.bf16.msrb.mxu1 %v3241_v11 }
 0x1e9   : > { %3663 = vrsqrt.f32 %v1103_v22  ;;  %v4665_v35 = vadd.f32 1e-05, %v1100_v21  ;;  %vm1114_vm4 = vweird.f32 %v1103_v22 }
 0x1eb   : > { %3665 = vrsqrt.f32 %v4665_v35  ;;  %vm1134_vm9 = vweird.f32 %v4665_v35  ;;  %1552 = vmatpush.bf16.msrb.mxu1 %v3217_v25 }
 0x1ec   : > { %v1090_v36 = vpop.xlane.xlu2 %1089 }
 0x1ed   : > { %v1099_v37 = vmul.f32 0.03125, %v1090_v36  ;;  %v3190_v36 = vld [vmem:[%s4530_s0 + $0xe8] sm:$0xf0] }
 0x1ef   : > { %v1104_v38 = vadd.f32 1e-05, %v1099_v37  ;;  %v3664_v39 = vpop.eup %3663 }
 0x1f0   : > { %v1109_v40 = vmul.f32 %v3664_v39, %v1103_v22  ;;  %vm1115_vm3 = vweird.f32 %v3664_v39  ;;  %v3213_v22 = vor.u32 %v3483_v13, %v3212_v12 }
 0x1f1   : > { %3667 = vrsqrt.f32 %v1104_v38  ;;  %v4668_v44 = vpop.eup %3665  ;;  %vm4680_vm5 = vmor %vm1114_vm4, %vm1115_vm3  ;;  %vm1124_vm7 = vweird.f32 %v1104_v38  ;;  %vm1859_vm4 = vcmask 1046528  }
 0x1f2   : > { %v1110_v41 = vmul.f32 %v3664_v39, %v1109_v40  ;;  %v1129_v54 = vmul.f32 %v4668_v44, %v4665_v35  ;;  %vm1135_vm10 = vweird.f32 %v4668_v44  ;;  %1529 = vmatpush.bf16.msrb.mxu0 %v3213_v22 }
 0x1f3   : > { %vm4731_vm13 = vmor %vm1134_vm9, %vm1135_vm10 }
 0x1f4   : > { %v1094_v42 = vpop.xlane.xlu2 %1093  ;;  %v1111_v45 = vmul.f32 0.5, %v1110_v41  ;;  %v1130_v1 = vmul.f32 %v4668_v44, %v1129_v54 }
 0x1f5   : > { %v1101_v46 = vmul.f32 0.03125, %v1094_v42  ;;  %v1097_v48 = vpop.xlane.xlu0 %1096  ;;  %v3193_v42 = vor.u32 %v3474_v32, %v3190_v36 }
 0x1f6   : > { %v1102_v49 = vmul.f32 0.03125, %v1097_v48  ;;  %v1112_v52 = vsub.f32 1.5, %v1111_v45  ;;  %v1131_v19 = vmul.f32 0.5, %v1130_v1  ;;  %v3462_v1 = vld [vmem:[%s4530_s0 + $0x74] sm:$0xf] }
 0x1f7   : > { %v3668_v51 = vpop.eup %3667  ;;  %v4670_v53 = vadd.f32 1e-05, %v1101_v46  ;;  %1553 = vmatpush.bf16.msrb.mxu1 %v3193_v42 }
 0x1f8   : > { %v1119_v55 = vmul.f32 %v3668_v51, %v1104_v38  ;;  %v1113_v56 = vmul.f32 %v3664_v39, %v1112_v52  ;;  %v4675_v57 = vadd.f32 1e-05, %v1102_v49  ;;  %vm1125_vm6 = vweird.f32 %v3668_v51 }
 0x1f9   : > { %3669 = vrsqrt.f32 %v4670_v53  ;;  %vm1126_vm8 = vmor %vm1124_vm7, %vm1125_vm6  ;;  %v1132_v37 = vsub.f32 1.5, %v1131_v19  ;;  %vm1144_vm11 = vweird.f32 %v4670_v53  ;;  %v3094_v19 = vld [vmem:[%s4530_s0 + $0x28] sm:$0xf0]  ;;  %vm1602_vm6 = vcmask 138240  }
 0x1fa   : > { %v1120_v58 = vmul.f32 %v3668_v51, %v1119_v55  ;;  %v1117_v2 = vsel %vm4680_vm5, %v3664_v39, %v1113_v56  ;;  %3671 = vrsqrt.f32 %v4675_v57  ;;  %v3164_v55 = vld [vmem:[%s4530_s0 + $0xa0] sm:$0xf]  ;;  %v3471_v56 = vld [vmem:[%s4530_s0 + $0xb4] sm:$0xf0]  ;;  %vm1154_vm15 = vweird.f32 %v4675_v57 }
 0x1fb   : > { %v1158_v16 = vmul.f32 %v1117_v2, %v4576_v34  ;;  %v3188_v34 = vld [vmem:[%s4530_s0 + $0xd0] sm:$0xf]  ;;  %v1133_v48 = vmul.f32 %v4668_v44, %v1132_v37  ;;  %v3165_v59 = vor.u32 %v3471_v56, %v3164_v55  ;;  %v3097_v22 = vor.u32 %v3450_v18, %v3094_v19 }
 0x1fc   : > { %v1121_v3 = vmul.f32 0.5, %v1120_v58  ;;  %v3189_v40 = vor.u32 %v3477_v27, %v3188_v34  ;;  %v3468_v58 = vld [vmem:[%s4530_s0 + $0xa4] sm:$0xf]  ;;  %vm1640_vm5 = vcmask 1040384   ;;  %vm1609_vm7 = vcmask 131072  }
 0x1fd   : > { %v1166_v30 = vmul.f32 %v4699_v15, %v1158_v16  ;;  %v1137_v61 = vsel %vm4731_vm13, %v4668_v44, %v1133_v48  ;;  %v3169_v62 = vor.u32 %v3468_v58, %v3166_v60  ;;  %v3145_v44 = vor.u32 %v3462_v1, %v3142_v4  ;;  %v3453_v16 = vld [vmem:[%s4530_s0 + $0x24] sm:$0xf0] }
 0x1fe   : > { %v1122_v10 = vsub.f32 1.5, %v1121_v3  ;;  %1530 = vmatpush.bf16.msrb.mxu0 %v3189_v40  ;;  %v3141_v3 = vor.u32 %v3465_v0, %v3140_v63  ;;  %v1160_v8 = vmul.f32 %v1137_v61, %v4572_v33  ;;  %v4791_v40 = vld [vmem:[%s4535_s3] sm:$0x3f]  ;;  %s5245_s3 = scalar_lea.vmem [#allocation10], %s4479_s4 }
 0x1ff   : > { %v4695_v14 = vpop.eup %3669  ;;  %v1174_v45 = vadd.f32 %v4713_v29, %v1166_v30  ;;  %1554 = vmatpush.bf16.msrb.mxu1 %v3169_v62  ;;  %v1183_v49 = vperm.slane %v4791_v40, 0 }
 0x200   : > { %v1123_v20 = vmul.f32 %v3668_v51, %v1122_v10  ;;  %v1139_v21 = vmul.f32 %v4695_v14, %v4670_v53  ;;  %v4709_v28 = vpop.eup %3671  ;;  %vm1145_vm12 = vweird.f32 %v4695_v14  ;;  %v3118_v10 = vld [vmem:[%s4530_s0 + $0x58] sm:$0xf0]  ;;  %v1168_v17 = vmul.f32 %v4699_v15, %v1160_v8 }
 0x201   : > { %vm4738_vm14 = vmor %vm1144_vm11, %vm1145_vm12  ;;  %v3121_v13 = vor.u32 %v3456_v9, %v3118_v10  ;;  %vm1155_vm0 = vweird.f32 %v4709_v28  ;;  %v1186_v53 = vperm.slane %v4791_v40, 3 }
 0x202   : > { %v1127_v23 = vsel %vm1126_vm8, %v3668_v51, %v1123_v20  ;;  %v1140_v24 = vmul.f32 %v4695_v14, %v1139_v21  ;;  %1531 = vmatpush.bf16.msrb.mxu0 %v3165_v59  ;;  %vm1156_vm3 = vmor %vm1154_vm15, %vm1155_vm0 }
 0x203   : > { %v1159_v31 = vmul.f32 %v1127_v23, %v4584_v43  ;;  %v1149_v43 = vmul.f32 %v4709_v28, %v4675_v57  ;;  %1555 = vmatpush.bf16.msrb.mxu1 %v3145_v44  ;;  %v1176_v23 = vadd.f32 %v4713_v29, %v1168_v17 }
 0x204   : > { %v1141_v38 = vmul.f32 0.5, %v1140_v24 }
 0x205   : > { %v1167_v39 = vmul.f32 %v4699_v15, %v1159_v31  ;;  %v1150_v35 = vmul.f32 %v4709_v28, %v1149_v43 }
 0x206   : > { %v1142_v41 = vsub.f32 1.5, %v1141_v38  ;;  %1532 = vmatpush.bf16.msrb.mxu0 %v3141_v3 }
 0x207   : > { %v1175_v46 = vadd.f32 %v4713_v29, %v1167_v39  ;;  %v1151_v5 = vmul.f32 0.5, %v1150_v35  ;;  %1556 = vmatpush.bf16.msrb.mxu1 %v3121_v13 }
 0x208   : > { %v1143_v51 = vmul.f32 %v4695_v14, %v1142_v41  ;;  %v1185_v41 = vperm.slane %v4791_v40, 2 }
 0x209   : > { %v4736_v52 = vpack.c.bf16 %v1175_v46, %v1174_v45  ;;  %v1152_v12 = vsub.f32 1.5, %v1151_v5 }
 0x20a   : > { %v1147_v54 = vsel %vm4738_vm14, %v4695_v14, %v1143_v51  ;;  %v3092_v14 = vld [vmem:[%s4530_s0 + $0x10] sm:$0xf]  ;;  %s5247_s0 = scalar_lea.vmem [#allocation13], %s4479_s4 }
 0x20b   : > { %1443 = vmatmul.bf16.vlgmr.msra.gmra.mxu0 %v4736_v52  ;;  %1466 = vmatmul.bf16.vlgmr.msra.gmra.mxu1 %v4736_v52  ;;  %v1161_v2 = vmul.f32 %v1147_v54, %v4590_v47  ;;  %v3117_v47 = vor.u32 %v3459_v7, %v3116_v6  ;;  %v3093_v20 = vor.u32 %v3453_v16, %v3092_v14 }
 0x20c   : > { %1489 = vmatmul.bf16.vlgmr.msra.gmra.mxu2 %v4736_v52  ;;  %1512 = vmatmul.bf16.vlgmr.msra.gmra.mxu3 %v4736_v52  ;;  %v1153_v21 = vmul.f32 %v4709_v28, %v1152_v12 }
 0x20d   : > { %v1169_v11 = vmul.f32 %v4699_v15, %v1161_v2  ;;  %1533 = vmatpush.bf16.msrb.mxu0 %v3117_v47  ;;  %1557 = vmatpush.bf16.msrb.mxu1 %v3097_v22 }
 0x20e   : > { %v1157_v25 = vsel %vm1156_vm3, %v4709_v28, %v1153_v21 }
 0x20f   : > { %v1177_v33 = vadd.f32 %v4713_v29, %v1169_v11  ;;  %v1162_v57 = vmul.f32 %v1157_v25, %v4596_v50  ;;  %v1184_v25 = vperm.slane %v4791_v40, 1 }
 0x211   : > { %v1180_v24 = vpack.c.bf16 %v1177_v33, %v1176_v23  ;;  %1534 = vmatpush.bf16.msrb.mxu0 %v3093_v20  ;;  %v1170_v34 = vmul.f32 %v4699_v15, %v1162_v57 }
 0x213   : > { %v1178_v27 = vadd.f32 %v4713_v29, %v1170_v34 }
 0x215   : > { %v1181_v30 = vpack.c.bf16 %v1178_v27, %v1178_v27 }
 0x21b   : > { %1448 = vmatmul.bf16.gmra.mxu0 %v1180_v24  ;;  %1471 = vmatmul.bf16.gmra.mxu1 %v1180_v24 }
 0x21c   : > { %1494 = vmatmul.bf16.gmra.mxu2 %v1180_v24  ;;  %1517 = vmatmul.bf16.gmra.mxu3 %v1180_v24 }
 0x22b   : > { %1453 = vmatmul.bf16.gmra.mxu0 %v1181_v30  ;;  %1476 = vmatmul.bf16.gmra.mxu1 %v1181_v30 }
 0x22c   : > { %1499 = vmatmul.bf16.gmra.mxu2 %v1181_v30  ;;  %1522 = vmatmul.bf16.gmra.mxu3 %v1181_v30 }
 0x23b   : > { %1535 = vmatmul.bf16.vlgmr.msrb.gmra.mxu0 %v4736_v52  ;;  %1558 = vmatmul.bf16.vlgmr.msrb.gmra.mxu1 %v4736_v52 }
 0x24b   : > { %1540 = vmatmul.bf16.gmra.mxu0 %v1180_v24  ;;  %1563 = vmatmul.bf16.gmra.mxu1 %v1180_v24 }
 0x25b   : > { %1545 = vmatmul.bf16.gmra.mxu0 %v1181_v30  ;;  %1568 = vmatmul.bf16.gmra.mxu1 %v1181_v30 }
 0x288   : > { %v1444_v28 = vpop.f32.mrf.mxu0  ;;  %v4784_v50 = vpop.f32.mrf.mxu1 }
 0x289   : > { %v1445_v52 = vadd.f32 %v1444_v28, %v1183_v49 }
 0x28b   : > { %v1573_v60 = vmul.f32 0.25, %v1445_v52 }
 0x28f   : > { %v1490_v15 = vpop.f32.mrf.mxu2  ;;  %v1513_v31 = vpop.f32.mrf.mxu3 }
 0x290   : > { %v1446_v29 = vpop.f32.mrf.mxu0  ;;  %v4786_v32 = vpop.f32.mrf.mxu1  ;;  %v1491_v55 = vadd.f32 %v1490_v15, %v1185_v41  ;;  %v1514_v5 = vadd.f32 %v1513_v31, %v1186_v53  ;;  %v1468_v15 = vadd.f32 %v4784_v50, %v1184_v25  ;;  %v1188_v50 = vperm.slane %v4791_v40, 5 }
 0x291   : > { %v1447_v62 = vadd.f32 %v1446_v29, %v1183_v49 }
 0x293   : > { %v1574_v10 = vmul.f32 0.25, %v1447_v62 }
 0x297   : > { %v1492_v36 = vpop.f32.mrf.mxu2  ;;  %v1515_v37 = vpop.f32.mrf.mxu3 }
 0x298   : > { %v1449_v38 = vpop.f32.mrf.mxu0  ;;  %v4788_v39 = vpop.f32.mrf.mxu1  ;;  %v1493_v51 = vadd.f32 %v1492_v36, %v1185_v41  ;;  %v1516_v61 = vadd.f32 %v1515_v37, %v1186_v53  ;;  %v1715_v37 = vmul.f32 0.25, %v1468_v15 }
 0x299   : > { %v1450_v11 = vadd.f32 %v1449_v38, %v1183_v49 }
 0x29b   : > { %v1575_v19 = vmul.f32 0.25, %v1450_v11 }
 0x29d   : > { %v1860_v27 = vrot.slane %v1575_v19, 1 }
 0x29f   : > { %v1495_v43 = vpop.f32.mrf.mxu2  ;;  %v1518_v42 = vpop.f32.mrf.mxu3 }
 0x2a0   : > { %v1496_v45 = vadd.f32 %v1495_v43, %v1185_v41  ;;  %v1451_v46 = vpop.f32.mrf.mxu0  ;;  %v4794_v48 = vpop.f32.mrf.mxu1  ;;  %v1519_v59 = vadd.f32 %v1518_v42, %v1186_v53  ;;  %v1187_v43 = vperm.slane %v4791_v40, 4 }
 0x2a1   : > { %v1452_v7 = vadd.f32 %v1451_v46, %v1183_v49 }
 0x2a2   : > { %1589 = vmatpush.xpose.msrb.mxu2 %v1496_v45  ;;  %v1871_v21 = vrot.slane %v1496_v45, 1  ;;  %v2039_v22 = vrot.slane %v1519_v59, 1 }
 0x2a3   : > { %v1854_v13 = vmul.f32 0.25, %v1452_v7 }
 0x2a5   : > { %v1861_v23 = vrot.slane %v1854_v13, 1 }
 0x2a6   : > { %1590 = vmatpush.xpose.msrb.mxu2 %v1493_v51 }
 0x2a7   : > { %v1497_v54 = vpop.f32.mrf.mxu2  ;;  %v1520_v35 = vpop.f32.mrf.mxu3  ;;  %v1862_v28 = vsel %vm1859_vm4, %v1860_v27, %v1861_v23 }
 0x2a8   : > { %v1454_v56 = vpop.f32.mrf.mxu0  ;;  %v4798_v58 = vpop.f32.mrf.mxu1  ;;  %v1498_v44 = vadd.f32 %v1497_v54, %v1185_v41  ;;  %v1521_v6 = vadd.f32 %v1520_v35, %v1186_v53  ;;  %v1473_v54 = vadd.f32 %v4788_v39, %v1184_v25 }
 0x2a9   : > { %v1455_v24 = vadd.f32 %v1454_v56, %v1183_v49 }
 0x2aa   : > { %1591 = vmatpush.xpose.msrb.mxu2 %v1491_v55  ;;  %v1872_v47 = vrot.slane %v1498_v44, 1  ;;  %v2040_v12 = vrot.slane %v1521_v6, 1 }
 0x2ab   : > { %v1855_v30 = vmul.f32 0.25, %v1455_v24 }
 0x2ac   : > { %v1873_v57 = vsel %vm1859_vm4, %v1871_v21, %v1872_v47  ;;  %v2041_v34 = vsel %vm1859_vm4, %v2039_v22, %v2040_v12 }
 0x2ad   : > { %1592 = vmatmul.f32.vlgmr.msrb.gmra.mxu2 %v1573_v60  ;;  %v1863_v36 = vrot.slane %v1855_v30, 1 }
 0x2ae   : > { %1731 = vmatpush.xpose.msra.mxu2 %v1519_v59 }
 0x2af   : > { %v1500_v63 = vpop.f32.mrf.mxu2  ;;  %v1523_v0 = vpop.f32.mrf.mxu3  ;;  %v1864_v38 = vsel %vm1859_vm4, %v1861_v23, %v1863_v36 }
 0x2b0   : > { %v1501_v1 = vadd.f32 %v1500_v63, %v1185_v41  ;;  %v1524_v2 = vadd.f32 %v1523_v0, %v1186_v53  ;;  %v1456_v3 = vpop.f32.mrf.mxu0  ;;  %v1479_v4 = vpop.f32.mrf.mxu1  ;;  %v1470_v41 = vadd.f32 %v4786_v32, %v1184_v25  ;;  %v1475_v32 = vadd.f32 %v4794_v48, %v1184_v25 }
 0x2b1   : > { %v1478_v48 = vadd.f32 %v4798_v58, %v1184_v25 }
 0x2b2   : > { %1732 = vmatpush.xpose.msra.mxu2 %v1516_v61  ;;  %v1874_v8 = vrot.slane %v1501_v1, 1  ;;  %v2042_v9 = vrot.slane %v1524_v2, 1  ;;  %v1716_v49 = vmul.f32 0.25, %v1470_v41  ;;  %v1717_v61 = vmul.f32 0.25, %v1473_v54 }
 0x2b3   : > { %v2023_v63 = vmul.f32 0.25, %v1475_v32 }
 0x2b4   : > { %1892 = vmatpush.xpose.msra.mxu0 %v1874_v8  ;;  %v1875_v17 = vsel %vm1859_vm4, %v1872_v47, %v1874_v8  ;;  %v2043_v18 = vsel %vm1859_vm4, %v2040_v12, %v2042_v9  ;;  %v2028_v44 = vrot.slane %v1717_v61, 1 }
 0x2b5   : > { %1595 = vmatmul.f32.gmra.mxu2 %v1574_v10  ;;  %v2029_v1 = vrot.slane %v2023_v63, 1 }
 0x2b6   : > { %1733 = vmatpush.xpose.msra.mxu2 %v1514_v5 }
 0x2b7   : > { %v1502_v14 = vpop.f32.mrf.mxu2  ;;  %v1525_v16 = vpop.f32.mrf.mxu3  ;;  %v2030_v10 = vsel %vm1859_vm4, %v2028_v44, %v2029_v1 }
 0x2b8   : > { %1893 = vmatpush.xpose.msra.mxu0 %v1875_v17  ;;  %v1536_v33 = vpop.f32.mrf.mxu0  ;;  %v1559_v20 = vpop.f32.mrf.mxu1 }
 0x2b9   : > { %v1537_v52 = vadd.f32 %v1536_v33, %v1187_v43  ;;  %v1560_v60 = vadd.f32 %v1559_v20, %v1188_v50 }
 0x2ba   : > { %2060 = vmatpush.xpose.msrb.mxu2 %v2042_v9  ;;  %v2024_v9 = vmul.f32 0.25, %v1478_v48 }
 0x2bc   : > { %1894 = vmatpush.xpose.msra.mxu0 %v1873_v57  ;;  %v2031_v12 = vrot.slane %v2024_v9, 1 }
 0x2bd   : > { %1598 = vmatmul.f32.gmra.mxu2 %v1575_v19 }
 0x2be   : > { %2061 = vmatpush.xpose.msrb.mxu2 %v2043_v18  ;;  %v2032_v17 = vsel %vm1859_vm4, %v2029_v1, %v2031_v12 }
 0x2bf   : > { %1895 = vmatmul.f32.vlgmr.msra.gmra.mxu0 %v1862_v28 }
 0x2c0   : > { %v1538_v31 = vpop.f32.mrf.mxu0  ;;  %v1561_v29 = vpop.f32.mrf.mxu1 }
 0x2c1   : > { %v1539_v51 = vadd.f32 %v1538_v31, %v1187_v43  ;;  %v1562_v35 = vadd.f32 %v1561_v29, %v1188_v50 }
 0x2c2   : > { %2062 = vmatpush.xpose.msrb.mxu2 %v2041_v34 }
 0x2c5   : > { %1734 = vmatmul.f32.vlgmr.msra.gmra.mxu2 %v1715_v37 }
 0x2c7   : > { %1898 = vmatmul.f32.gmra.mxu0 %v1864_v38 }
 0x2c8   : > { %v1541_v42 = vpop.f32.mrf.mxu0  ;;  %v1564_v45 = vpop.f32.mrf.mxu1 }
 0x2c9   : > { %v1542_v46 = vadd.f32 %v1541_v42, %v1187_v43  ;;  %v1565_v53 = vadd.f32 %v1564_v45, %v1188_v50 }
 0x2cb   : > { %3266 = vmatpush.msk.msrb.mxu3 %vm1640_vm5, %v1542_v46  ;;  %v2102_v40 = vrot.slane %v1565_v53, 1  ;;  %v1934_v47 = vrot.slane %v1542_v46, 1 }
 0x2cd   : > { %1737 = vmatmul.f32.gmra.mxu2 %v1716_v49  ;;  %1658 = vmatpush.msrb.mxu3 %v1539_v51 }
 0x2cf   : > { %1901 = vmatmul.f32.gmra.mxu0 %v1863_v36  ;;  %1659 = vmatpush.msrb.mxu3 %v1537_v52 }
 0x2d0   : > { %v1543_v55 = vpop.f32.mrf.mxu0  ;;  %v1566_v56 = vpop.f32.mrf.mxu1 }
 0x2d1   : > { %3270 = vmatpush.msk.msra.mxu3 %vm1640_vm5, %v1565_v53  ;;  %v1567_v59 = vadd.f32 %v1566_v56, %v1188_v50  ;;  %v1544_v0 = vadd.f32 %v1543_v55, %v1187_v43 }
 0x2d3   : > { %1797 = vmatpush.msra.mxu3 %v1562_v35  ;;  %v2103_v62 = vrot.slane %v1567_v59, 1  ;;  %v1935_v6 = vrot.slane %v1544_v0, 1 }
 0x2d5   : > { %1798 = vmatpush.msra.mxu3 %v1560_v60  ;;  %1740 = vmatmul.f32.gmra.mxu2 %v1717_v61  ;;  %v4816_v39 = vsel %vm1859_vm4, %v2102_v40, %v2103_v62  ;;  %v1936_v16 = vsel %vm1859_vm4, %v1934_v47, %v1935_v6 }
 0x2d8   : > { %v1546_v2 = vpop.f32.mrf.mxu0  ;;  %v1569_v3 = vpop.f32.mrf.mxu1 }
 0x2d9   : > { %v1547_v4 = vadd.f32 %v1546_v2, %v1187_v43  ;;  %v4819_v5 = vadd.f32 %v1569_v3, %v1188_v50 }
 0x2db   : > { %v1937_v7 = vrot.slane %v1547_v4, 1  ;;  %v2105_v8 = vrot.slane %v4819_v5, 1 }
 0x2dd   : > { %2063 = vmatmul.f32.vlgmr.msrb.gmra.mxu2 %v2030_v10  ;;  %3274 = vmatpush.msk.msra.mxu1 %vm1640_vm5, %v1937_v7  ;;  %v1938_v11 = vsel %vm1859_vm4, %v1935_v6, %v1937_v7  ;;  %v2106_v58 = vsel %vm1859_vm4, %v2103_v62, %v2105_v8 }
 0x2df   : > { %1966 = vmatpush.msra.mxu1 %v1938_v11 }
 0x2e0   : > { %v1548_v13 = vpop.f32.mrf.mxu0  ;;  %v1571_v14 = vpop.f32.mrf.mxu1 }
 0x2e1   : > { %1967 = vmatpush.msra.mxu1 %v1936_v16  ;;  %v3503_v14 = vld [vmem:[%s4494_s7 + $0x38] sm:$0xff] }
 0x2e2   : > { %2317 = vmatpush.bf16.msrb.mxu0 %v3503_v14 }
 0x2e5   : > { %2066 = vmatmul.f32.gmra.mxu2 %v2032_v17 }
 0x2ed   : > { %2069 = vmatmul.f32.gmra.mxu2 %v2031_v12 }
 0x330   : > { %v1593_v18 = vpop.f32.mrf.mxu2 }
 0x331   : > { %v1603_v19 = vsel %vm1602_vm6, %v1593_v18, -inf }
 0x332   : > { %1604 = vmax.xlane.f32.xlu1 %v1603_v19 }
 0x338   : > { %v1596_v33 = vpop.f32.mrf.mxu2 }
 0x339   : > { %v1606_v20 = vsel %vm1602_vm6, %v1596_v33, -inf }
 0x33a   : > { %1607 = vmax.xlane.f32.xlu2 %v1606_v20 }
 0x33c   : > { %v4835_v34 = vpop.f32.mrf.mxu0 }
 0x33d   : > { %v1905_v30 = vsel %vm1602_vm6, %v4835_v34, -inf }
 0x340   : > { %v1599_v21 = vpop.f32.mrf.mxu2 }
 0x341   : > { %v1610_v22 = vsel %vm1609_vm7, %v1599_v21, -inf }
 0x342   : > { %1611 = vmax.xlane.f32.xlu0 %v1610_v22 }
 0x344   : > { %v4847_v29 = vpop.f32.mrf.mxu0 }
 0x345   : > { %v1908_v37 = vsel %vm1602_vm6, %v4847_v29, -inf }
 0x348   : > { %v1735_v23 = vpop.f32.mrf.mxu2 }
 0x349   : > { %v1744_v24 = vsel %vm1602_vm6, %v1735_v23, -inf }
 0x34a   : > { %1745 = vmax.xlane.f32.xlu1 %v1744_v24 }
 0x34c   : > { %v4855_v41 = vpop.f32.mrf.mxu0 }
 0x34d   : > { %v1911_v45 = vsel %vm1609_vm7, %v4855_v41, -inf }
 0x350   : > { %v1738_v25 = vpop.f32.mrf.mxu2 }
 0x351   : > { %v1747_v57 = vsel %vm1602_vm6, %v1738_v25, -inf }
 0x352   : > { %1748 = vmax.xlane.f32.xlu2 %v1747_v57 }
 0x358   : > { %v4837_v27 = vpop.f32.mrf.mxu2 }
 0x359   : > { %v1750_v28 = vsel %vm1609_vm7, %v4837_v27, -inf }
 0x35a   : > { %1906 = vmax.xlane.f32.xlu2 %v1905_v30  ;;  %1751 = vmax.xlane.f32.xlu0 %v1750_v28 }
 0x360   : > { %v4843_v15 = vpop.f32.mrf.mxu2 }
 0x361   : > { %v2073_v31 = vsel %vm1602_vm6, %v4843_v15, -inf }
 0x362   : > { %2074 = vmax.xlane.f32.xlu1 %v2073_v31 }
 0x368   : > { %v4849_v36 = vpop.f32.mrf.mxu2 }
 0x369   : > { %v2076_v38 = vsel %vm1602_vm6, %v4849_v36, -inf }
 0x36a   : > { %1909 = vmax.xlane.f32.xlu1 %v1908_v37  ;;  %2077 = vmax.xlane.f32.xlu0 %v2076_v38 }
 0x370   : > { %v4857_v43 = vpop.f32.mrf.mxu2 }
 0x371   : > { %v2079_v42 = vsel %vm1609_vm7, %v4857_v43, -inf }
 0x372   : > { %2080 = vmax.xlane.f32.xlu2 %v2079_v42  ;;  %1912 = vmax.xlane.f32.xlu0 %v1911_v45  ;;  %v3502_v42 = vld [vmem:[%s4494_s7 + $0x30] sm:$0xff]  ;;  %v3501_v45 = vld [vmem:[%s4494_s7 + $0x28] sm:$0xff] }
 0x373   : > { %2318 = vmatpush.bf16.msrb.mxu0 %v3502_v42 }
 0x377   : > { %2319 = vmatpush.bf16.msrb.mxu0 %v3501_v45 }
 0x3a5   : > { %v1605_v46 = vpop.xlane.xlu1 %1604 }
 0x3a6   : > { %v1613_v49 = vsub.f32 %v1593_v18, %v1605_v46  ;;  %v3500_v46 = vld [vmem:[%s4494_s7 + $0x20] sm:$0xff] }
 0x3a7   : > { %2320 = vmatpush.bf16.msrb.mxu0 %v3500_v46 }
 0x3a8   : > { %v1616_v51 = vmul.f32 1.442695, %v1613_v49  ;;  %v3499_v49 = vld [vmem:[%s4494_s7 + $0x18] sm:$0xff] }
 0x3aa   : > { %3673 = vpow2.f32 %v1616_v51  ;;  %v3498_v51 = vld [vmem:[%s4494_s7 + $0x10] sm:$0xff] }
 0x3ab   : > { %2321 = vmatpush.bf16.msrb.mxu0 %v3499_v49 }
 0x3ad   : > { %v1608_v50 = vpop.xlane.xlu2 %1607 }
 0x3ae   : > { %v1614_v52 = vsub.f32 %v1596_v33, %v1608_v50  ;;  %v3497_v50 = vld [vmem:[%s4494_s7 + $0x8] sm:$0xff] }
 0x3af   : > { %2322 = vmatpush.bf16.msrb.mxu0 %v3498_v51 }
 0x3b0   : > { %v3674_v53 = vpop.eup %3673  ;;  %v1618_v54 = vmul.f32 1.442695, %v1614_v52  ;;  %v3511_v52 = vld [vmem:[%s4494_s7 + $0x78] sm:$0xff] }
 0x3b1   : > { %3267 = vmatmul.msk.f32.vlgmr.msrb.gmra.mxu3 %vm1602_vm6, %v3674_v53  ;;  %v1622_v32 = vsel %vm1602_vm6, %v3674_v53, 0.0  ;;  %2340 = vmatpush.bf16.msrb.mxu1 %v3511_v52  ;;  %v3496_v53 = vld [vmem:[%s4494_s7] sm:$0xff] }
 0x3b2   : > { %3675 = vpow2.f32 %v1618_v54  ;;  %3278 = vmatpush.msk.msrb.mxu3 %vm1640_vm5, %v2105_v8  ;;  %1623 = vadd.xlane.f32.xlu1 %v1622_v32  ;;  %v3510_v54 = vld [vmem:[%s4494_s7 + $0x70] sm:$0xff]  ;;  %v3509_v32 = vld [vmem:[%s4494_s7 + $0x68] sm:$0xff] }
 0x3b3   : > { %2323 = vmatpush.bf16.msrb.mxu0 %v3497_v50 }
 0x3b4   : > { %2134 = vmatpush.msrb.mxu3 %v2106_v58 }
 0x3b5   : > { %v1612_v35 = vpop.xlane.xlu0 %1611  ;;  %2341 = vmatpush.bf16.msrb.mxu1 %v3510_v54 }
 0x3b6   : > { %2135 = vmatpush.msrb.mxu3 %v4816_v39  ;;  %v1615_v55 = vsub.f32 %v1599_v21, %v1612_v35 }
 0x3b7   : > { %2324 = vmatpush.bf16.msrb.mxu0 %v3496_v53 }
 0x3b8   : > { %v3676_v56 = vpop.eup %3675  ;;  %v1620_v59 = vmul.f32 1.442695, %v1615_v55  ;;  %v3508_v55 = vld [vmem:[%s4494_s7 + $0x60] sm:$0xff] }
 0x3b9   : > { %3268 = vmatmul.msk.f32.gmra.mxu3 %vm1602_vm6, %v3676_v56  ;;  %v1625_v60 = vsel %vm1602_vm6, %v3676_v56, 0.0  ;;  %2342 = vmatpush.bf16.msrb.mxu1 %v3509_v32  ;;  %v3507_v56 = vld [vmem:[%s4494_s7 + $0x58] sm:$0xff] }
 0x3ba   : > { %3677 = vpow2.f32 %v1620_v59  ;;  %1626 = vadd.xlane.f32.xlu2 %v1625_v60 }
 0x3bd   : > { %v1746_v61 = vpop.xlane.xlu1 %1745  ;;  %2343 = vmatpush.bf16.msrb.mxu1 %v3508_v55 }
 0x3be   : > { %v1753_v40 = vsub.f32 %v1735_v23, %v1746_v61 }
 0x3c0   : > { %v4871_v62 = vpop.eup %3677  ;;  %v1756_v63 = vmul.f32 1.442695, %v1753_v40 }
 0x3c1   : > { %3269 = vmatmul.msk.f32.gmra.mxu3 %vm1602_vm6, %v4871_v62  ;;  %v1628_v38 = vsel %vm1609_vm7, %v4871_v62, 0.0  ;;  %2344 = vmatpush.bf16.msrb.mxu1 %v3507_v56  ;;  %v3506_v62 = vld [vmem:[%s4494_s7 + $0x50] sm:$0xff] }
 0x3c2   : > { %3679 = vpow2.f32 %v1756_v63 }
 0x3c5   : > { %v1749_v0 = vpop.xlane.xlu2 %1748  ;;  %2345 = vmatpush.bf16.msrb.mxu1 %v3506_v62 }
 0x3c6   : > { %v1754_v39 = vsub.f32 %v1738_v25, %v1749_v0  ;;  %v3505_v0 = vld [vmem:[%s4494_s7 + $0x48] sm:$0xff] }
 0x3c8   : > { %v3680_v1 = vpop.eup %3679  ;;  %v1758_v48 = vmul.f32 1.442695, %v1754_v39 }
 0x3c9   : > { %3271 = vmatmul.msk.f32.vlgmr.msra.gmra.mxu3 %vm1602_vm6, %v3680_v1  ;;  %v1762_v2 = vsel %vm1602_vm6, %v3680_v1, 0.0  ;;  %2346 = vmatpush.bf16.msrb.mxu1 %v3505_v0 }
 0x3ca   : > { %3681 = vpow2.f32 %v1758_v48  ;;  %1763 = vadd.xlane.f32.xlu0 %v1762_v2 }
 0x3cd   : > { %v1907_v3 = vpop.xlane.xlu2 %1906  ;;  %v1752_v4 = vpop.xlane.xlu0 %1751 }
 0x3ce   : > { %v1914_v5 = vsub.f32 %v4835_v34, %v1907_v3  ;;  %v1755_v44 = vsub.f32 %v4837_v27, %v1752_v4 }
 0x3d0   : > { %v3682_v6 = vpop.eup %3681  ;;  %v1917_v7 = vmul.f32 1.442695, %v1914_v5  ;;  %v1760_v8 = vmul.f32 1.442695, %v1755_v44  ;;  %v3504_v44 = vld [vmem:[%s4494_s7 + $0x40] sm:$0xff]  ;;  %s5244_s7 = scalar_lea.vmem [#allocation8], %s4479_s4 }
 0x3d1   : > { %3272 = vmatmul.msk.f32.gmra.mxu3 %vm1602_vm6, %v3682_v6  ;;  %v1765_v9 = vsel %vm1602_vm6, %v3682_v6, 0.0  ;;  %2347 = vmatpush.bf16.msrb.mxu1 %v3504_v44 }
 0x3d2   : > { %3683 = vpow2.f32 %v1917_v7  ;;  %1766 = vadd.xlane.f32.xlu1 %v1765_v9 }
 0x3d3   : > { %3685 = vpow2.f32 %v1760_v8 }
 0x3d5   : > { %v2075_v10 = vpop.xlane.xlu1 %2074 }
 0x3d6   : > { %v2082_v11 = vsub.f32 %v4843_v15, %v2075_v10 }
 0x3d8   : > { %v3684_v58 = vpop.eup %3683  ;;  %v2085_v47 = vmul.f32 1.442695, %v2082_v11 }
 0x3d9   : > { %v3686_v12 = vpop.eup %3685  ;;  %3275 = vmatmul.msk.f32.vlgmr.msra.gmra.mxu1 %vm1602_vm6, %v3684_v58  ;;  %v1923_v13 = vsel %vm1602_vm6, %v3684_v58, 0.0 }
 0x3da   : > { %3687 = vpow2.f32 %v2085_v47  ;;  %3273 = vmatmul.msk.f32.gmra.mxu3 %vm1602_vm6, %v3686_v12  ;;  %1924 = vadd.xlane.f32.xlu2 %v1923_v13  ;;  %v1768_v31 = vsel %vm1609_vm7, %v3686_v12, 0.0 }
 0x3dd   : > { %v1910_v16 = vpop.xlane.xlu1 %1909  ;;  %v2078_v17 = vpop.xlane.xlu0 %2077 }
 0x3de   : > { %v1915_v18 = vsub.f32 %v4847_v29, %v1910_v16  ;;  %v2083_v19 = vsub.f32 %v4849_v36, %v2078_v17 }
 0x3e0   : > { %v3688_v33 = vpop.eup %3687  ;;  %v1919_v20 = vmul.f32 1.442695, %v1915_v18  ;;  %v2087_v21 = vmul.f32 1.442695, %v2083_v19 }
 0x3e1   : > { %v2091_v22 = vsel %vm1602_vm6, %v3688_v33, 0.0 }
 0x3e2   : > { %3689 = vpow2.f32 %v1919_v20  ;;  %3279 = vmatmul.msk.f32.vlgmr.msrb.gmra.mxu3 %vm1602_vm6, %v3688_v33  ;;  %2092 = vadd.xlane.f32.xlu1 %v2091_v22 }
 0x3e3   : > { %3691 = vpow2.f32 %v2087_v21 }
 0x3e5   : > { %v2081_v23 = vpop.xlane.xlu2 %2080  ;;  %v1913_v24 = vpop.xlane.xlu0 %1912 }
 0x3e6   : > { %v2084_v25 = vsub.f32 %v4857_v43, %v2081_v23  ;;  %v1916_v57 = vsub.f32 %v4855_v41, %v1913_v24 }
 0x3e8   : > { %v3690_v34 = vpop.eup %3689  ;;  %v2089_v27 = vmul.f32 1.442695, %v2084_v25  ;;  %v1921_v30 = vmul.f32 1.442695, %v1916_v57 }
 0x3e9   : > { %v3692_v28 = vpop.eup %3691  ;;  %3276 = vmatmul.msk.f32.gmra.mxu1 %vm1602_vm6, %v3690_v34  ;;  %v1926_v15 = vsel %vm1602_vm6, %v3690_v34, 0.0 }
 0x3ea   : > { %3693 = vpow2.f32 %v2089_v27  ;;  %3280 = vmatmul.msk.f32.gmra.mxu3 %vm1602_vm6, %v3692_v28  ;;  %1927 = vadd.xlane.f32.xlu0 %v1926_v15  ;;  %v2094_v29 = vsel %vm1602_vm6, %v3692_v28, 0.0 }
 0x3eb   : > { %3695 = vpow2.f32 %v1921_v30  ;;  %1769 = vadd.xlane.f32.xlu1 %v1768_v31  ;;  %2095 = vadd.xlane.f32.xlu2 %v2094_v29 }
 0x3f0   : > { %v3694_v36 = vpop.eup %3693 }
 0x3f1   : > { %v3696_v37 = vpop.eup %3695  ;;  %v2097_v43 = vsel %vm1609_vm7, %v3694_v36, 0.0 }
 0x3f2   : > { %3277 = vmatmul.msk.f32.gmra.mxu1 %vm1602_vm6, %v3696_v37  ;;  %3281 = vmatmul.msk.f32.gmra.mxu3 %vm1602_vm6, %v3694_v36  ;;  %v1929_v41 = vsel %vm1609_vm7, %v3696_v37, 0.0 }
 0x3f3   : > { %1629 = vadd.xlane.f32.xlu0 %v1628_v38  ;;  %1930 = vadd.xlane.f32.xlu2 %v1929_v41 }
 0x3fb   : > { %2098 = vadd.xlane.f32.xlu0 %v2097_v43 }
 0x425   : > { %v1624_v35 = vpop.xlane.xlu1 %1623 }
 0x426   : > { %3697 = vrcp.f32 %v1624_v35  ;;  %v1681_v3 = vand.u32 2147483648, %v1624_v35  ;;  %vm1675_vm9 = vweird.f32 %v1624_v35  ;;  %v1679_v5 = vand.u32 2147483647, %v1624_v35 }
 0x428   : > { %v1682_v10 = vor.u32 1.1754944e-38, %v1681_v3  ;;  %vm1680_vm12 = vcmp.eq.f32.partialorder %v1679_v5, 8.507059e+37 }
 0x42c   : > { %v3698_v59 = vpop.eup %3697 }
 0x42d   : > { %v1671_v60 = vmul.f32 %v3698_v59, %v1624_v35  ;;  %v1627_v61 = vpop.xlane.xlu2 %1626  ;;  %vm1676_vm8 = vweird.f32 %v3698_v59 }
 0x42e   : > { %3699 = vrcp.f32 %v1627_v61  ;;  %vm1677_vm10 = vmor %vm1675_vm9, %vm1676_vm8  ;;  %v1696_v6 = vand.u32 2147483648, %v1627_v61  ;;  %v1694_v9 = vand.u32 2147483647, %v1627_v61  ;;  %vm1690_vm13 = vweird.f32 %v1627_v61 }
 0x42f   : > { %v1672_v40 = vsub.f32 1.0, %v1671_v60 }
 0x430   : > { %v1697_v12 = vor.u32 1.1754944e-38, %v1696_v6  ;;  %vm1695_vm15 = vcmp.eq.f32.partialorder %v1694_v9, 8.507059e+37 }
 0x431   : > { %v1673_v63 = vmul.f32 %v3698_v59, %v1672_v40 }
 0x433   : > { %v1674_v2 = vadd.f32 %v3698_v59, %v1673_v63 }
 0x434   : > { %v3700_v39 = vpop.eup %3699  ;;  %v1661_v1 = vpop.f32.mrf.mxu3 }
 0x435   : > { %v1686_v48 = vmul.f32 %v3700_v39, %v1627_v61  ;;  %v1678_v7 = vsel %vm1677_vm10, %v3698_v59, %v1674_v2  ;;  %vm1691_vm11 = vweird.f32 %v3700_v39 }
 0x436   : > { %v1683_v58 = vsel %vm1680_vm12, %v1682_v10, %v1678_v7  ;;  %vm1692_vm14 = vmor %vm1690_vm13, %vm1691_vm11 }
 0x437   : > { %v1687_v4 = vsub.f32 1.0, %v1686_v48  ;;  %v1684_v17 = vmul.f32 %v1683_v58, %v1661_v1 }
 0x439   : > { %v1688_v8 = vmul.f32 %v3700_v39, %v1687_v4 }
 0x43b   : > { %v1689_v11 = vadd.f32 %v3700_v39, %v1688_v8 }
 0x43c   : > { %v1664_v47 = vpop.f32.mrf.mxu3 }
 0x43d   : > { %v1693_v13 = vsel %vm1692_vm14, %v3700_v39, %v1689_v11  ;;  %v1764_v14 = vpop.xlane.xlu0 %1763 }
 0x43e   : > { %v1698_v16 = vsel %vm1695_vm15, %v1697_v12, %v1693_v13  ;;  %3701 = vrcp.f32 %v1764_v14  ;;  %v1820_v28 = vand.u32 2147483648, %v1764_v14  ;;  %vm1814_vm3 = vweird.f32 %v1764_v14 }
 0x43f   : > { %v1699_v18 = vmul.f32 %v1698_v16, %v1664_v47  ;;  %v1818_v31 = vand.u32 2147483647, %v1764_v14 }
 0x440   : > { %v1821_v41 = vor.u32 1.1754944e-38, %v1820_v28 }
 0x441   : > { %v2215_v19 = vpack.c.bf16 %v1699_v18, %v1684_v17  ;;  %vm1819_vm7 = vcmp.eq.f32.partialorder %v1818_v31, 8.507059e+37 }
 0x443   : > { %2325 = vmatmul.bf16.vlgmr.msrb.gmra.mxu0 %v2215_v19 }
 0x444   : > { %v3702_v33 = vpop.eup %3701  ;;  %v4918_v20 = vpop.f32.mrf.mxu3 }
 0x445   : > { %v1810_v21 = vmul.f32 %v3702_v33, %v1764_v14  ;;  %v1767_v22 = vpop.xlane.xlu1 %1766  ;;  %vm1815_vm0 = vweird.f32 %v3702_v33 }
 0x446   : > { %3703 = vrcp.f32 %v1767_v22  ;;  %vm1816_vm4 = vmor %vm1814_vm3, %vm1815_vm0  ;;  %v1835_v29 = vand.u32 2147483648, %v1767_v22  ;;  %v1833_v38 = vand.u32 2147483647, %v1767_v22  ;;  %vm1829_vm8 = vweird.f32 %v1767_v22 }
 0x447   : > { %v1811_v23 = vsub.f32 1.0, %v1810_v21 }
 0x448   : > { %v1836_v49 = vor.u32 1.1754944e-38, %v1835_v29  ;;  %vm1834_vm10 = vcmp.eq.f32.partialorder %v1833_v38, 8.507059e+37 }
 0x449   : > { %v1812_v24 = vmul.f32 %v3702_v33, %v1811_v23 }
 0x44b   : > { %v1813_v27 = vadd.f32 %v3702_v33, %v1812_v24 }
 0x44c   : > { %v3704_v25 = vpop.eup %3703  ;;  %v1800_v57 = vpop.f32.mrf.mxu3 }
 0x44d   : > { %v1825_v34 = vmul.f32 %v3704_v25, %v1767_v22  ;;  %v1925_v30 = vpop.xlane.xlu2 %1924  ;;  %v1817_v36 = vsel %vm1816_vm4, %v3702_v33, %v1813_v27  ;;  %vm1830_vm6 = vweird.f32 %v3704_v25 }
 0x44e   : > { %3705 = vrcp.f32 %v1925_v30  ;;  %v1822_v45 = vsel %vm1819_vm7, %v1821_v41, %v1817_v36  ;;  %vm1831_vm9 = vmor %vm1829_vm8, %vm1830_vm6  ;;  %v1987_v1 = vand.u32 2147483647, %v1925_v30  ;;  %v1989_v2 = vand.u32 2147483648, %v1925_v30 }
 0x44f   : > { %v1826_v15 = vsub.f32 1.0, %v1825_v34  ;;  %v1823_v54 = vmul.f32 %v1822_v45, %v1800_v57  ;;  %vm1983_vm12 = vweird.f32 %v1925_v30 }
 0x450   : > { %vm1988_vm15 = vcmp.eq.f32.partialorder %v1987_v1, 8.507059e+37  ;;  %v1990_v58 = vor.u32 1.1754944e-38, %v1989_v2 }
 0x451   : > { %v1827_v37 = vmul.f32 %v3704_v25, %v1826_v15 }
 0x453   : > { %v1828_v43 = vadd.f32 %v3704_v25, %v1827_v37 }
 0x454   : > { %v3706_v42 = vpop.eup %3705  ;;  %v1803_v46 = vpop.f32.mrf.mxu3 }
 0x455   : > { %v1979_v51 = vmul.f32 %v3706_v42, %v1925_v30  ;;  %v1832_v50 = vsel %vm1831_vm9, %v3704_v25, %v1828_v43  ;;  %v2093_v52 = vpop.xlane.xlu1 %2092  ;;  %vm1984_vm11 = vweird.f32 %v3706_v42 }
 0x456   : > { %v1837_v53 = vsel %vm1834_vm10, %v1836_v49, %v1832_v50  ;;  %3707 = vrcp.f32 %v2093_v52  ;;  %v2155_v3 = vand.u32 2147483647, %v2093_v52  ;;  %v2157_v4 = vand.u32 2147483648, %v2093_v52  ;;  %vm4933_vm13 = vmor %vm1983_vm12, %vm1984_vm11  ;;  %v1969_v30 = vpop.f32.mrf.mxu1 }
 0x457   : > { %v1838_v32 = vmul.f32 %v1837_v53, %v1803_v46  ;;  %v1980_v35 = vsub.f32 1.0, %v1979_v51  ;;  %vm2151_vm0 = vweird.f32 %v2093_v52 }
 0x458   : > { %vm4945_vm3 = vcmp.eq.f32.partialorder %v2155_v3, 8.507059e+37  ;;  %v2158_v19 = vor.u32 1.1754944e-38, %v2157_v4 }
 0x459   : > { %v2216_v55 = vpack.c.bf16 %v1838_v32, %v1823_v54  ;;  %v1981_v60 = vmul.f32 %v3706_v42, %v1980_v35 }
 0x45b   : > { %2348 = vmatmul.bf16.vlgmr.msrb.gmra.mxu1 %v2216_v55  ;;  %v1982_v39 = vadd.f32 %v3706_v42, %v1981_v60 }
 0x45c   : > { %v3708_v56 = vpop.eup %3707 }
 0x45d   : > { %v2147_v59 = vmul.f32 %v3708_v56, %v2093_v52  ;;  %v4920_v61 = vpop.f32.mrf.mxu3  ;;  %v4922_v40 = vpop.xlane.xlu0 %1927  ;;  %vm2152_vm14 = vweird.f32 %v3708_v56  ;;  %v1986_v8 = vsel %vm4933_vm13, %v3706_v42, %v1982_v39 }
 0x45e   : > { %v4924_v62 = vpop.xlane.xlu1 %1769  ;;  %v4926_v63 = vpop.xlane.xlu2 %2095  ;;  %3709 = vrcp.f32 %v4922_v40  ;;  %vm4955_vm4 = vmor %vm2151_vm0, %vm2152_vm14  ;;  %v1991_v33 = vsel %vm1988_vm15, %v1990_v58, %v1986_v8  ;;  %vm1998_vm6 = vweird.f32 %v4922_v40  ;;  %v2004_v34 = vand.u32 2147483648, %v4922_v40 }
 0x45f   : > { %v2148_v0 = vsub.f32 1.0, %v2147_v59  ;;  %3711 = vrcp.f32 %v4924_v62  ;;  %v2172_v25 = vand.u32 2147483648, %v4926_v63  ;;  %v2170_v27 = vand.u32 2147483647, %v4926_v63 }
 0x460   : > { %3713 = vrcp.f32 %v4926_v63  ;;  %vm1844_vm9 = vweird.f32 %v4924_v62  ;;  %v1848_v29 = vand.u32 2147483647, %v4924_v62  ;;  %v1850_v36 = vand.u32 2147483648, %v4924_v62 }
 0x461   : > { %v2149_v48 = vmul.f32 %v3708_v56, %v2148_v0  ;;  %v2002_v37 = vand.u32 2147483647, %v4922_v40  ;;  %vm2166_vm12 = vweird.f32 %v4926_v63  ;;  %v2173_v42 = vor.u32 1.1754944e-38, %v2172_v25 }
 0x462   : > { %v2005_v54 = vor.u32 1.1754944e-38, %v2004_v34  ;;  %vm2171_vm14 = vcmp.eq.f32.partialorder %v2170_v27, 8.507059e+37  ;;  %v1851_v59 = vor.u32 1.1754944e-38, %v1850_v36  ;;  %v1992_v8 = vmul.f32 %v1991_v33, %v1969_v30 }
 0x463   : > { %v2150_v6 = vadd.f32 %v3708_v56, %v2149_v48  ;;  %vm2003_vm15 = vcmp.eq.f32.partialorder %v2002_v37, 8.507059e+37 }
 0x464   : > { %v4931_v5 = vpop.eup %3709  ;;  %v2197_v18 = vrot.slane %v1992_v8, 7  ;;  %v3744_v8 = vld [vmem:[#allocation2 + $0x10] sm:$0xff] }
 0x465   : > { %v4937_v7 = vpop.eup %3711  ;;  %v1994_v9 = vmul.f32 %v4931_v5, %v4922_v40  ;;  %v2137_v10 = vpop.f32.mrf.mxu3  ;;  %v2154_v22 = vsel %vm4955_vm4, %v3708_v56, %v2150_v6  ;;  %vm1999_vm7 = vweird.f32 %v4931_v5 }
 0x466   : > { %v3714_v11 = vpop.eup %3713  ;;  %v1840_v47 = vmul.f32 %v4937_v7, %v4924_v62  ;;  %v4949_v13 = vpop.xlane.xlu2 %1930  ;;  %v2159_v28 = vsel %vm4945_vm3, %v2158_v19, %v2154_v22  ;;  %vm1845_vm10 = vweird.f32 %v4937_v7  ;;  %vm4982_vm11 = vmor %vm1998_vm6, %vm1999_vm7  ;;  %vm1849_vm3 = vcmp.eq.f32.partialorder %v1848_v29, 8.507059e+37 }
 0x467   : > { %v4951_v14 = vpop.xlane.xlu0 %1629  ;;  %v2162_v16 = vmul.f32 %v3714_v11, %v4926_v63  ;;  %v1995_v17 = vsub.f32 1.0, %v1994_v9  ;;  %3715 = vrcp.f32 %v4949_v13  ;;  %vm2167_vm8 = vweird.f32 %v3714_v11  ;;  %vm1846_vm0 = vmor %vm1844_vm9, %vm1845_vm10  ;;  %v1972_v3 = vpop.f32.mrf.mxu1 }
 0x468   : > { %v1841_v21 = vsub.f32 1.0, %v1840_v47  ;;  %3717 = vrcp.f32 %v4951_v14  ;;  %v2160_v49 = vmul.f32 %v2159_v28, %v2137_v10  ;;  %vm2168_vm13 = vmor %vm2166_vm12, %vm2167_vm8  ;;  %v1709_v39 = vand.u32 2147483647, %v4951_v14 }
 0x469   : > { %v2163_v23 = vsub.f32 1.0, %v2162_v16  ;;  %v1996_v24 = vmul.f32 %v4931_v5, %v1995_v17  ;;  %v1711_v2 = vand.u32 2147483648, %v4951_v14  ;;  %vm1705_vm6 = vweird.f32 %v4951_v14 }
 0x46a   : > { %v1842_v57 = vmul.f32 %v4937_v7, %v1841_v21  ;;  %v2198_v0 = vrot.slane %v2160_v49, 7  ;;  %vm1710_vm8 = vcmp.eq.f32.partialorder %v1709_v39, 8.507059e+37  ;;  %v2019_v33 = vand.u32 2147483648, %v4949_v13 }
 0x46b   : > { %v1997_v15 = vadd.f32 %v4931_v5, %v1996_v24  ;;  %v2164_v31 = vmul.f32 %v3714_v11, %v2163_v23  ;;  %v1712_v58 = vor.u32 1.1754944e-38, %v1711_v2  ;;  %vm2013_vm10 = vweird.f32 %v4949_v13 }
 0x46c   : > { %v1843_v46 = vadd.f32 %v4937_v7, %v1842_v57  ;;  %v2017_v21 = vand.u32 2147483647, %v4949_v13  ;;  %v2020_v30 = vor.u32 1.1754944e-38, %v2019_v33 }
 0x46d   : > { %v4977_v38 = vpop.eup %3715  ;;  %v2165_v43 = vadd.f32 %v3714_v11, %v2164_v31  ;;  %v2001_v50 = vsel %vm4982_vm11, %v4931_v5, %v1997_v15  ;;  %v2140_v55 = vpop.f32.mrf.mxu3 }
 0x46e   : > { %v3718_v45 = vpop.eup %3717  ;;  %v2009_v51 = vmul.f32 %v4977_v38, %v4949_v13  ;;  %v2006_v40 = vsel %vm2003_vm15, %v2005_v54, %v2001_v50  ;;  %v1847_v1 = vsel %vm1846_vm0, %v4937_v7, %v1843_v46  ;;  %vm2014_vm9 = vweird.f32 %v4977_v38  ;;  %v3658_v54 = vld [vmem:[%s5244_s7] ss:$0 sm:$0xff] }
 0x46f   : > { %v4994_v52 = vpop.xlane.xlu0 %2098  ;;  %v1701_v53 = vmul.f32 %v3718_v45, %v4951_v14  ;;  %v2169_v32 = vsel %vm2168_vm13, %v3714_v11, %v2165_v43  ;;  %v1852_v5 = vsel %vm1849_vm3, %v1851_v59, %v1847_v1  ;;  %vm1706_vm4 = vweird.f32 %v3718_v45  ;;  %vm2015_vm11 = vmor %vm2013_vm10, %vm2014_vm9  ;;  %v1975_v37 = vpop.f32.mrf.mxu1 }
 0x470   : > { %v2010_v35 = vsub.f32 1.0, %v2009_v51  ;;  %v2174_v56 = vsel %vm2171_vm14, %v2173_v42, %v2169_v32  ;;  %3719 = vrcp.f32 %v4994_v52  ;;  %v2007_v62 = vmul.f32 %v2006_v40, %v1972_v3  ;;  %vm1707_vm7 = vmor %vm1705_vm6, %vm1706_vm4  ;;  %v3741_v32 = vld [vmem:[#allocation2 + $0x8] sm:$0xff]  ;;  %v3742_v40 = vld [vmem:[#allocation2] sm:$0xff] }
 0x471   : > { %v1702_v60 = vsub.f32 1.0, %v1701_v53  ;;  %v5002_v63 = vmul.f32 %v2174_v56, %v2140_v55  ;;  %v1853_v6 = vmul.f32 %v1852_v5, %v4920_v61  ;;  %v2187_v22 = vand.u32 2147483648, %v4994_v52  ;;  %v3743_v3 = vld [vmem:[#allocation2 + $0x20] sm:$0xff] }
 0x472   : > { %v2011_v44 = vmul.f32 %v4977_v38, %v2010_v35  ;;  %v2199_v16 = vrot.slane %v2007_v62, 7  ;;  %v2185_v25 = vand.u32 2147483647, %v4994_v52  ;;  %vm2181_vm13 = vweird.f32 %v4994_v52 }
 0x473   : > { %v1703_v48 = vmul.f32 %v3718_v45, %v1702_v60  ;;  %v2201_v4 = vrot.slane %v5002_v63, 7  ;;  %v2214_v7 = vsel %vm1640_vm5, %v1853_v6, %v2198_v0  ;;  %vm2018_vm14 = vcmp.eq.f32.partialorder %v2017_v21, 8.507059e+37 }
 0x474   : > { %v2012_v17 = vadd.f32 %v4977_v38, %v2011_v44  ;;  %v2200_v34 = vsel %vm1640_vm5, %v2197_v18, %v2199_v16  ;;  %v2188_v15 = vor.u32 1.1754944e-38, %v2187_v22  ;;  %vm2186_vm0 = vcmp.eq.f32.partialorder %v2185_v25, 8.507059e+37 }
 0x475   : > { %v1704_v9 = vadd.f32 %v3718_v45, %v1703_v48  ;;  %v2202_v10 = vsel %vm1640_vm5, %v2198_v0, %v2201_v4  ;;  %v2143_v29 = vpop.f32.mrf.mxu3 }
 0x476   : > { %v3720_v11 = vpop.eup %3719  ;;  %v2218_v12 = vpack.c.bf16 %v2202_v10, %v2214_v7  ;;  %v2016_v57 = vsel %vm2015_vm11, %v4977_v38, %v2012_v17 }
 0x477   : > { %v2177_v47 = vmul.f32 %v3720_v11, %v4994_v52  ;;  %v1708_v61 = vsel %vm1707_vm7, %v3718_v45, %v1704_v9  ;;  %vm2182_vm12 = vweird.f32 %v3720_v11 }
 0x478   : > { %2353 = vmatmul.bf16.gmra.mxu1 %v2218_v12  ;;  %v1713_v14 = vsel %vm1710_vm8, %v1712_v58, %v1708_v61  ;;  %vm2183_vm15 = vmor %vm2181_vm13, %vm2182_vm12 }
 0x479   : > { %v2178_v19 = vsub.f32 1.0, %v2177_v47  ;;  %v1714_v23 = vmul.f32 %v1713_v14, %v4918_v20  ;;  %v2021_v20 = vsel %vm2018_vm14, %v2020_v30, %v2016_v57  ;;  %v3745_v47 = vld [vmem:[#allocation2 + $0x18] sm:$0x3] }
 0x47a   : > { %v2022_v41 = vmul.f32 %v2021_v20, %v1975_v37 }
 0x47b   : > { %v2179_v24 = vmul.f32 %v3720_v11, %v2178_v19  ;;  %v2213_v27 = vsel %vm1640_vm5, %v1714_v23, %v2197_v18 }
 0x47c   : > { %v2217_v13 = vpack.c.bf16 %v2200_v34, %v2213_v27  ;;  %v2203_v45 = vrot.slane %v2022_v41, 7 }
 0x47d   : > { %v2180_v28 = vadd.f32 %v3720_v11, %v2179_v24 }
 0x47e   : > { %2330 = vmatmul.bf16.gmra.mxu0 %v2217_v13  ;;  %v2204_v49 = vsel %vm1640_vm5, %v2199_v16, %v2203_v45 }
 0x47f   : > { %v2184_v31 = vsel %vm2183_vm15, %v3720_v11, %v2180_v28  ;;  %v2219_v51 = vpack.c.bf16 %v2204_v49, %v2204_v49  ;;  %v3518_v49 = vld [vmem:[%s4525_s27 + $0x30] sm:$0xff] }
 0x480   : > { %v2189_v36 = vsel %vm2186_vm0, %v2188_v15, %v2184_v31 }
 0x481   : > { %v2190_v38 = vmul.f32 %v2189_v36, %v2143_v29 }
 0x483   : > { %v2205_v43 = vrot.slane %v2190_v38, 7 }
 0x485   : > { %v2206_v42 = vsel %vm1640_vm5, %v2201_v4, %v2205_v43 }
 0x486   : > { %v2220_v46 = vpack.c.bf16 %v2206_v42, %v2206_v42 }
 0x488   : > { %2358 = vmatmul.bf16.gmra.mxu1 %v2220_v46  ;;  %v3519_v46 = vld [vmem:[%s4525_s27 + $0x38] sm:$0xff] }
 0x489   : > { %2553 = vmatpush.bf16.msra.mxu2 %v3519_v46 }
 0x48d   : > { %2554 = vmatpush.bf16.msra.mxu2 %v3518_v49 }
 0x48e   : > { %2335 = vmatmul.bf16.gmra.mxu0 %v2219_v51  ;;  %v3517_v51 = vld [vmem:[%s4525_s27 + $0x28] sm:$0xff] }
 0x491   : > { %2555 = vmatpush.bf16.msra.mxu2 %v3517_v51 }
 0x4c0   : > { %v2326_v50 = vpop.f32.mrf.mxu0 }
 0x4c8   : > { %v2328_v56 = vpop.f32.mrf.mxu0 }
 0x4d8   : > { %v2349_v52 = vpop.f32.mrf.mxu1 }
 0x4d9   : > { %v2350_v53 = vadd.f32 %v2349_v52, %v2326_v50  ;;  %v3516_v50 = vld [vmem:[%s4525_s27 + $0x20] sm:$0xff]  ;;  %v3515_v52 = vld [vmem:[%s4525_s27 + $0x18] sm:$0xff] }
 0x4da   : > { %2556 = vmatpush.bf16.msra.mxu2 %v3516_v50 }
 0x4db   : > { %v2363_v35 = vadd.f32 %v3741_v32, %v2350_v53  ;;  %v3513_v32 = vld [vmem:[%s4525_s27 + $0x8] sm:$0xff] }
 0x4dd   : > { %v5030_v55 = vadd.f32 %v3658_v54, %v2363_v35 }
 0x4de   : > { %2557 = vmatpush.bf16.msra.mxu2 %v3515_v52 }
 0x4df   : > { %2376 = vadd.xlane.f32.xlu1 %v5030_v55 }
 0x4e0   : > { %v2351_v59 = vpop.f32.mrf.mxu1 }
 0x4e1   : > { %v2352_v60 = vadd.f32 %v2351_v59, %v2328_v56  ;;  %v3512_v59 = vld [vmem:[%s4525_s27] sm:$0xff]  ;;  %s5246_s27 = scalar_lea.vmem [#allocation11], %s4479_s4 }
 0x4e2   : > { %2558 = vmatpush.bf16.msra.mxu2 %v3514_v26 }
 0x4e3   : > { %v2364_v63 = vadd.f32 %v3742_v40, %v2352_v60 }
 0x4e5   : > { %v5033_v0 = vadd.f32 %v3658_v54, %v2364_v63 }
 0x4e6   : > { %2559 = vmatpush.bf16.msra.mxu2 %v3513_v32 }
 0x4e7   : > { %2378 = vadd.xlane.f32.xlu2 %v5033_v0 }
 0x4ea   : > { %2560 = vmatpush.bf16.msra.mxu2 %v3512_v59 }
 0x4f5   : > { %v2354_v39 = vpop.f32.mrf.mxu1 }
 0x4fb   : > { %v2331_v1 = vpop.f32.mrf.mxu0 }
 0x4fc   : > { %v2355_v48 = vadd.f32 %v2354_v39, %v2331_v1 }
 0x4fd   : > { %v2356_v2 = vpop.f32.mrf.mxu1 }
 0x4fe   : > { %v2365_v4 = vadd.f32 %v3743_v3, %v2355_v48 }
 0x500   : > { %v5036_v5 = vadd.f32 %v3658_v54, %v2365_v4 }
 0x502   : > { %2380 = vadd.xlane.f32.xlu0 %v5036_v5 }
 0x503   : > { %v2333_v62 = vpop.f32.mrf.mxu0 }
 0x504   : > { %v2357_v44 = vadd.f32 %v2356_v2, %v2333_v62 }
 0x505   : > { %v2359_v6 = vpop.f32.mrf.mxu1 }
 0x506   : > { %v2366_v9 = vadd.f32 %v3744_v8, %v2357_v44 }
 0x508   : > { %v5039_v10 = vadd.f32 %v3658_v54, %v2366_v9 }
 0x50a   : > { %2382 = vadd.xlane.f32.xlu1 %v5039_v10 }
 0x50b   : > { %v2336_v11 = vpop.f32.mrf.mxu0 }
 0x50c   : > { %v2360_v7 = vadd.f32 %v2359_v6, %v2336_v11 }
 0x50d   : > { %v2361_v58 = vpop.f32.mrf.mxu1 }
 0x50e   : > { %v2367_v12 = vadd.f32 %v3745_v47, %v2360_v7  ;;  %v5093_v7 = vld [vmem:[%s5245_s3] ss:$0 sm:$0xff] }
 0x510   : > { %v5042_v16 = vadd.f32 %v3658_v54, %v2367_v12 }
 0x512   : > { %v2384_v17 = vsel %vm1063_vm1, %v5042_v16, 0.0 }
 0x513   : > { %v2338_v61 = vpop.f32.mrf.mxu0  ;;  %2385 = vadd.xlane.f32.xlu2 %v2384_v17 }
 0x514   : > { %v3660_v61 = vld [vmem:[%s5246_s27] ss:$0 sm:$0xff] }
 0x552   : > { %v2377_v18 = vpop.xlane.xlu1 %2376 }
 0x553   : > { %v2387_v19 = vmul.f32 0.03125, %v2377_v18 }
 0x555   : > { %v2392_v33 = vsub.f32 %v5030_v55, %v2387_v19 }
 0x557   : > { %v5049_v14 = vsel %vm1054_vm2, %v2392_v33, 0.0 }
 0x558   : > { %v2402_v21 = vmul.f32 %v5049_v14, %v5049_v14 }
 0x55a   : > { %v2379_v22 = vpop.xlane.xlu2 %2378  ;;  %2407 = vadd.xlane.f32.xlu0 %v2402_v21 }
 0x55b   : > { %v2388_v23 = vmul.f32 0.03125, %v2379_v22 }
 0x55d   : > { %v2393_v24 = vsub.f32 %v5033_v0, %v2388_v23 }
 0x55f   : > { %v5056_v25 = vsel %vm1054_vm2, %v2393_v24, 0.0 }
 0x560   : > { %v2403_v57 = vmul.f32 %v5056_v25, %v5056_v25 }
 0x562   : > { %2409 = vadd.xlane.f32.xlu1 %v2403_v57 }
 0x575   : > { %v2381_v34 = vpop.xlane.xlu0 %2380 }
 0x576   : > { %v2389_v27 = vmul.f32 0.03125, %v2381_v34 }
 0x578   : > { %v2394_v30 = vsub.f32 %v5036_v5, %v2389_v27 }
 0x57a   : > { %v5063_v28 = vsel %vm1054_vm2, %v2394_v30, 0.0 }
 0x57b   : > { %v2404_v13 = vmul.f32 %v5063_v28, %v5063_v28 }
 0x57d   : > { %v2383_v15 = vpop.xlane.xlu1 %2382  ;;  %2411 = vadd.xlane.f32.xlu2 %v2404_v13 }
 0x57e   : > { %v2390_v20 = vmul.f32 0.03125, %v2383_v15 }
 0x580   : > { %v2395_v31 = vsub.f32 %v5039_v10, %v2390_v20 }
 0x582   : > { %v5070_v29 = vsel %vm1054_vm2, %v2395_v31, 0.0 }
 0x583   : > { %v2405_v36 = vmul.f32 %v5070_v29, %v5070_v29 }
 0x585   : > { %2413 = vadd.xlane.f32.xlu0 %v2405_v36 }
 0x586   : > { %v2386_v37 = vpop.xlane.xlu2 %2385 }
 0x587   : > { %v2391_v38 = vmul.f32 0.03125, %v2386_v37 }
 0x589   : > { %v2396_v41 = vsub.f32 %v5042_v16, %v2391_v38 }
 0x58b   : > { %v5077_v43 = vsel %vm1054_vm2, %v2396_v41, 0.0 }
 0x58c   : > { %v2406_v42 = vmul.f32 %v5077_v43, %v5077_v43 }
 0x58e   : > { %v2415_v45 = vsel %vm1063_vm1, %v2406_v42, 0.0 }
 0x58f   : > { %2416 = vadd.xlane.f32.xlu1 %v2415_v45 }
 0x5cd   : > { %v2408_v53 = vpop.xlane.xlu0 %2407 }
 0x5ce   : > { %v2418_v54 = vmul.f32 0.03125, %v2408_v53 }
 0x5d0   : > { %v2423_v35 = vadd.f32 1e-05, %v2418_v54 }
 0x5d2   : > { %3721 = vrsqrt.f32 %v2423_v35  ;;  %vm2434_vm2 = vweird.f32 %v2423_v35 }
 0x5d5   : > { %v2410_v56 = vpop.xlane.xlu1 %2409 }
 0x5d6   : > { %v2419_v60 = vmul.f32 0.03125, %v2410_v56 }
 0x5d8   : > { %v3722_v40 = vpop.eup %3721  ;;  %v2424_v63 = vadd.f32 1e-05, %v2419_v60 }
 0x5d9   : > { %v2429_v39 = vmul.f32 %v3722_v40, %v2423_v35  ;;  %vm2435_vm1 = vweird.f32 %v3722_v40 }
 0x5da   : > { %3723 = vrsqrt.f32 %v2424_v63  ;;  %vm2436_vm5 = vmor %vm2434_vm2, %vm2435_vm1  ;;  %vm2444_vm4 = vweird.f32 %v2424_v63 }
 0x5db   : > { %v2430_v1 = vmul.f32 %v3722_v40, %v2429_v39 }
 0x5dd   : > { %v2431_v48 = vmul.f32 0.5, %v2430_v1 }
 0x5df   : > { %v2432_v2 = vsub.f32 1.5, %v2431_v48 }
 0x5e0   : > { %v3724_v3 = vpop.eup %3723 }
 0x5e1   : > { %v2433_v4 = vmul.f32 %v3722_v40, %v2432_v2  ;;  %v2439_v62 = vmul.f32 %v3724_v3, %v2424_v63  ;;  %vm2445_vm3 = vweird.f32 %v3724_v3 }
 0x5e2   : > { %vm2446_vm6 = vmor %vm2444_vm4, %vm2445_vm3 }
 0x5e3   : > { %v2440_v44 = vmul.f32 %v3724_v3, %v2439_v62  ;;  %v2437_v6 = vsel %vm2436_vm5, %v3722_v40, %v2433_v4  ;;  %v3527_v4 = vld [vmem:[%s4509_s25 + $0x38] sm:$0xff]  ;;  %v3526_v62 = vld [vmem:[%s4509_s25 + $0x30] sm:$0xff] }
 0x5e4   : > { %v2478_v11 = vmul.f32 %v2437_v6, %v5049_v14  ;;  %2672 = vmatpush.bf16.msra.mxu3 %v3527_v4  ;;  %v3524_v6 = vld [vmem:[%s4509_s25 + $0x20] sm:$0xff] }
 0x5e5   : > { %v2441_v8 = vmul.f32 0.5, %v2440_v44  ;;  %v3525_v44 = vld [vmem:[%s4509_s25 + $0x28] sm:$0xff] }
 0x5e6   : > { %v2486_v17 = vmul.f32 %v5093_v7, %v2478_v11  ;;  %v3521_v11 = vld [vmem:[%s4509_s25 + $0x8] sm:$0xff] }
 0x5e7   : > { %v2442_v9 = vsub.f32 1.5, %v2441_v8  ;;  %v3523_v8 = vld [vmem:[%s4509_s25 + $0x18] sm:$0xff] }
 0x5e8   : > { %v2494_v19 = vadd.f32 %v3660_v61, %v2486_v17  ;;  %2673 = vmatpush.bf16.msra.mxu3 %v3526_v62 }
 0x5e9   : > { %v2443_v58 = vmul.f32 %v3724_v3, %v2442_v9  ;;  %v3522_v9 = vld [vmem:[%s4509_s25 + $0x10] sm:$0xff] }
 0x5eb   : > { %v2447_v47 = vsel %vm2446_vm6, %v3724_v3, %v2443_v58 }
 0x5ec   : > { %v2479_v12 = vmul.f32 %v2447_v47, %v5056_v25  ;;  %2674 = vmatpush.bf16.msra.mxu3 %v3525_v44  ;;  %v3520_v47 = vld [vmem:[%s4509_s25] sm:$0xff]  ;;  %s5248_s25 = scalar_lea.vmem [#allocation16], %s4479_s4  ;;  %s5249_s4 = sld [smem:[#allocation28_spill]] }
 0x5ee   : > { %v2487_v18 = vmul.f32 %v5093_v7, %v2479_v12 }
 0x5f0   : > { %v2495_v33 = vadd.f32 %v3660_v61, %v2487_v18  ;;  %v2412_v21 = vpop.xlane.xlu2 %2411  ;;  %2675 = vmatpush.bf16.msra.mxu3 %v3524_v6 }
 0x5f1   : > { %v2420_v22 = vmul.f32 0.03125, %v2412_v21 }
 0x5f2   : > { %v2499_v14 = vpack.c.bf16 %v2495_v33, %v2494_v19  ;;  %p3410_p5 = scmp.ne.s32.totalorder %s5249_s4, 1 }
 0x5f3   : > { %v2425_v23 = vadd.f32 1e-05, %v2420_v22  ;;  %s5250_s24 = sld [smem:[#allocation41_spill]] (!%p3410_p5) }
 0x5f4   : > { %2561 = vmatmul.bf16.vlgmr.msra.gmra.mxu2 %v2499_v14  ;;  %2676 = vmatpush.bf16.msra.mxu3 %v3523_v8 }
 0x5f5   : > { %3725 = vrsqrt.f32 %v2425_v23  ;;  %vm2454_vm8 = vweird.f32 %v2425_v23 }
 0x5f8   : > { %v2414_v24 = vpop.xlane.xlu0 %2413  ;;  %2677 = vmatpush.bf16.msra.mxu3 %v3522_v9 }
 0x5f9   : > { %v2421_v57 = vmul.f32 0.03125, %v2414_v24  ;;  %s5251_s1 = smov (!%p3410_p5), %s5250_s24 }
 0x5fb   : > { %v3726_v34 = vpop.eup %3725  ;;  %v2426_v27 = vadd.f32 1e-05, %v2421_v57 }
 0x5fc   : > { %v2449_v30 = vmul.f32 %v3726_v34, %v2425_v23  ;;  %vm2455_vm7 = vweird.f32 %v3726_v34  ;;  %2678 = vmatpush.bf16.msra.mxu3 %v3521_v11 }
 0x5fd   : > { %3727 = vrsqrt.f32 %v2426_v27  ;;  %vm2456_vm9 = vmor %vm2454_vm8, %vm2455_vm7  ;;  %vm2464_vm11 = vweird.f32 %v2426_v27 }
 0x5fe   : > { %v2450_v25 = vmul.f32 %v3726_v34, %v2449_v30 }
 0x600   : > { %v2451_v13 = vmul.f32 0.5, %v2450_v25  ;;  %2679 = vmatpush.bf16.msra.mxu3 %v3520_v47 }
 0x602   : > { %v2452_v15 = vsub.f32 1.5, %v2451_v13  ;;  %v2417_v20 = vpop.xlane.xlu1 %2416 }
 0x603   : > { %v3728_v31 = vpop.eup %3727  ;;  %v2422_v36 = vmul.f32 0.03125, %v2417_v20 }
 0x604   : > { %v2453_v37 = vmul.f32 %v3726_v34, %v2452_v15  ;;  %v2459_v38 = vmul.f32 %v3728_v31, %v2426_v27  ;;  %vm2465_vm10 = vweird.f32 %v3728_v31 }
 0x605   : > { %v2427_v41 = vadd.f32 1e-05, %v2422_v36  ;;  %vm2466_vm12 = vmor %vm2464_vm11, %vm2465_vm10 }
 0x606   : > { %v2460_v42 = vmul.f32 %v3728_v31, %v2459_v38  ;;  %v2457_v45 = vsel %vm2456_vm9, %v3726_v34, %v2453_v37 }
 0x607   : > { %3729 = vrsqrt.f32 %v2427_v41  ;;  %v2480_v51 = vmul.f32 %v2457_v45, %v5063_v28  ;;  %vm2474_vm14 = vweird.f32 %v2427_v41 }
 0x608   : > { %v2461_v46 = vmul.f32 0.5, %v2460_v42 }
 0x609   : > { %v2488_v32 = vmul.f32 %v5093_v7, %v2480_v51 }
 0x60a   : > { %v2462_v49 = vsub.f32 1.5, %v2461_v46 }
 0x60b   : > { %v2496_v60 = vadd.f32 %v3660_v61, %v2488_v32 }
 0x60c   : > { %v2463_v50 = vmul.f32 %v3728_v31, %v2462_v49 }
 0x60d   : > { %v3730_v52 = vpop.eup %3729 }
 0x60e   : > { %v2467_v26 = vsel %vm2466_vm12, %v3728_v31, %v2463_v50  ;;  %v2469_v53 = vmul.f32 %v3730_v52, %v2427_v41  ;;  %vm2475_vm13 = vweird.f32 %v3730_v52 }
 0x60f   : > { %v2481_v54 = vmul.f32 %v2467_v26, %v5070_v29  ;;  %vm2476_vm15 = vmor %vm2474_vm14, %vm2475_vm13 }
 0x610   : > { %v2470_v35 = vmul.f32 %v3730_v52, %v2469_v53 }
 0x611   : > { %v2489_v56 = vmul.f32 %v5093_v7, %v2481_v54 }
 0x612   : > { %v2471_v59 = vmul.f32 0.5, %v2470_v35 }
 0x613   : > { %v2497_v40 = vadd.f32 %v3660_v61, %v2489_v56 }
 0x614   : > { %v2472_v63 = vsub.f32 1.5, %v2471_v59 }
 0x615   : > { %v2500_v28 = vpack.c.bf16 %v2497_v40, %v2496_v60 }
 0x616   : > { %v2473_v39 = vmul.f32 %v3730_v52, %v2472_v63 }
 0x617   : > { %2566 = vmatmul.bf16.gmra.mxu2 %v2500_v28 }
 0x618   : > { %v2477_v29 = vsel %vm2476_vm15, %v3730_v52, %v2473_v39 }
 0x619   : > { %v2482_v1 = vmul.f32 %v2477_v29, %v5077_v43  ;;  %v3661_v43 = vld [vmem:[%s5247_s0] ss:$0 sm:$0xff] }
 0x61b   : > { %v2490_v48 = vmul.f32 %v5093_v7, %v2482_v1 }
 0x61d   : > { %v2498_v2 = vadd.f32 %v3660_v61, %v2490_v48 }
 0x61f   : > { %v2501_v3 = vpack.c.bf16 %v2498_v2, %v2498_v2 }
 0x627   : > { %2571 = vmatmul.bf16.gmra.mxu2 %v2501_v3 }
 0x677   : > { %v2562_v7 = vpop.f32.mrf.mxu2 }
 0x678   : > { %v2563_v58 = vadd.f32 %v3661_v43, %v2562_v7 }
 0x67a   : > { %v2581_v12 = vmul.f32 0.044715, %v2563_v58  ;;  %v2576_v25 = vmul.f32 0.5, %v2563_v58 }
 0x67c   : > { %v2586_v17 = vmul.f32 %v2581_v12, %v2563_v58 }
 0x67e   : > { %v2591_v61 = vmul.f32 %v2586_v17, %v2563_v58 }
 0x67f   : > { %v2564_v18 = vpop.f32.mrf.mxu2 }
 0x680   : > { %v2596_v19 = vadd.f32 %v2591_v61, %v2563_v58  ;;  %v2565_v33 = vadd.f32 %v3661_v43, %v2564_v18  ;;  %v3662_v58 = vld [vmem:[%s5248_s25] ss:$0 sm:$0xff] }
 0x682   : > { %v2582_v21 = vmul.f32 0.044715, %v2565_v33  ;;  %v2601_v22 = vmul.f32 0.7978846, %v2596_v19  ;;  %v2577_v13 = vmul.f32 0.5, %v2565_v33 }
 0x684   : > { %v2587_v14 = vmul.f32 %v2582_v21, %v2565_v33  ;;  %3731 = vtanh.f32 %v2601_v22 }
 0x686   : > { %v2592_v23 = vmul.f32 %v2587_v14, %v2565_v33 }
 0x688   : > { %v2597_v24 = vadd.f32 %v2592_v23, %v2565_v33 }
 0x68a   : > { %v2602_v57 = vmul.f32 0.7978846, %v2597_v24  ;;  %v3732_v34 = vpop.eup %3731 }
 0x68b   : > { %v2611_v27 = vadd.f32 1.0, %v3732_v34 }
 0x68c   : > { %3733 = vtanh.f32 %v2602_v57 }
 0x68d   : > { %v2616_v20 = vmul.f32 %v2611_v27, %v2576_v25 }
 0x692   : > { %v3734_v30 = vpop.eup %3733 }
 0x693   : > { %v2612_v15 = vadd.f32 1.0, %v3734_v30 }
 0x695   : > { %v2617_v31 = vmul.f32 %v2612_v15, %v2577_v13 }
 0x697   : > { %v2621_v36 = vpack.c.bf16 %v2617_v31, %v2616_v20 }
 0x699   : > { %2680 = vmatmul.bf16.vlgmr.msra.gmra.mxu3 %v2621_v36 }
 0x69a   : > { %v2567_v37 = vpop.f32.mrf.mxu2 }
 0x69b   : > { %v2568_v38 = vadd.f32 %v3661_v43, %v2567_v37 }
 0x69d   : > { %v2583_v41 = vmul.f32 0.044715, %v2568_v38  ;;  %v2578_v2 = vmul.f32 0.5, %v2568_v38 }
 0x69f   : > { %v2588_v42 = vmul.f32 %v2583_v41, %v2568_v38 }
 0x6a1   : > { %v2593_v45 = vmul.f32 %v2588_v42, %v2568_v38 }
 0x6a2   : > { %v2569_v46 = vpop.f32.mrf.mxu2 }
 0x6a3   : > { %v2570_v49 = vadd.f32 %v3661_v43, %v2569_v46  ;;  %v2598_v51 = vadd.f32 %v2593_v45, %v2568_v38 }
 0x6a5   : > { %v2584_v50 = vmul.f32 0.044715, %v2570_v49  ;;  %v2603_v26 = vmul.f32 0.7978846, %v2598_v51  ;;  %v2579_v3 = vmul.f32 0.5, %v2570_v49 }
 0x6a7   : > { %v2589_v52 = vmul.f32 %v2584_v50, %v2570_v49  ;;  %3735 = vtanh.f32 %v2603_v26 }
 0x6a9   : > { %v2594_v53 = vmul.f32 %v2589_v52, %v2570_v49 }
 0x6aa   : > { %v2572_v54 = vpop.f32.mrf.mxu2 }
 0x6ab   : > { %v2573_v32 = vadd.f32 %v3661_v43, %v2572_v54  ;;  %v2599_v35 = vadd.f32 %v2594_v53, %v2570_v49 }
 0x6ad   : > { %v2604_v56 = vmul.f32 0.7978846, %v2599_v35  ;;  %v2585_v59 = vmul.f32 0.044715, %v2573_v32  ;;  %v3736_v40 = vpop.eup %3735  ;;  %v2580_v43 = vmul.f32 0.5, %v2573_v32 }
 0x6ae   : > { %v2613_v29 = vadd.f32 1.0, %v3736_v40 }
 0x6af   : > { %3737 = vtanh.f32 %v2604_v56  ;;  %v2590_v60 = vmul.f32 %v2585_v59, %v2573_v32 }
 0x6b0   : > { %v2618_v62 = vmul.f32 %v2613_v29, %v2578_v2 }
 0x6b1   : > { %v2595_v63 = vmul.f32 %v2590_v60, %v2573_v32 }
 0x6b2   : > { %v2574_v28 = vpop.f32.mrf.mxu2 }
 0x6b3   : > { %v2600_v39 = vadd.f32 %v2595_v63, %v2573_v32 }
 0x6b5   : > { %v3738_v1 = vpop.eup %3737  ;;  %v2605_v48 = vmul.f32 0.7978846, %v2600_v39 }
 0x6b6   : > { %v2614_v4 = vadd.f32 1.0, %v3738_v1 }
 0x6b7   : > { %3739 = vtanh.f32 %v2605_v48 }
 0x6b8   : > { %v2619_v44 = vmul.f32 %v2614_v4, %v2579_v3 }
 0x6ba   : > { %v2622_v6 = vpack.c.bf16 %v2619_v44, %v2618_v62 }
 0x6bc   : > { %2685 = vmatmul.bf16.gmra.mxu3 %v2622_v6 }
 0x6bd   : > { %v3740_v8 = vpop.eup %3739 }
 0x6be   : > { %v2615_v9 = vadd.f32 1.0, %v3740_v8 }
 0x6c0   : > { %v2620_v11 = vmul.f32 %v2615_v9, %v2580_v43 }
 0x6c2   : > { %v2623_v7 = vpack.c.bf16 %v2620_v11, %v2620_v11 }
 0x6cc   : > { %2690 = vmatmul.bf16.gmra.mxu3 %v2623_v7 }
 0x71c   : > { %v2681_v47 = vpop.f32.mrf.mxu3 }
 0x71d   : > { %v2695_v12 = vadd.f32 %v2681_v47, %v5030_v55 }
 0x71f   : > { %v2703_v17 = vadd.f32 %v3662_v58, %v2695_v12 }
 0x721   : > { %2708 = vst [vmem:[#allocation2 + $0x8] sm:$0xff] %v2703_v17 }
 0x724   : > { %v2683_v61 = vpop.f32.mrf.mxu3 }
 0x725   : > { %v2696_v18 = vadd.f32 %v2683_v61, %v5033_v0 }
 0x727   : > { %v2704_v19 = vadd.f32 %v3662_v58, %v2696_v18 }
 0x729   : > { %2709 = vst [vmem:[#allocation2] sm:$0xff] %v2704_v19 }
 0x73f   : > { %v2686_v33 = vpop.f32.mrf.mxu3 }
 0x740   : > { %v2697_v21 = vadd.f32 %v2686_v33, %v5036_v5 }
 0x742   : > { %v2705_v22 = vadd.f32 %v3662_v58, %v2697_v21 }
 0x744   : > { %2710 = vst [vmem:[#allocation2 + $0x20] sm:$0xff] %v2705_v22 }
 0x747   : > { %v2688_v14 = vpop.f32.mrf.mxu3 }
 0x748   : > { %v2698_v23 = vadd.f32 %v2688_v14, %v5039_v10 }
 0x74a   : > { %v2706_v24 = vadd.f32 %v3662_v58, %v2698_v23 }
 0x74c   : > { %2711 = vst [vmem:[#allocation2 + $0x10] sm:$0xff] %v2706_v24 }
 0x74f   : > { %v2691_v57 = vpop.f32.mrf.mxu3 }
 0x750   : > { %v2699_v55 = vadd.f32 %v2691_v57, %v5042_v16 }
 0x752   : > { %v2707_v34 = vadd.f32 %v3662_v58, %v2699_v55 }
 0x753   : > { %2716 = sbr.rel (%p3410_p5) target bundleno = 2053 (0x805), region = 136 }
 0x754   : > { %2712 = vst [vmem:[#allocation2 + $0x18] sm:$0x3] %v2707_v34 }
 0x757   : > { %v2693_v27 = vpop.f32.mrf.mxu3 }
 0x758   : > { %v3535_v0 = vld [vmem:[#allocation17 + $0x38] sm:$0xff]  ;;  %v3534_v5 = vld [vmem:[#allocation17 + $0x30] sm:$0xff]  ;;  %v3533_v30 = vld [vmem:[#allocation17 + $0x28] sm:$0xff]  ;;  %v2733_v20 = vpack.c.bf16 %v2704_v19, %v2703_v17  ;;  %v2734_v31 = vpack.c.bf16 %v2706_v24, %v2705_v22  ;;  %v2735_v36 = vpack.c.bf16 %v2707_v34, %v2707_v34 }
 0x759   : > { %2788 = vmatpush.bf16.msra.mxu0 %v3535_v0  ;;  %3536 = vmatpush.bf16.msra.mxu1 %v3535_v0  ;;  %v3532_v10 = vld [vmem:[#allocation17 + $0x20] sm:$0xff]  ;;  %v3531_v16 = vld [vmem:[#allocation17 + $0x18] sm:$0xff]  ;;  %v3530_v25 = vld [vmem:[#allocation17 + $0x10] sm:$0xff] }
 0x75a   : > { %3537 = vmatpush.bf16.msra.mxu2 %v3535_v0  ;;  %v3529_v13 = vld [vmem:[#allocation17 + $0x8] sm:$0xff]  ;;  %v3528_v15 = vld [vmem:[#allocation17] sm:$0xff] }
 0x75b   : > { %v3746_v37 = vld [vmem:[#allocation19] ss:$0 sm:$0xff] }
 0x75d   : > { %2789 = vmatpush.bf16.msra.mxu0 %v3534_v5  ;;  %3538 = vmatpush.bf16.msra.mxu1 %v3534_v5 }
 0x75e   : > { %3539 = vmatpush.bf16.msra.mxu2 %v3534_v5 }
 0x761   : > { %2790 = vmatpush.bf16.msra.mxu0 %v3533_v30  ;;  %3540 = vmatpush.bf16.msra.mxu1 %v3533_v30 }
 0x762   : > { %3541 = vmatpush.bf16.msra.mxu2 %v3533_v30 }
 0x765   : > { %2791 = vmatpush.bf16.msra.mxu0 %v3532_v10  ;;  %3542 = vmatpush.bf16.msra.mxu1 %v3532_v10 }
 0x766   : > { %3543 = vmatpush.bf16.msra.mxu2 %v3532_v10 }
 0x769   : > { %2792 = vmatpush.bf16.msra.mxu0 %v3531_v16  ;;  %3544 = vmatpush.bf16.msra.mxu1 %v3531_v16 }
 0x76a   : > { %3545 = vmatpush.bf16.msra.mxu2 %v3531_v16 }
 0x76d   : > { %2793 = vmatpush.bf16.msra.mxu0 %v3530_v25  ;;  %3546 = vmatpush.bf16.msra.mxu1 %v3530_v25 }
 0x76e   : > { %3547 = vmatpush.bf16.msra.mxu2 %v3530_v25 }
 0x771   : > { %2794 = vmatpush.bf16.msra.mxu0 %v3529_v13  ;;  %3548 = vmatpush.bf16.msra.mxu1 %v3529_v13 }
 0x772   : > { %3549 = vmatpush.bf16.msra.mxu2 %v3529_v13 }
 0x775   : > { %2795 = vmatpush.bf16.msra.mxu0 %v3528_v15  ;;  %3550 = vmatpush.bf16.msra.mxu1 %v3528_v15 }
 0x776   : > { %3551 = vmatpush.bf16.msra.mxu2 %v3528_v15 }
 0x778   : > { %2796 = vmatmul.bf16.vlgmr.msra.gmra.mxu0 %v2733_v20  ;;  %2801 = vmatmul.bf16.vlgmr.msra.gmra.mxu1 %v2734_v31 }
 0x779   : > { %2806 = vmatmul.bf16.vlgmr.msra.gmra.mxu2 %v2735_v36 }
 0x7f5   : > { %v2797_v38 = vpop.f32.mrf.mxu0  ;;  %v2802_v41 = vpop.f32.mrf.mxu1 }
 0x7f6   : > { %v2798_v42 = vadd.f32 %v3746_v37, %v2797_v38  ;;  %v2803_v45 = vadd.f32 %v3746_v37, %v2802_v41 }
 0x7f8   : > { %2811 = vst [vmem:[%s5250_s24] sm:$0xff] %v2798_v42 }
 0x7f9   : > { %2813 = vst [vmem:[%s5251_s1 + $0x10] sm:$0xff] %v2803_v45 }
 0x7fc   : > { %v2807_v46 = vpop.f32.mrf.mxu2 }
 0x7fd   : > { %v2808_v49 = vadd.f32 %v3746_v37, %v2807_v46  ;;  %v2799_v51 = vpop.f32.mrf.mxu0  ;;  %v2804_v50 = vpop.f32.mrf.mxu1 }
 0x7fe   : > { %v2800_v52 = vadd.f32 %v3746_v37, %v2799_v51  ;;  %v2805_v26 = vadd.f32 %v3746_v37, %v2804_v50 }
 0x7ff   : > { %2815 = vst [vmem:[%s5251_s1 + $0x20] sm:$0x3] %v2808_v49 }
 0x800   : > { %2812 = vst [vmem:[%s5251_s1 + $0x8] sm:$0xff] %v2800_v52 }
 0x801   : > { %2814 = vst [vmem:[%s5251_s1 + $0x18] sm:$0xff] %v2805_v26 }
 0x804   : > { %v2809_v53 = vpop.f32.mrf.mxu2 }
 0x805 PF: > { %s5252_s24 = sld [smem:[#allocation29_spill]] }
 0x806   : > { %s5253_s21 = sld [smem:[#allocation26_spill]] }
 0x807   : > { %s5254_s22 = sld [smem:[#allocation27_spill]] }
 0x808   : > { %s5255_s23 = sld [smem:[#allocation30_spill]] }
 0x80b   : > { %p39_p8 = scmp.ge.s32.totalorder %s5252_s24, 4  }
 0x80d   :  { %41 = sbr.rel (!%p39_p8) target bundleno = 23 (0x17), region = 241 }
 0x812   :  { %2827 = vsyncpa [#allocation4], 1 }
 0x813   :  { %2829 = vsyncpa [#allocation4 + $0x1], 1 }
 0x814   :  { %2830 = vsyncpa [#allocation6], 1 }
 0x815   :  { %2832 = vsyncpa [#allocation6 + $0x1], 1 }
 0x816   :  { %2833 = vsyncpa [#allocation9], 1 }
 0x817   :  { %2835 = vsyncpa [#allocation9 + $0x1], 1 }
 0x818   :  { %2836 = vsyncpa [#allocation12], 1 }
 0x819   :  { %2838 = vsyncpa [#allocation12 + $0x1], 1 }
 0x81a   :  { %2839 = vsyncpa [#allocation15], 1 }
 0x81b   :  { %2841 = vsyncpa [#allocation15 + $0x1], 1 }
 0x81c   :  { %2842 = vsyncpa [#allocation18], 1 }

</bundles_post_ra>
